<compile_context>
chip_gen: v6e
topology: v6e:2x2x1
jax: 0.10.0
libtpu: 0.0.40
codegen_flags: <defaults>
</compile_context>

<pallas_src>
import functools
import numpy as np
import jax
import jax.numpy as jnp
from jax import lax
from jax.experimental import pallas as pl
from jax.experimental.pallas import tpu as pltpu

NORM_RADIUS = 5.0       # ISModel(norm_radius=5), DistMaps spatial_scale = 1.0
SPATIAL_SCALE = 1.0
N_MAX_POINTS = 4        # clicks per group; points tensor has 2*N_MAX_POINTS rows (pos, neg)


def _round_up(x, m):
    return -(-x // m) * m


# -----------------------------------------------------------------------------------------
# Fused kernel: one program = one batch element x one tile of TRo output rows.
# Scratch row j corresponds to input row (2*t*TRo - 1 + j); its 48 packed channels are the
# three conv2 column taps [col 2c-1 | col 2c | col 2c+1], 16 conv1 channels each.
# -----------------------------------------------------------------------------------------
def _fused_kernel(pts_ref, rect_e_ref, rect_o_ref, w1_ref, b1_ref, w2_ref, b2_ref,
                  out_ref, y1_ref, stage_ref, *, nmax, tro, wout, nr_p, norm_radius):
    b = pl.program_id(0)
    t = pl.program_id(1)
    inv_r = 1.0 / (norm_radius * SPATIAL_SCALE)
    row0 = 2 * t * tro - 1                       # input row of scratch row 0 (-1 at t == 0)

    # column coordinates of the two column-parity sets (even: 2c, odd: 2c-1)
    col_e = 2.0 * lax.broadcasted_iota(jnp.int32, (1, wout), 1).astype(jnp.float32)
    col_o = (2.0 * lax.broadcasted_iota(jnp.int32, (1, wout + 1), 1).astype(jnp.float32)
             - 1.0)
    sub8 = lax.broadcasted_iota(jnp.int32, (8, 1), 0)

    w1p = w1_ref[0][None]                        # (1, 16, 1)
    w1n = w1_ref[1][None]
    w1r = w1_ref[2][None]
    b1v = b1_ref[...][None]                      # (1, 16, 1)

    def dist_plane(rowf, cols, group):
        # DistMaps (use_disks=False): tanh(2*sqrt(min_p ((r-py)/R)^2 + ((c-px)/R)^2)).
        # Invalid clicks were remapped to 1e9 on the host, so no per-element select needed.
        mind = jnp.full((8, cols.shape[1]), 1e6, dtype=jnp.float32)
        for p in range(nmax):
            off = (b * (2 * nmax) + group * nmax + p) * 2
            py = pts_ref[off]
            px = pts_ref[off + 1]
            dy = (rowf - py * SPATIAL_SCALE) * inv_r          # (8, 1)
            dx = (cols - px * SPATIAL_SCALE) * inv_r          # (1, ncols)
            mind = jnp.minimum(mind, dy * dy + dx * dx)       # (8, ncols)
        return jnp.tanh(2.0 * jnp.sqrt(mind))

    def conv1(dpos, dneg, rect):
        # 1x1 conv (3 -> 16) + ReLU on the VPU: three broadcast MACs per channel.
        y = (dpos[:, None, :] * w1p + dneg[:, None, :] * w1n
             + rect[:, None, :] * w1r + b1v)                  # (8, 16, ncols)
        return jnp.maximum(y, 0.0).astype(y1_ref.dtype)

    # ---- fill the packed conv1 scratch, 8 input rows per step ----------------------------
    def fill_block(blk, carry):
        j0 = pl.multiple_of(blk * 8, 8)
        rowf = (row0 + j0 + sub8).astype(jnp.float32)                 # (8, 1)
        re = rect_e_ref[0, 0, pl.ds(j0, 8), :]                        # (8, wout)   cols 2c
        ro = rect_o_ref[0, 0, pl.ds(j0, 8), :]                        # (8, wout+1) cols 2c-1
        ye = conv1(dist_plane(rowf, col_e, 0), dist_plane(rowf, col_e, 1), re)
        yo = conv1(dist_plane(rowf, col_o, 0), dist_plane(rowf, col_o, 1), ro)
        y1_ref[pl.ds(j0, 8), 0:16, :] = yo[:, :, :wout]               # kx=0 tap (col 2c-1)
        y1_ref[pl.ds(j0, 8), 16:32, :] = ye                           # kx=1 tap (col 2c)
        y1_ref[pl.ds(j0, 8), 32:48, :] = yo[:, :, 1:]                 # kx=2 tap (col 2c+1)
        return carry

    lax.fori_loop(0, nr_p // 8, fill_block, 0)

    # ---- conv2 zero padding: targeted stores, not full-tile validity multiplies ----------
    y1_ref[:, 0:16, 0:1] = jnp.zeros((nr_p, 16, 1), y1_ref.dtype)     # input column -1

    @pl.when(t == 0)
    def _zero_top_row():                                              # input row -1
        y1_ref[0] = jnp.zeros((48, wout), y1_ref.dtype)

    # ---- conv2 (3x3, stride 2, pad 1, 16 -> 64) + bias (+ folded ScaleLayer) --------------
    w20 = w2_ref[0]                               # (64, 48) bf16, ky = 0
    w21 = w2_ref[1]
    w22 = w2_ref[2]
    b2 = b2_ref[...]                              # (64, 1) f32

    def conv2_row(rl, carry):
        j = 2 * rl
        acc = jnp.dot(w20, y1_ref[j], preferred_element_type=jnp.float32)
        acc = acc + jnp.dot(w21, y1_ref[j + 1], preferred_element_type=jnp.float32)
        acc = acc + jnp.dot(w22, y1_ref[j + 2], preferred_element_type=jnp.float32)
        stage_ref[rl] = acc + b2                  # (64, wout) f32, leading-dim indexed store
        return carry

    lax.fori_loop(0, tro, conv2_row, 0)

    # ---- lane-dense NCHW writeback: assemble one (64, tro*wout) slab per grid step --------
    for rl in range(tro):                         # static offsets -> plain vector stores
        out_ref[0, :, rl * wout:(rl + 1) * wout] = stage_ref[rl]


# -----------------------------------------------------------------------------------------
# Row-tile selection (VMEM-budgeted, layout-legal, keeps >= 2 grid steps for batch == 1).
# -----------------------------------------------------------------------------------------
_VMEM_BUDGET = 24 * 1024 * 1024


def _vmem_per_step_bytes(tro, wout):
    nr_p = _round_up(2 * tro + 1, 8)
    out_blk = 2 * 64 * tro * wout * 4             # double-buffered output block
    stage = tro * 64 * wout * 4                   # f32 staging scratch
    y1 = nr_p * 48 * wout * 2                     # packed bf16 conv1 scratch
    rects = 2 * 2 * nr_p * (wout + 1) * 4         # double-buffered rect tiles (both parities)
    temps = 3 * 8 * 16 * (wout + 1) * 16          # rough elementwise-chain temporaries
    return out_blk + stage + y1 + rects + temps


def _pick_row_tile(hout, wout, batch):
    divs = [d for d in range(1, hout + 1) if hout % d == 0]
    ok = [d for d in divs
          if (d == hout or (d * wout) % 128 == 0)            # lane-dense / legal out block
          and _vmem_per_step_bytes(d, wout) <= _VMEM_BUDGET]
    if not ok:
        ok = [hout]                                          # single tile is always legal
    if batch == 1 and hout > 1:
        two = [d for d in ok if hout // d >= 2]              # keep both TCs busy on v7x
        if two:
            ok = two
    return max(ok)


# -----------------------------------------------------------------------------------------
# Wrapper: host-side prep touches only tiny tensors (points, rectangle, weights), then one
# pipelined pallas_call produces the full coord_features map in NCHW.
# -----------------------------------------------------------------------------------------
def maps_transform_fused(points, rectangle, params):
    B, _, H, W = rectangle.shape
    assert H % 2 == 0 and W % 2 == 0, "stride-2 conv path expects even spatial dims"
    hout, wout = H // 2, W // 2
    tro = _pick_row_tile(hout, wout, B)
    n_t = hout // tro
    nr = 2 * tro + 1
    nr_p = _round_up(nr, 8)
    nmax = points.shape[1] // 2

    # rectangle channel: even/odd column split + per-tile halo row windows (cheap, tiny).
    rect2d = rectangle[:, 0].astype(jnp.float32)                               # (B, H, W)
    rect_e = rect2d[:, :, 0::2]                                                # cols 2c
    rect_o = jnp.concatenate([jnp.zeros((B, H, 1), jnp.float32),
                              rect2d[:, :, 1::2]], axis=2)                     # cols 2c-1

    def window(x):
        pad_t = jnp.zeros((B, 1) + x.shape[2:], jnp.float32)                   # input row -1
        pad_b = jnp.zeros((B, nr_p - nr) + x.shape[2:], jnp.float32)           # round-up rows
        xp = jnp.concatenate([pad_t, x, pad_b], axis=1)
        win = (jnp.arange(n_t) * (2 * tro))[:, None] + jnp.arange(nr_p)[None, :]
        return xp[:, win, :]                                                   # (B, n_t, nr_p, .)

    rect_e_t = window(rect_e)                                                  # (B, n_t, nr_p, wout)
    rect_o_t = window(rect_o)                                                  # (B, n_t, nr_p, wout+1)

    # points: invalid clicks -> 1e9 so the kernel needs no per-element validity select.
    pts_yx = points[..., :2].astype(jnp.float32)
    valid = (jnp.maximum(points[..., 0], points[..., 1]) >= 0)[..., None]
    pts_flat = jnp.where(valid, pts_yx, 1e9).reshape(-1)                       # SMEM scalars

    # weights: ScaleLayer |scale*lr_mult| folded into conv2; conv2 packed to (ky, 64, 3*16).
    scale_abs = jnp.abs(jnp.asarray(params["scale"], jnp.float32)
                        * params["lr_mult"]).reshape(())
    w1 = jnp.transpose(params["w1"].reshape(16, 3).astype(jnp.float32), (1, 0))[:, :, None]
    b1 = params["b1"].reshape(16, 1).astype(jnp.float32)
    w2p = jnp.transpose(params["w2"].astype(jnp.float32), (2, 0, 3, 1)).reshape(3, 64, 48)
    w2p = (w2p * scale_abs).astype(jnp.bfloat16)
    b2 = (params["b2"].astype(jnp.float32) * scale_abs).reshape(64, 1)

    kernel = functools.partial(_fused_kernel, nmax=nmax, tro=tro, wout=wout,
                               nr_p=nr_p, norm_radius=NORM_RADIUS)
    out = pl.pallas_call(
        kernel,
        out_shape=jax.ShapeDtypeStruct((B, 64, hout * wout), jnp.float32),
        grid=(B, n_t),
        in_specs=[
            pl.BlockSpec(memory_space=pltpu.MemorySpace.SMEM),                 # points
            pl.BlockSpec((1, 1, nr_p, wout), lambda b, t: (b, t, 0, 0)),
            pl.BlockSpec((1, 1, nr_p, wout + 1), lambda b, t: (b, t, 0, 0)),
            pl.BlockSpec((3, 16, 1), lambda b, t: (0, 0, 0)),
            pl.BlockSpec((16, 1), lambda b, t: (0, 0)),
            pl.BlockSpec((3, 64, 48), lambda b, t: (0, 0, 0)),
            pl.BlockSpec((64, 1), lambda b, t: (0, 0)),
        ],
        out_specs=pl.BlockSpec((1, 64, tro * wout), lambda b, t: (b, 0, t)),
        scratch_shapes=[
            pltpu.VMEM((nr_p, 48, wout), jnp.bfloat16),      # packed conv1 column taps
            pltpu.VMEM((tro, 64, wout), jnp.float32),        # per-row conv2 results
        ],
        compiler_params=pltpu.CompilerParams(
            dimension_semantics=("parallel", "parallel"),
            vmem_limit_bytes=32 * 1024 * 1024,
        ),
    )(pts_flat, rect_e_t, rect_o_t, w1, b1, w2p, b2)
    return out.reshape(B, 64, hout, wout)                    # free reshape -> NCHW


def is_model_forward(image, points, rectangle, params):
    del image  # only consumed by the abstract backbone_forward in the reference
    coord_features = maps_transform_fused(points, rectangle, params)  # (B, 64, H/2, W/2)
    # TODO(synk): outputs = self.backbone_forward(image, coord_features) is abstract in the
    #             reference; the bilinear upsample of outputs['instances'] and the cv2 /
    #             matplotlib file I/O are therefore omitted.
    return {"coord_features": coord_features}


# -----------------------------------------------------------------------------------------
# Pure-JAX reference for the numerical sanity check
# -----------------------------------------------------------------------------------------
def _ref_forward(image, points, rectangle, params):
    B, _, H, W = image.shape
    nmax = points.shape[1] // 2
    rows = jnp.arange(H, dtype=jnp.float32)[:, None]
    cols = jnp.arange(W, dtype=jnp.float32)[None, :]
    per_batch = []
    for b in range(B):
        per_group = []
        for g in range(2):
            mind = jnp.full((H, W), 1e6, jnp.float32)
            for p in range(nmax):
                py, px = points[b, g * nmax + p, 0], points[b, g * nmax + p, 1]
                d = ((rows - py) / NORM_RADIUS) ** 2 + ((cols - px) / NORM_RADIUS) ** 2
                d = jnp.where(jnp.maximum(py, px) >= 0, d, 1e6)
                mind = jnp.minimum(mind, d)
            per_group.append(jnp.tanh(2.0 * jnp.sqrt(mind)))
        per_batch.append(jnp.stack(per_group))
    dist = jnp.stack(per_batch)
    coord = jnp.concatenate([dist, rectangle], axis=1)
    dn = ("NCHW", "OIHW", "NCHW")
    y1 = lax.conv_general_dilated(coord, params["w1"], (1, 1), "VALID", dimension_numbers=dn)
    y1 = jnp.maximum(y1 + params["b1"][None, :, None, None], 0.0)
    y2 = lax.conv_general_dilated(y1, params["w2"], (2, 2), ((1, 1), (1, 1)),
                                  dimension_numbers=dn)
    y2 = y2 + params["b2"][None, :, None, None]
    return y2 * jnp.abs(params["scale"] * params["lr_mult"])


if __name__ == "__main__":
    root = jax.random.PRNGKey(0)
    kw1, kb1, kw2, kb2 = jax.random.split(root, 4)
    params = {
        "w1": jax.random.normal(kw1, (16, 3, 1, 1), jnp.float32) * 0.2,
        "b1": jax.random.normal(kb1, (16,), jnp.float32) * 0.05,
        "w2": jax.random.normal(kw2, (64, 16, 3, 3), jnp.float32) * 0.1,
        "b2": jax.random.normal(kb2, (64,), jnp.float32) * 0.05,
        "scale": jnp.array([0.05], jnp.float32),     # ScaleLayer: init_value / lr_mult
        "lr_mult": 1.0,
    }

    def run_case(B, H, W, clicks):
        image = jnp.zeros((B, 3, H, W), jnp.float32)
        pts = np.full((B, 2 * N_MAX_POINTS, 3), -1.0, dtype=np.float32)
        for b, g, p, y, x in clicks:
            pts[b, g * N_MAX_POINTS + p] = [y, x, p]
        points = jnp.asarray(pts)
        rect = np.zeros((B, 1, H, W), dtype=np.float32)
        for b in range(B):
            rect[b, 0, 1 + b:H - 2, 2:W - 3 - b] = 1.0
        rectangle = jnp.asarray(rect)

        outputs = is_model_forward(image, points, rectangle, params)
        got = np.asarray(jax.block_until_ready(outputs["coord_features"]))
        ref = np.asarray(_ref_forward(image, points, rectangle, params))
        assert got.shape == (B, 64, H // 2, W // 2), got.shape
        err = float(np.max(np.abs(got - ref)))
        assert np.allclose(got, ref, atol=1e-2, rtol=5e-2), f"max abs err {err}"

    # small sanity case + a multi-row-tile case (batch=1 -> two grid steps) that exercises
    # the halo rows, the t > 0 (no top padding) path and the multi-block lane-dense output.
    run_case(2, 16, 16, [(0, 0, 0, 4.0, 5.0), (0, 1, 0, 12.0, 3.0),
                         (1, 0, 0, 8.0, 8.0), (1, 0, 1, 2.0, 13.0), (1, 1, 1, 14.0, 14.0)])
    run_case(1, 64, 64, [(0, 0, 0, 10.0, 40.0), (0, 0, 1, 50.0, 12.0), (0, 1, 0, 33.0, 33.0)])

    print("KERNEL_OK")
</pallas_src>

<mosaic_0001>
module attributes {stable_mosaic.version = 11 : i64} {
  func.func @_fused_kernel(%arg0: i32, %arg1: i32, %arg2: memref<32xf32, #tpu.memory_space<smem>>, %arg3: memref<1x1x24x8xf32, #tpu.memory_space<vmem>>, %arg4: memref<1x1x24x9xf32, #tpu.memory_space<vmem>>, %arg5: memref<3x16x1xf32, #tpu.memory_space<vmem>>, %arg6: memref<16x1xf32, #tpu.memory_space<vmem>>, %arg7: memref<3x64x48xbf16, #tpu.memory_space<vmem>>, %arg8: memref<64x1xf32, #tpu.memory_space<vmem>>, %arg9: memref<1x64x64xf32, #tpu.memory_space<vmem>>, %arg10: memref<24x48x8xbf16, #tpu.memory_space<vmem>>, %arg11: memref<8x64x8xf32, #tpu.memory_space<vmem>>) attributes {dimension_semantics = [#tpu.dimension_semantics<parallel>, #tpu.dimension_semantics<parallel>], iteration_bounds = array<i64: 2, 1>, scalar_prefetch = 0 : i64, scratch_operands = 2 : i64, tpu.core_type = #tpu.core_type<tc>, window_params = [{transform_indices = @transform_0, window_bounds = array<i64: 32>}, {transform_indices = @transform_1, window_bounds = array<i64: 1, 1, 24, 8>}, {transform_indices = @transform_2, window_bounds = array<i64: 1, 1, 24, 9>}, {pipeline_mode = #tpu.pipeline_mode<synchronous>, transform_indices = @transform_3, window_bounds = array<i64: 3, 16, 1>}, {pipeline_mode = #tpu.pipeline_mode<synchronous>, transform_indices = @transform_4, window_bounds = array<i64: 16, 1>}, {pipeline_mode = #tpu.pipeline_mode<synchronous>, transform_indices = @transform_5, window_bounds = array<i64: 3, 64, 48>}, {pipeline_mode = #tpu.pipeline_mode<synchronous>, transform_indices = @transform_6, window_bounds = array<i64: 64, 1>}, {transform_indices = @transform_7, window_bounds = array<i64: 1, 64, 64>}]} {
    %c2_i32 = arith.constant 2 : i32
    %0 = arith.muli %c2_i32, %arg1 : i32
    %c8_i32 = arith.constant 8 : i32
    %1 = arith.muli %0, %c8_i32 : i32
    %c1_i32 = arith.constant 1 : i32
    %2 = arith.subi %1, %c1_i32 : i32
    %3 = tpu.iota {dimensions = array<i32: 1>} : vector<1x8xi32>
    %4 = arith.sitofp %3 : vector<1x8xi32> to vector<1x8xf32>
    %cst = arith.constant 2.000000e+00 : f32
    %5 = vector.broadcast %cst : f32 to vector<1x8xf32>
    %6 = arith.mulf %5, %4 : vector<1x8xf32>
    %7 = tpu.iota {dimensions = array<i32: 1>} : vector<1x9xi32>
    %8 = arith.sitofp %7 : vector<1x9xi32> to vector<1x9xf32>
    %cst_0 = arith.constant 2.000000e+00 : f32
    %9 = vector.broadcast %cst_0 : f32 to vector<1x9xf32>
    %10 = arith.mulf %9, %8 : vector<1x9xf32>
    %cst_1 = arith.constant 1.000000e+00 : f32
    %11 = vector.broadcast %cst_1 : f32 to vector<1x9xf32>
    %12 = arith.subf %10, %11 : vector<1x9xf32>
    %13 = tpu.iota {dimensions = array<i32: 0>} : vector<8x1xi32>
    %c0 = arith.constant 0 : index
    %c0_2 = arith.constant 0 : index
    %c0_3 = arith.constant 0 : index
    %14 = vector.load %arg5[%c0, %c0_2, %c0_3] : memref<3x16x1xf32, #tpu.memory_space<vmem>>, vector<1x16x1xf32>
    %15 = vector.shape_cast %14 : vector<1x16x1xf32> to vector<16x1xf32>
    %16 = vector.shape_cast %15 : vector<16x1xf32> to vector<1x16x1xf32>
    %c1 = arith.constant 1 : index
    %c0_4 = arith.constant 0 : index
    %c0_5 = arith.constant 0 : index
    %17 = vector.load %arg5[%c1, %c0_4, %c0_5] : memref<3x16x1xf32, #tpu.memory_space<vmem>>, vector<1x16x1xf32>
    %18 = vector.shape_cast %17 : vector<1x16x1xf32> to vector<16x1xf32>
    %19 = vector.shape_cast %18 : vector<16x1xf32> to vector<1x16x1xf32>
    %c2 = arith.constant 2 : index
    %c0_6 = arith.constant 0 : index
    %c0_7 = arith.constant 0 : index
    %20 = vector.load %arg5[%c2, %c0_6, %c0_7] : memref<3x16x1xf32, #tpu.memory_space<vmem>>, vector<1x16x1xf32>
    %21 = vector.shape_cast %20 : vector<1x16x1xf32> to vector<16x1xf32>
    %22 = vector.shape_cast %21 : vector<16x1xf32> to vector<1x16x1xf32>
    %c0_8 = arith.constant 0 : index
    %c0_9 = arith.constant 0 : index
    %23 = vector.load %arg6[%c0_8, %c0_9] : memref<16x1xf32, #tpu.memory_space<vmem>>, vector<16x1xf32>
    %24 = vector.shape_cast %23 : vector<16x1xf32> to vector<1x16x1xf32>
    %c0_i32 = arith.constant 0 : i32
    %c3_i32 = arith.constant 3 : i32
    %25 = arith.addi %c0_i32, %c3_i32 : i32
    %c1_i32_10 = arith.constant 1 : i32
    scf.for %arg12 = %c0_i32 to %25 step %c1_i32_10  : i32 {
      %c8_i32_69 = arith.constant 8 : i32
      %79 = arith.muli %arg12, %c8_i32_69 : i32
      %80 = tpu.assume_multiple %79, 8 : i32
      %81 = arith.addi %2, %80 : i32
      %82 = vector.broadcast %81 : i32 to vector<8x1xi32>
      %83 = arith.addi %82, %13 : vector<8x1xi32>
      %84 = arith.sitofp %83 : vector<8x1xi32> to vector<8x1xf32>
      %c0_70 = arith.constant 0 : index
      %c0_71 = arith.constant 0 : index
      %85 = arith.index_cast %80 : i32 to index
      %c0_72 = arith.constant 0 : index
      %86 = vector.load %arg3[%c0_70, %c0_71, %85, %c0_72] : memref<1x1x24x8xf32, #tpu.memory_space<vmem>>, vector<1x1x8x8xf32>
      %87 = vector.shape_cast %86 : vector<1x1x8x8xf32> to vector<8x8xf32>
      %c0_73 = arith.constant 0 : index
      %c0_74 = arith.constant 0 : index
      %88 = arith.index_cast %80 : i32 to index
      %c0_75 = arith.constant 0 : index
      %89 = vector.load %arg4[%c0_73, %c0_74, %88, %c0_75] : memref<1x1x24x9xf32, #tpu.memory_space<vmem>>, vector<1x1x8x9xf32>
      %90 = vector.shape_cast %89 : vector<1x1x8x9xf32> to vector<8x9xf32>
      %cst_76 = arith.constant 1.000000e+06 : f32
      %91 = vector.broadcast %cst_76 : f32 to vector<8x8xf32>
      %c8_i32_77 = arith.constant 8 : i32
      %92 = arith.muli %arg0, %c8_i32_77 : i32
      %c0_i32_78 = arith.constant 0 : i32
      %93 = arith.addi %92, %c0_i32_78 : i32
      %c0_i32_79 = arith.constant 0 : i32
      %94 = arith.addi %93, %c0_i32_79 : i32
      %c2_i32_80 = arith.constant 2 : i32
      %95 = arith.muli %94, %c2_i32_80 : i32
      %96 = arith.index_cast %95 : i32 to index
      %97 = memref.load %arg2[%96] : memref<32xf32, #tpu.memory_space<smem>>
      %c1_i32_81 = arith.constant 1 : i32
      %98 = arith.addi %95, %c1_i32_81 : i32
      %99 = arith.index_cast %98 : i32 to index
      %100 = memref.load %arg2[%99] : memref<32xf32, #tpu.memory_space<smem>>
      %cst_82 = arith.constant 1.000000e+00 : f32
      %101 = arith.mulf %97, %cst_82 : f32
      %102 = vector.broadcast %101 : f32 to vector<8x1xf32>
      %103 = arith.subf %84, %102 : vector<8x1xf32>
      %cst_83 = arith.constant 2.000000e-01 : f32
      %104 = vector.broadcast %cst_83 : f32 to vector<8x1xf32>
      %105 = arith.mulf %103, %104 : vector<8x1xf32>
      %cst_84 = arith.constant 1.000000e+00 : f32
      %106 = arith.mulf %100, %cst_84 : f32
      %107 = vector.broadcast %106 : f32 to vector<1x8xf32>
      %108 = arith.subf %6, %107 : vector<1x8xf32>
      %cst_85 = arith.constant 2.000000e-01 : f32
      %109 = vector.broadcast %cst_85 : f32 to vector<1x8xf32>
      %110 = arith.mulf %108, %109 : vector<1x8xf32>
      %111 = arith.mulf %105, %105 : vector<8x1xf32>
      %112 = arith.mulf %110, %110 : vector<1x8xf32>
      %113 = vector.broadcast %111 : vector<8x1xf32> to vector<8x8xf32>
      %114 = vector.broadcast %112 : vector<1x8xf32> to vector<8x8xf32>
      %115 = arith.addf %113, %114 : vector<8x8xf32>
      %116 = arith.minimumf %91, %115 : vector<8x8xf32>
      %c8_i32_86 = arith.constant 8 : i32
      %117 = arith.muli %arg0, %c8_i32_86 : i32
      %c0_i32_87 = arith.constant 0 : i32
      %118 = arith.addi %117, %c0_i32_87 : i32
      %c1_i32_88 = arith.constant 1 : i32
      %119 = arith.addi %118, %c1_i32_88 : i32
      %c2_i32_89 = arith.constant 2 : i32
      %120 = arith.muli %119, %c2_i32_89 : i32
      %121 = arith.index_cast %120 : i32 to index
      %122 = memref.load %arg2[%121] : memref<32xf32, #tpu.memory_space<smem>>
      %c1_i32_90 = arith.constant 1 : i32
      %123 = arith.addi %120, %c1_i32_90 : i32
      %124 = arith.index_cast %123 : i32 to index
      %125 = memref.load %arg2[%124] : memref<32xf32, #tpu.memory_space<smem>>
      %cst_91 = arith.constant 1.000000e+00 : f32
      %126 = arith.mulf %122, %cst_91 : f32
      %127 = vector.broadcast %126 : f32 to vector<8x1xf32>
      %128 = arith.subf %84, %127 : vector<8x1xf32>
      %cst_92 = arith.constant 2.000000e-01 : f32
      %129 = vector.broadcast %cst_92 : f32 to vector<8x1xf32>
      %130 = arith.mulf %128, %129 : vector<8x1xf32>
      %cst_93 = arith.constant 1.000000e+00 : f32
      %131 = arith.mulf %125, %cst_93 : f32
      %132 = vector.broadcast %131 : f32 to vector<1x8xf32>
      %133 = arith.subf %6, %132 : vector<1x8xf32>
      %cst_94 = arith.constant 2.000000e-01 : f32
      %134 = vector.broadcast %cst_94 : f32 to vector<1x8xf32>
      %135 = arith.mulf %133, %134 : vector<1x8xf32>
      %136 = arith.mulf %130, %130 : vector<8x1xf32>
      %137 = arith.mulf %135, %135 : vector<1x8xf32>
      %138 = vector.broadcast %136 : vector<8x1xf32> to vector<8x8xf32>
      %139 = vector.broadcast %137 : vector<1x8xf32> to vector<8x8xf32>
      %140 = arith.addf %138, %139 : vector<8x8xf32>
      %141 = arith.minimumf %116, %140 : vector<8x8xf32>
      %c8_i32_95 = arith.constant 8 : i32
      %142 = arith.muli %arg0, %c8_i32_95 : i32
      %c0_i32_96 = arith.constant 0 : i32
      %143 = arith.addi %142, %c0_i32_96 : i32
      %c2_i32_97 = arith.constant 2 : i32
      %144 = arith.addi %143, %c2_i32_97 : i32
      %c2_i32_98 = arith.constant 2 : i32
      %145 = arith.muli %144, %c2_i32_98 : i32
      %146 = arith.index_cast %145 : i32 to index
      %147 = memref.load %arg2[%146] : memref<32xf32, #tpu.memory_space<smem>>
      %c1_i32_99 = arith.constant 1 : i32
      %148 = arith.addi %145, %c1_i32_99 : i32
      %149 = arith.index_cast %148 : i32 to index
      %150 = memref.load %arg2[%149] : memref<32xf32, #tpu.memory_space<smem>>
      %cst_100 = arith.constant 1.000000e+00 : f32
      %151 = arith.mulf %147, %cst_100 : f32
      %152 = vector.broadcast %151 : f32 to vector<8x1xf32>
      %153 = arith.subf %84, %152 : vector<8x1xf32>
      %cst_101 = arith.constant 2.000000e-01 : f32
      %154 = vector.broadcast %cst_101 : f32 to vector<8x1xf32>
      %155 = arith.mulf %153, %154 : vector<8x1xf32>
      %cst_102 = arith.constant 1.000000e+00 : f32
      %156 = arith.mulf %150, %cst_102 : f32
      %157 = vector.broadcast %156 : f32 to vector<1x8xf32>
      %158 = arith.subf %6, %157 : vector<1x8xf32>
      %cst_103 = arith.constant 2.000000e-01 : f32
      %159 = vector.broadcast %cst_103 : f32 to vector<1x8xf32>
      %160 = arith.mulf %158, %159 : vector<1x8xf32>
      %161 = arith.mulf %155, %155 : vector<8x1xf32>
      %162 = arith.mulf %160, %160 : vector<1x8xf32>
      %163 = vector.broadcast %161 : vector<8x1xf32> to vector<8x8xf32>
      %164 = vector.broadcast %162 : vector<1x8xf32> to vector<8x8xf32>
      %165 = arith.addf %163, %164 : vector<8x8xf32>
      %166 = arith.minimumf %141, %165 : vector<8x8xf32>
      %c8_i32_104 = arith.constant 8 : i32
      %167 = arith.muli %arg0, %c8_i32_104 : i32
      %c0_i32_105 = arith.constant 0 : i32
      %168 = arith.addi %167, %c0_i32_105 : i32
      %c3_i32_106 = arith.constant 3 : i32
      %169 = arith.addi %168, %c3_i32_106 : i32
      %c2_i32_107 = arith.constant 2 : i32
      %170 = arith.muli %169, %c2_i32_107 : i32
      %171 = arith.index_cast %170 : i32 to index
      %172 = memref.load %arg2[%171] : memref<32xf32, #tpu.memory_space<smem>>
      %c1_i32_108 = arith.constant 1 : i32
      %173 = arith.addi %170, %c1_i32_108 : i32
      %174 = arith.index_cast %173 : i32 to index
      %175 = memref.load %arg2[%174] : memref<32xf32, #tpu.memory_space<smem>>
      %cst_109 = arith.constant 1.000000e+00 : f32
      %176 = arith.mulf %172, %cst_109 : f32
      %177 = vector.broadcast %176 : f32 to vector<8x1xf32>
      %178 = arith.subf %84, %177 : vector<8x1xf32>
      %cst_110 = arith.constant 2.000000e-01 : f32
      %179 = vector.broadcast %cst_110 : f32 to vector<8x1xf32>
      %180 = arith.mulf %178, %179 : vector<8x1xf32>
      %cst_111 = arith.constant 1.000000e+00 : f32
      %181 = arith.mulf %175, %cst_111 : f32
      %182 = vector.broadcast %181 : f32 to vector<1x8xf32>
      %183 = arith.subf %6, %182 : vector<1x8xf32>
      %cst_112 = arith.constant 2.000000e-01 : f32
      %184 = vector.broadcast %cst_112 : f32 to vector<1x8xf32>
      %185 = arith.mulf %183, %184 : vector<1x8xf32>
      %186 = arith.mulf %180, %180 : vector<8x1xf32>
      %187 = arith.mulf %185, %185 : vector<1x8xf32>
      %188 = vector.broadcast %186 : vector<8x1xf32> to vector<8x8xf32>
      %189 = vector.broadcast %187 : vector<1x8xf32> to vector<8x8xf32>
      %190 = arith.addf %188, %189 : vector<8x8xf32>
      %191 = arith.minimumf %166, %190 : vector<8x8xf32>
      %192 = math.sqrt %191 : vector<8x8xf32>
      %cst_113 = arith.constant 2.000000e+00 : f32
      %193 = vector.broadcast %cst_113 : f32 to vector<8x8xf32>
      %194 = arith.mulf %193, %192 : vector<8x8xf32>
      %195 = math.tanh %194 : vector<8x8xf32>
      %cst_114 = arith.constant 1.000000e+06 : f32
      %196 = vector.broadcast %cst_114 : f32 to vector<8x8xf32>
      %c8_i32_115 = arith.constant 8 : i32
      %197 = arith.muli %arg0, %c8_i32_115 : i32
      %c4_i32 = arith.constant 4 : i32
      %198 = arith.addi %197, %c4_i32 : i32
      %c0_i32_116 = arith.constant 0 : i32
      %199 = arith.addi %198, %c0_i32_116 : i32
      %c2_i32_117 = arith.constant 2 : i32
      %200 = arith.muli %199, %c2_i32_117 : i32
      %201 = arith.index_cast %200 : i32 to index
      %202 = memref.load %arg2[%201] : memref<32xf32, #tpu.memory_space<smem>>
      %c1_i32_118 = arith.constant 1 : i32
      %203 = arith.addi %200, %c1_i32_118 : i32
      %204 = arith.index_cast %203 : i32 to index
      %205 = memref.load %arg2[%204] : memref<32xf32, #tpu.memory_space<smem>>
      %cst_119 = arith.constant 1.000000e+00 : f32
      %206 = arith.mulf %202, %cst_119 : f32
      %207 = vector.broadcast %206 : f32 to vector<8x1xf32>
      %208 = arith.subf %84, %207 : vector<8x1xf32>
      %cst_120 = arith.constant 2.000000e-01 : f32
      %209 = vector.broadcast %cst_120 : f32 to vector<8x1xf32>
      %210 = arith.mulf %208, %209 : vector<8x1xf32>
      %cst_121 = arith.constant 1.000000e+00 : f32
      %211 = arith.mulf %205, %cst_121 : f32
      %212 = vector.broadcast %211 : f32 to vector<1x8xf32>
      %213 = arith.subf %6, %212 : vector<1x8xf32>
      %cst_122 = arith.constant 2.000000e-01 : f32
      %214 = vector.broadcast %cst_122 : f32 to vector<1x8xf32>
      %215 = arith.mulf %213, %214 : vector<1x8xf32>
      %216 = arith.mulf %210, %210 : vector<8x1xf32>
      %217 = arith.mulf %215, %215 : vector<1x8xf32>
      %218 = vector.broadcast %216 : vector<8x1xf32> to vector<8x8xf32>
      %219 = vector.broadcast %217 : vector<1x8xf32> to vector<8x8xf32>
      %220 = arith.addf %218, %219 : vector<8x8xf32>
      %221 = arith.minimumf %196, %220 : vector<8x8xf32>
      %c8_i32_123 = arith.constant 8 : i32
      %222 = arith.muli %arg0, %c8_i32_123 : i32
      %c4_i32_124 = arith.constant 4 : i32
      %223 = arith.addi %222, %c4_i32_124 : i32
      %c1_i32_125 = arith.constant 1 : i32
      %224 = arith.addi %223, %c1_i32_125 : i32
      %c2_i32_126 = arith.constant 2 : i32
      %225 = arith.muli %224, %c2_i32_126 : i32
      %226 = arith.index_cast %225 : i32 to index
      %227 = memref.load %arg2[%226] : memref<32xf32, #tpu.memory_space<smem>>
      %c1_i32_127 = arith.constant 1 : i32
      %228 = arith.addi %225, %c1_i32_127 : i32
      %229 = arith.index_cast %228 : i32 to index
      %230 = memref.load %arg2[%229] : memref<32xf32, #tpu.memory_space<smem>>
      %cst_128 = arith.constant 1.000000e+00 : f32
      %231 = arith.mulf %227, %cst_128 : f32
      %232 = vector.broadcast %231 : f32 to vector<8x1xf32>
      %233 = arith.subf %84, %232 : vector<8x1xf32>
      %cst_129 = arith.constant 2.000000e-01 : f32
      %234 = vector.broadcast %cst_129 : f32 to vector<8x1xf32>
      %235 = arith.mulf %233, %234 : vector<8x1xf32>
      %cst_130 = arith.constant 1.000000e+00 : f32
      %236 = arith.mulf %230, %cst_130 : f32
      %237 = vector.broadcast %236 : f32 to vector<1x8xf32>
      %238 = arith.subf %6, %237 : vector<1x8xf32>
      %cst_131 = arith.constant 2.000000e-01 : f32
      %239 = vector.broadcast %cst_131 : f32 to vector<1x8xf32>
      %240 = arith.mulf %238, %239 : vector<1x8xf32>
      %241 = arith.mulf %235, %235 : vector<8x1xf32>
      %242 = arith.mulf %240, %240 : vector<1x8xf32>
      %243 = vector.broadcast %241 : vector<8x1xf32> to vector<8x8xf32>
      %244 = vector.broadcast %242 : vector<1x8xf32> to vector<8x8xf32>
      %245 = arith.addf %243, %244 : vector<8x8xf32>
      %246 = arith.minimumf %221, %245 : vector<8x8xf32>
      %c8_i32_132 = arith.constant 8 : i32
      %247 = arith.muli %arg0, %c8_i32_132 : i32
      %c4_i32_133 = arith.constant 4 : i32
      %248 = arith.addi %247, %c4_i32_133 : i32
      %c2_i32_134 = arith.constant 2 : i32
      %249 = arith.addi %248, %c2_i32_134 : i32
      %c2_i32_135 = arith.constant 2 : i32
      %250 = arith.muli %249, %c2_i32_135 : i32
      %251 = arith.index_cast %250 : i32 to index
      %252 = memref.load %arg2[%251] : memref<32xf32, #tpu.memory_space<smem>>
      %c1_i32_136 = arith.constant 1 : i32
      %253 = arith.addi %250, %c1_i32_136 : i32
      %254 = arith.index_cast %253 : i32 to index
      %255 = memref.load %arg2[%254] : memref<32xf32, #tpu.memory_space<smem>>
      %cst_137 = arith.constant 1.000000e+00 : f32
      %256 = arith.mulf %252, %cst_137 : f32
      %257 = vector.broadcast %256 : f32 to vector<8x1xf32>
      %258 = arith.subf %84, %257 : vector<8x1xf32>
      %cst_138 = arith.constant 2.000000e-01 : f32
      %259 = vector.broadcast %cst_138 : f32 to vector<8x1xf32>
      %260 = arith.mulf %258, %259 : vector<8x1xf32>
      %cst_139 = arith.constant 1.000000e+00 : f32
      %261 = arith.mulf %255, %cst_139 : f32
      %262 = vector.broadcast %261 : f32 to vector<1x8xf32>
      %263 = arith.subf %6, %262 : vector<1x8xf32>
      %cst_140 = arith.constant 2.000000e-01 : f32
      %264 = vector.broadcast %cst_140 : f32 to vector<1x8xf32>
      %265 = arith.mulf %263, %264 : vector<1x8xf32>
      %266 = arith.mulf %260, %260 : vector<8x1xf32>
      %267 = arith.mulf %265, %265 : vector<1x8xf32>
      %268 = vector.broadcast %266 : vector<8x1xf32> to vector<8x8xf32>
      %269 = vector.broadcast %267 : vector<1x8xf32> to vector<8x8xf32>
      %270 = arith.addf %268, %269 : vector<8x8xf32>
      %271 = arith.minimumf %246, %270 : vector<8x8xf32>
      %c8_i32_141 = arith.constant 8 : i32
      %272 = arith.muli %arg0, %c8_i32_141 : i32
      %c4_i32_142 = arith.constant 4 : i32
      %273 = arith.addi %272, %c4_i32_142 : i32
      %c3_i32_143 = arith.constant 3 : i32
      %274 = arith.addi %273, %c3_i32_143 : i32
      %c2_i32_144 = arith.constant 2 : i32
      %275 = arith.muli %274, %c2_i32_144 : i32
      %276 = arith.index_cast %275 : i32 to index
      %277 = memref.load %arg2[%276] : memref<32xf32, #tpu.memory_space<smem>>
      %c1_i32_145 = arith.constant 1 : i32
      %278 = arith.addi %275, %c1_i32_145 : i32
      %279 = arith.index_cast %278 : i32 to index
      %280 = memref.load %arg2[%279] : memref<32xf32, #tpu.memory_space<smem>>
      %cst_146 = arith.constant 1.000000e+00 : f32
      %281 = arith.mulf %277, %cst_146 : f32
      %282 = vector.broadcast %281 : f32 to vector<8x1xf32>
      %283 = arith.subf %84, %282 : vector<8x1xf32>
      %cst_147 = arith.constant 2.000000e-01 : f32
      %284 = vector.broadcast %cst_147 : f32 to vector<8x1xf32>
      %285 = arith.mulf %283, %284 : vector<8x1xf32>
      %cst_148 = arith.constant 1.000000e+00 : f32
      %286 = arith.mulf %280, %cst_148 : f32
      %287 = vector.broadcast %286 : f32 to vector<1x8xf32>
      %288 = arith.subf %6, %287 : vector<1x8xf32>
      %cst_149 = arith.constant 2.000000e-01 : f32
      %289 = vector.broadcast %cst_149 : f32 to vector<1x8xf32>
      %290 = arith.mulf %288, %289 : vector<1x8xf32>
      %291 = arith.mulf %285, %285 : vector<8x1xf32>
      %292 = arith.mulf %290, %290 : vector<1x8xf32>
      %293 = vector.broadcast %291 : vector<8x1xf32> to vector<8x8xf32>
      %294 = vector.broadcast %292 : vector<1x8xf32> to vector<8x8xf32>
      %295 = arith.addf %293, %294 : vector<8x8xf32>
      %296 = arith.minimumf %271, %295 : vector<8x8xf32>
      %297 = math.sqrt %296 : vector<8x8xf32>
      %cst_150 = arith.constant 2.000000e+00 : f32
      %298 = vector.broadcast %cst_150 : f32 to vector<8x8xf32>
      %299 = arith.mulf %298, %297 : vector<8x8xf32>
      %300 = math.tanh %299 : vector<8x8xf32>
      %301 = vector.shape_cast %195 : vector<8x8xf32> to vector<8x1x8xf32>
      %302 = vector.broadcast %301 : vector<8x1x8xf32> to vector<8x16x8xf32>
      %303 = vector.broadcast %16 : vector<1x16x1xf32> to vector<8x16x8xf32>
      %304 = arith.mulf %302, %303 : vector<8x16x8xf32>
      %305 = vector.shape_cast %300 : vector<8x8xf32> to vector<8x1x8xf32>
      %306 = vector.broadcast %305 : vector<8x1x8xf32> to vector<8x16x8xf32>
      %307 = vector.broadcast %19 : vector<1x16x1xf32> to vector<8x16x8xf32>
      %308 = arith.mulf %306, %307 : vector<8x16x8xf32>
      %309 = arith.addf %304, %308 : vector<8x16x8xf32>
      %310 = vector.shape_cast %87 : vector<8x8xf32> to vector<8x1x8xf32>
      %311 = vector.broadcast %310 : vector<8x1x8xf32> to vector<8x16x8xf32>
      %312 = vector.broadcast %22 : vector<1x16x1xf32> to vector<8x16x8xf32>
      %313 = arith.mulf %311, %312 : vector<8x16x8xf32>
      %314 = arith.addf %309, %313 : vector<8x16x8xf32>
      %315 = vector.broadcast %24 : vector<1x16x1xf32> to vector<8x16x8xf32>
      %316 = arith.addf %314, %315 : vector<8x16x8xf32>
      %cst_151 = arith.constant 0.000000e+00 : f32
      %317 = vector.broadcast %cst_151 : f32 to vector<8x16x8xf32>
      %318 = arith.maximumf %316, %317 : vector<8x16x8xf32>
      %319 = arith.truncf %318 : vector<8x16x8xf32> to vector<8x16x8xbf16>
      %cst_152 = arith.constant 1.000000e+06 : f32
      %320 = vector.broadcast %cst_152 : f32 to vector<8x9xf32>
      %c8_i32_153 = arith.constant 8 : i32
      %321 = arith.muli %arg0, %c8_i32_153 : i32
      %c0_i32_154 = arith.constant 0 : i32
      %322 = arith.addi %321, %c0_i32_154 : i32
      %c0_i32_155 = arith.constant 0 : i32
      %323 = arith.addi %322, %c0_i32_155 : i32
      %c2_i32_156 = arith.constant 2 : i32
      %324 = arith.muli %323, %c2_i32_156 : i32
      %325 = arith.index_cast %324 : i32 to index
      %326 = memref.load %arg2[%325] : memref<32xf32, #tpu.memory_space<smem>>
      %c1_i32_157 = arith.constant 1 : i32
      %327 = arith.addi %324, %c1_i32_157 : i32
      %328 = arith.index_cast %327 : i32 to index
      %329 = memref.load %arg2[%328] : memref<32xf32, #tpu.memory_space<smem>>
      %cst_158 = arith.constant 1.000000e+00 : f32
      %330 = arith.mulf %326, %cst_158 : f32
      %331 = vector.broadcast %330 : f32 to vector<8x1xf32>
      %332 = arith.subf %84, %331 : vector<8x1xf32>
      %cst_159 = arith.constant 2.000000e-01 : f32
      %333 = vector.broadcast %cst_159 : f32 to vector<8x1xf32>
      %334 = arith.mulf %332, %333 : vector<8x1xf32>
      %cst_160 = arith.constant 1.000000e+00 : f32
      %335 = arith.mulf %329, %cst_160 : f32
      %336 = vector.broadcast %335 : f32 to vector<1x9xf32>
      %337 = arith.subf %12, %336 : vector<1x9xf32>
      %cst_161 = arith.constant 2.000000e-01 : f32
      %338 = vector.broadcast %cst_161 : f32 to vector<1x9xf32>
      %339 = arith.mulf %337, %338 : vector<1x9xf32>
      %340 = arith.mulf %334, %334 : vector<8x1xf32>
      %341 = arith.mulf %339, %339 : vector<1x9xf32>
      %342 = vector.broadcast %340 : vector<8x1xf32> to vector<8x9xf32>
      %343 = vector.broadcast %341 : vector<1x9xf32> to vector<8x9xf32>
      %344 = arith.addf %342, %343 : vector<8x9xf32>
      %345 = arith.minimumf %320, %344 : vector<8x9xf32>
      %c8_i32_162 = arith.constant 8 : i32
      %346 = arith.muli %arg0, %c8_i32_162 : i32
      %c0_i32_163 = arith.constant 0 : i32
      %347 = arith.addi %346, %c0_i32_163 : i32
      %c1_i32_164 = arith.constant 1 : i32
      %348 = arith.addi %347, %c1_i32_164 : i32
      %c2_i32_165 = arith.constant 2 : i32
      %349 = arith.muli %348, %c2_i32_165 : i32
      %350 = arith.index_cast %349 : i32 to index
      %351 = memref.load %arg2[%350] : memref<32xf32, #tpu.memory_space<smem>>
      %c1_i32_166 = arith.constant 1 : i32
      %352 = arith.addi %349, %c1_i32_166 : i32
      %353 = arith.index_cast %352 : i32 to index
      %354 = memref.load %arg2[%353] : memref<32xf32, #tpu.memory_space<smem>>
      %cst_167 = arith.constant 1.000000e+00 : f32
      %355 = arith.mulf %351, %cst_167 : f32
      %356 = vector.broadcast %355 : f32 to vector<8x1xf32>
      %357 = arith.subf %84, %356 : vector<8x1xf32>
      %cst_168 = arith.constant 2.000000e-01 : f32
      %358 = vector.broadcast %cst_168 : f32 to vector<8x1xf32>
      %359 = arith.mulf %357, %358 : vector<8x1xf32>
      %cst_169 = arith.constant 1.000000e+00 : f32
      %360 = arith.mulf %354, %cst_169 : f32
      %361 = vector.broadcast %360 : f32 to vector<1x9xf32>
      %362 = arith.subf %12, %361 : vector<1x9xf32>
      %cst_170 = arith.constant 2.000000e-01 : f32
      %363 = vector.broadcast %cst_170 : f32 to vector<1x9xf32>
      %364 = arith.mulf %362, %363 : vector<1x9xf32>
      %365 = arith.mulf %359, %359 : vector<8x1xf32>
      %366 = arith.mulf %364, %364 : vector<1x9xf32>
      %367 = vector.broadcast %365 : vector<8x1xf32> to vector<8x9xf32>
      %368 = vector.broadcast %366 : vector<1x9xf32> to vector<8x9xf32>
      %369 = arith.addf %367, %368 : vector<8x9xf32>
      %370 = arith.minimumf %345, %369 : vector<8x9xf32>
      %c8_i32_171 = arith.constant 8 : i32
      %371 = arith.muli %arg0, %c8_i32_171 : i32
      %c0_i32_172 = arith.constant 0 : i32
      %372 = arith.addi %371, %c0_i32_172 : i32
      %c2_i32_173 = arith.constant 2 : i32
      %373 = arith.addi %372, %c2_i32_173 : i32
      %c2_i32_174 = arith.constant 2 : i32
      %374 = arith.muli %373, %c2_i32_174 : i32
      %375 = arith.index_cast %374 : i32 to index
      %376 = memref.load %arg2[%375] : memref<32xf32, #tpu.memory_space<smem>>
      %c1_i32_175 = arith.constant 1 : i32
      %377 = arith.addi %374, %c1_i32_175 : i32
      %378 = arith.index_cast %377 : i32 to index
      %379 = memref.load %arg2[%378] : memref<32xf32, #tpu.memory_space<smem>>
      %cst_176 = arith.constant 1.000000e+00 : f32
      %380 = arith.mulf %376, %cst_176 : f32
      %381 = vector.broadcast %380 : f32 to vector<8x1xf32>
      %382 = arith.subf %84, %381 : vector<8x1xf32>
      %cst_177 = arith.constant 2.000000e-01 : f32
      %383 = vector.broadcast %cst_177 : f32 to vector<8x1xf32>
      %384 = arith.mulf %382, %383 : vector<8x1xf32>
      %cst_178 = arith.constant 1.000000e+00 : f32
      %385 = arith.mulf %379, %cst_178 : f32
      %386 = vector.broadcast %385 : f32 to vector<1x9xf32>
      %387 = arith.subf %12, %386 : vector<1x9xf32>
      %cst_179 = arith.constant 2.000000e-01 : f32
      %388 = vector.broadcast %cst_179 : f32 to vector<1x9xf32>
      %389 = arith.mulf %387, %388 : vector<1x9xf32>
      %390 = arith.mulf %384, %384 : vector<8x1xf32>
      %391 = arith.mulf %389, %389 : vector<1x9xf32>
      %392 = vector.broadcast %390 : vector<8x1xf32> to vector<8x9xf32>
      %393 = vector.broadcast %391 : vector<1x9xf32> to vector<8x9xf32>
      %394 = arith.addf %392, %393 : vector<8x9xf32>
      %395 = arith.minimumf %370, %394 : vector<8x9xf32>
      %c8_i32_180 = arith.constant 8 : i32
      %396 = arith.muli %arg0, %c8_i32_180 : i32
      %c0_i32_181 = arith.constant 0 : i32
      %397 = arith.addi %396, %c0_i32_181 : i32
      %c3_i32_182 = arith.constant 3 : i32
      %398 = arith.addi %397, %c3_i32_182 : i32
      %c2_i32_183 = arith.constant 2 : i32
      %399 = arith.muli %398, %c2_i32_183 : i32
      %400 = arith.index_cast %399 : i32 to index
      %401 = memref.load %arg2[%400] : memref<32xf32, #tpu.memory_space<smem>>
      %c1_i32_184 = arith.constant 1 : i32
      %402 = arith.addi %399, %c1_i32_184 : i32
      %403 = arith.index_cast %402 : i32 to index
      %404 = memref.load %arg2[%403] : memref<32xf32, #tpu.memory_space<smem>>
      %cst_185 = arith.constant 1.000000e+00 : f32
      %405 = arith.mulf %401, %cst_185 : f32
      %406 = vector.broadcast %405 : f32 to vector<8x1xf32>
      %407 = arith.subf %84, %406 : vector<8x1xf32>
      %cst_186 = arith.constant 2.000000e-01 : f32
      %408 = vector.broadcast %cst_186 : f32 to vector<8x1xf32>
      %409 = arith.mulf %407, %408 : vector<8x1xf32>
      %cst_187 = arith.constant 1.000000e+00 : f32
      %410 = arith.mulf %404, %cst_187 : f32
      %411 = vector.broadcast %410 : f32 to vector<1x9xf32>
      %412 = arith.subf %12, %411 : vector<1x9xf32>
      %cst_188 = arith.constant 2.000000e-01 : f32
      %413 = vector.broadcast %cst_188 : f32 to vector<1x9xf32>
      %414 = arith.mulf %412, %413 : vector<1x9xf32>
      %415 = arith.mulf %409, %409 : vector<8x1xf32>
      %416 = arith.mulf %414, %414 : vector<1x9xf32>
      %417 = vector.broadcast %415 : vector<8x1xf32> to vector<8x9xf32>
      %418 = vector.broadcast %416 : vector<1x9xf32> to vector<8x9xf32>
      %419 = arith.addf %417, %418 : vector<8x9xf32>
      %420 = arith.minimumf %395, %419 : vector<8x9xf32>
      %421 = math.sqrt %420 : vector<8x9xf32>
      %cst_189 = arith.constant 2.000000e+00 : f32
      %422 = vector.broadcast %cst_189 : f32 to vector<8x9xf32>
      %423 = arith.mulf %422, %421 : vector<8x9xf32>
      %424 = math.tanh %423 : vector<8x9xf32>
      %cst_190 = arith.constant 1.000000e+06 : f32
      %425 = vector.broadcast %cst_190 : f32 to vector<8x9xf32>
      %c8_i32_191 = arith.constant 8 : i32
      %426 = arith.muli %arg0, %c8_i32_191 : i32
      %c4_i32_192 = arith.constant 4 : i32
      %427 = arith.addi %426, %c4_i32_192 : i32
      %c0_i32_193 = arith.constant 0 : i32
      %428 = arith.addi %427, %c0_i32_193 : i32
      %c2_i32_194 = arith.constant 2 : i32
      %429 = arith.muli %428, %c2_i32_194 : i32
      %430 = arith.index_cast %429 : i32 to index
      %431 = memref.load %arg2[%430] : memref<32xf32, #tpu.memory_space<smem>>
      %c1_i32_195 = arith.constant 1 : i32
      %432 = arith.addi %429, %c1_i32_195 : i32
      %433 = arith.index_cast %432 : i32 to index
      %434 = memref.load %arg2[%433] : memref<32xf32, #tpu.memory_space<smem>>
      %cst_196 = arith.constant 1.000000e+00 : f32
      %435 = arith.mulf %431, %cst_196 : f32
      %436 = vector.broadcast %435 : f32 to vector<8x1xf32>
      %437 = arith.subf %84, %436 : vector<8x1xf32>
      %cst_197 = arith.constant 2.000000e-01 : f32
      %438 = vector.broadcast %cst_197 : f32 to vector<8x1xf32>
      %439 = arith.mulf %437, %438 : vector<8x1xf32>
      %cst_198 = arith.constant 1.000000e+00 : f32
      %440 = arith.mulf %434, %cst_198 : f32
      %441 = vector.broadcast %440 : f32 to vector<1x9xf32>
      %442 = arith.subf %12, %441 : vector<1x9xf32>
      %cst_199 = arith.constant 2.000000e-01 : f32
      %443 = vector.broadcast %cst_199 : f32 to vector<1x9xf32>
      %444 = arith.mulf %442, %443 : vector<1x9xf32>
      %445 = arith.mulf %439, %439 : vector<8x1xf32>
      %446 = arith.mulf %444, %444 : vector<1x9xf32>
      %447 = vector.broadcast %445 : vector<8x1xf32> to vector<8x9xf32>
      %448 = vector.broadcast %446 : vector<1x9xf32> to vector<8x9xf32>
      %449 = arith.addf %447, %448 : vector<8x9xf32>
      %450 = arith.minimumf %425, %449 : vector<8x9xf32>
      %c8_i32_200 = arith.constant 8 : i32
      %451 = arith.muli %arg0, %c8_i32_200 : i32
      %c4_i32_201 = arith.constant 4 : i32
      %452 = arith.addi %451, %c4_i32_201 : i32
      %c1_i32_202 = arith.constant 1 : i32
      %453 = arith.addi %452, %c1_i32_202 : i32
      %c2_i32_203 = arith.constant 2 : i32
      %454 = arith.muli %453, %c2_i32_203 : i32
      %455 = arith.index_cast %454 : i32 to index
      %456 = memref.load %arg2[%455] : memref<32xf32, #tpu.memory_space<smem>>
      %c1_i32_204 = arith.constant 1 : i32
      %457 = arith.addi %454, %c1_i32_204 : i32
      %458 = arith.index_cast %457 : i32 to index
      %459 = memref.load %arg2[%458] : memref<32xf32, #tpu.memory_space<smem>>
      %cst_205 = arith.constant 1.000000e+00 : f32
      %460 = arith.mulf %456, %cst_205 : f32
      %461 = vector.broadcast %460 : f32 to vector<8x1xf32>
      %462 = arith.subf %84, %461 : vector<8x1xf32>
      %cst_206 = arith.constant 2.000000e-01 : f32
      %463 = vector.broadcast %cst_206 : f32 to vector<8x1xf32>
      %464 = arith.mulf %462, %463 : vector<8x1xf32>
      %cst_207 = arith.constant 1.000000e+00 : f32
      %465 = arith.mulf %459, %cst_207 : f32
      %466 = vector.broadcast %465 : f32 to vector<1x9xf32>
      %467 = arith.subf %12, %466 : vector<1x9xf32>
      %cst_208 = arith.constant 2.000000e-01 : f32
      %468 = vector.broadcast %cst_208 : f32 to vector<1x9xf32>
      %469 = arith.mulf %467, %468 : vector<1x9xf32>
      %470 = arith.mulf %464, %464 : vector<8x1xf32>
      %471 = arith.mulf %469, %469 : vector<1x9xf32>
      %472 = vector.broadcast %470 : vector<8x1xf32> to vector<8x9xf32>
      %473 = vector.broadcast %471 : vector<1x9xf32> to vector<8x9xf32>
      %474 = arith.addf %472, %473 : vector<8x9xf32>
      %475 = arith.minimumf %450, %474 : vector<8x9xf32>
      %c8_i32_209 = arith.constant 8 : i32
      %476 = arith.muli %arg0, %c8_i32_209 : i32
      %c4_i32_210 = arith.constant 4 : i32
      %477 = arith.addi %476, %c4_i32_210 : i32
      %c2_i32_211 = arith.constant 2 : i32
      %478 = arith.addi %477, %c2_i32_211 : i32
      %c2_i32_212 = arith.constant 2 : i32
      %479 = arith.muli %478, %c2_i32_212 : i32
      %480 = arith.index_cast %479 : i32 to index
      %481 = memref.load %arg2[%480] : memref<32xf32, #tpu.memory_space<smem>>
      %c1_i32_213 = arith.constant 1 : i32
      %482 = arith.addi %479, %c1_i32_213 : i32
      %483 = arith.index_cast %482 : i32 to index
      %484 = memref.load %arg2[%483] : memref<32xf32, #tpu.memory_space<smem>>
      %cst_214 = arith.constant 1.000000e+00 : f32
      %485 = arith.mulf %481, %cst_214 : f32
      %486 = vector.broadcast %485 : f32 to vector<8x1xf32>
      %487 = arith.subf %84, %486 : vector<8x1xf32>
      %cst_215 = arith.constant 2.000000e-01 : f32
      %488 = vector.broadcast %cst_215 : f32 to vector<8x1xf32>
      %489 = arith.mulf %487, %488 : vector<8x1xf32>
      %cst_216 = arith.constant 1.000000e+00 : f32
      %490 = arith.mulf %484, %cst_216 : f32
      %491 = vector.broadcast %490 : f32 to vector<1x9xf32>
      %492 = arith.subf %12, %491 : vector<1x9xf32>
      %cst_217 = arith.constant 2.000000e-01 : f32
      %493 = vector.broadcast %cst_217 : f32 to vector<1x9xf32>
      %494 = arith.mulf %492, %493 : vector<1x9xf32>
      %495 = arith.mulf %489, %489 : vector<8x1xf32>
      %496 = arith.mulf %494, %494 : vector<1x9xf32>
      %497 = vector.broadcast %495 : vector<8x1xf32> to vector<8x9xf32>
      %498 = vector.broadcast %496 : vector<1x9xf32> to vector<8x9xf32>
      %499 = arith.addf %497, %498 : vector<8x9xf32>
      %500 = arith.minimumf %475, %499 : vector<8x9xf32>
      %c8_i32_218 = arith.constant 8 : i32
      %501 = arith.muli %arg0, %c8_i32_218 : i32
      %c4_i32_219 = arith.constant 4 : i32
      %502 = arith.addi %501, %c4_i32_219 : i32
      %c3_i32_220 = arith.constant 3 : i32
      %503 = arith.addi %502, %c3_i32_220 : i32
      %c2_i32_221 = arith.constant 2 : i32
      %504 = arith.muli %503, %c2_i32_221 : i32
      %505 = arith.index_cast %504 : i32 to index
      %506 = memref.load %arg2[%505] : memref<32xf32, #tpu.memory_space<smem>>
      %c1_i32_222 = arith.constant 1 : i32
      %507 = arith.addi %504, %c1_i32_222 : i32
      %508 = arith.index_cast %507 : i32 to index
      %509 = memref.load %arg2[%508] : memref<32xf32, #tpu.memory_space<smem>>
      %cst_223 = arith.constant 1.000000e+00 : f32
      %510 = arith.mulf %506, %cst_223 : f32
      %511 = vector.broadcast %510 : f32 to vector<8x1xf32>
      %512 = arith.subf %84, %511 : vector<8x1xf32>
      %cst_224 = arith.constant 2.000000e-01 : f32
      %513 = vector.broadcast %cst_224 : f32 to vector<8x1xf32>
      %514 = arith.mulf %512, %513 : vector<8x1xf32>
      %cst_225 = arith.constant 1.000000e+00 : f32
      %515 = arith.mulf %509, %cst_225 : f32
      %516 = vector.broadcast %515 : f32 to vector<1x9xf32>
      %517 = arith.subf %12, %516 : vector<1x9xf32>
      %cst_226 = arith.constant 2.000000e-01 : f32
      %518 = vector.broadcast %cst_226 : f32 to vector<1x9xf32>
      %519 = arith.mulf %517, %518 : vector<1x9xf32>
      %520 = arith.mulf %514, %514 : vector<8x1xf32>
      %521 = arith.mulf %519, %519 : vector<1x9xf32>
      %522 = vector.broadcast %520 : vector<8x1xf32> to vector<8x9xf32>
      %523 = vector.broadcast %521 : vector<1x9xf32> to vector<8x9xf32>
      %524 = arith.addf %522, %523 : vector<8x9xf32>
      %525 = arith.minimumf %500, %524 : vector<8x9xf32>
      %526 = math.sqrt %525 : vector<8x9xf32>
      %cst_227 = arith.constant 2.000000e+00 : f32
      %527 = vector.broadcast %cst_227 : f32 to vector<8x9xf32>
      %528 = arith.mulf %527, %526 : vector<8x9xf32>
      %529 = math.tanh %528 : vector<8x9xf32>
      %530 = vector.shape_cast %424 : vector<8x9xf32> to vector<8x1x9xf32>
      %531 = vector.broadcast %530 : vector<8x1x9xf32> to vector<8x16x9xf32>
      %532 = vector.broadcast %16 : vector<1x16x1xf32> to vector<8x16x9xf32>
      %533 = arith.mulf %531, %532 : vector<8x16x9xf32>
      %534 = vector.shape_cast %529 : vector<8x9xf32> to vector<8x1x9xf32>
      %535 = vector.broadcast %534 : vector<8x1x9xf32> to vector<8x16x9xf32>
      %536 = vector.broadcast %19 : vector<1x16x1xf32> to vector<8x16x9xf32>
      %537 = arith.mulf %535, %536 : vector<8x16x9xf32>
      %538 = arith.addf %533, %537 : vector<8x16x9xf32>
      %539 = vector.shape_cast %90 : vector<8x9xf32> to vector<8x1x9xf32>
      %540 = vector.broadcast %539 : vector<8x1x9xf32> to vector<8x16x9xf32>
      %541 = vector.broadcast %22 : vector<1x16x1xf32> to vector<8x16x9xf32>
      %542 = arith.mulf %540, %541 : vector<8x16x9xf32>
      %543 = arith.addf %538, %542 : vector<8x16x9xf32>
      %544 = vector.broadcast %24 : vector<1x16x1xf32> to vector<8x16x9xf32>
      %545 = arith.addf %543, %544 : vector<8x16x9xf32>
      %cst_228 = arith.constant 0.000000e+00 : f32
      %546 = vector.broadcast %cst_228 : f32 to vector<8x16x9xf32>
      %547 = arith.maximumf %545, %546 : vector<8x16x9xf32>
      %548 = arith.truncf %547 : vector<8x16x9xf32> to vector<8x16x9xbf16>
      %549 = vector.extract_strided_slice %548 {offsets = [0, 0, 0], sizes = [8, 16, 8], strides = [1, 1, 1]} : vector<8x16x9xbf16> to vector<8x16x8xbf16>
      %550 = arith.index_cast %80 : i32 to index
      %c0_229 = arith.constant 0 : index
      %c0_230 = arith.constant 0 : index
      %551 = vector.load %arg10[%550, %c0_229, %c0_230] : memref<24x48x8xbf16, #tpu.memory_space<vmem>>, vector<8x16x8xbf16>
      tpu.vector_store %arg10[%550, %c0_229, %c0_230], %549 {strides = array<i32>} : memref<24x48x8xbf16, #tpu.memory_space<vmem>>, vector<8x16x8xbf16>,
      %552 = arith.index_cast %80 : i32 to index
      %c16_231 = arith.constant 16 : index
      %c0_232 = arith.constant 0 : index
      %553 = vector.load %arg10[%552, %c16_231, %c0_232] : memref<24x48x8xbf16, #tpu.memory_space<vmem>>, vector<8x16x8xbf16>
      tpu.vector_store %arg10[%552, %c16_231, %c0_232], %319 {strides = array<i32>} : memref<24x48x8xbf16, #tpu.memory_space<vmem>>, vector<8x16x8xbf16>,
      %554 = vector.extract_strided_slice %548 {offsets = [0, 0, 1], sizes = [8, 16, 8], strides = [1, 1, 1]} : vector<8x16x9xbf16> to vector<8x16x8xbf16>
      %555 = arith.index_cast %80 : i32 to index
      %c32_233 = arith.constant 32 : index
      %c0_234 = arith.constant 0 : index
      %556 = vector.load %arg10[%555, %c32_233, %c0_234] : memref<24x48x8xbf16, #tpu.memory_space<vmem>>, vector<8x16x8xbf16>
      tpu.vector_store %arg10[%555, %c32_233, %c0_234], %554 {strides = array<i32>} : memref<24x48x8xbf16, #tpu.memory_space<vmem>>, vector<8x16x8xbf16>,
    }
    %c3_i32_11 = arith.constant 3 : i32
    %cst_12 = arith.constant 0.000000e+00 : bf16
    %26 = vector.broadcast %cst_12 : bf16 to vector<24x16x1xbf16>
    %c0_13 = arith.constant 0 : index
    %c0_14 = arith.constant 0 : index
    %c0_15 = arith.constant 0 : index
    %27 = vector.load %arg10[%c0_13, %c0_14, %c0_15] : memref<24x48x8xbf16, #tpu.memory_space<vmem>>, vector<24x16x1xbf16>
    tpu.vector_store %arg10[%c0_13, %c0_14, %c0_15], %26 {strides = array<i32>} : memref<24x48x8xbf16, #tpu.memory_space<vmem>>, vector<24x16x1xbf16>,
    %c0_i32_16 = arith.constant 0 : i32
    %28 = arith.cmpi eq, %arg1, %c0_i32_16 : i32
    %29 = arith.extui %28 : i1 to i32
    %c0_i32_17 = arith.constant 0 : i32
    %30 = arith.cmpi ne, %29, %c0_i32_17 : i32
    scf.if %30 {
      %cst_69 = arith.constant 0.000000e+00 : bf16
      %79 = vector.broadcast %cst_69 : bf16 to vector<48x8xbf16>
      %c0_70 = arith.constant 0 : index
      %c0_71 = arith.constant 0 : index
      %c0_72 = arith.constant 0 : index
      %80 = vector.load %arg10[%c0_70, %c0_71, %c0_72] : memref<24x48x8xbf16, #tpu.memory_space<vmem>>, vector<1x48x8xbf16>
      %81 = vector.shape_cast %80 : vector<1x48x8xbf16> to vector<48x8xbf16>
      %82 = vector.shape_cast %79 : vector<48x8xbf16> to vector<1x48x8xbf16>
      tpu.vector_store %arg10[%c0_70, %c0_71, %c0_72], %82 {strides = array<i32>} : memref<24x48x8xbf16, #tpu.memory_space<vmem>>, vector<1x48x8xbf16>,
    } else {
    }
    %c0_18 = arith.constant 0 : index
    %c0_19 = arith.constant 0 : index
    %c0_20 = arith.constant 0 : index
    %31 = vector.load %arg7[%c0_18, %c0_19, %c0_20] : memref<3x64x48xbf16, #tpu.memory_space<vmem>>, vector<1x64x48xbf16>
    %32 = vector.shape_cast %31 : vector<1x64x48xbf16> to vector<64x48xbf16>
    %c1_21 = arith.constant 1 : index
    %c0_22 = arith.constant 0 : index
    %c0_23 = arith.constant 0 : index
    %33 = vector.load %arg7[%c1_21, %c0_22, %c0_23] : memref<3x64x48xbf16, #tpu.memory_space<vmem>>, vector<1x64x48xbf16>
    %34 = vector.shape_cast %33 : vector<1x64x48xbf16> to vector<64x48xbf16>
    %c2_24 = arith.constant 2 : index
    %c0_25 = arith.constant 0 : index
    %c0_26 = arith.constant 0 : index
    %35 = vector.load %arg7[%c2_24, %c0_25, %c0_26] : memref<3x64x48xbf16, #tpu.memory_space<vmem>>, vector<1x64x48xbf16>
    %36 = vector.shape_cast %35 : vector<1x64x48xbf16> to vector<64x48xbf16>
    %c0_27 = arith.constant 0 : index
    %c0_28 = arith.constant 0 : index
    %37 = vector.load %arg8[%c0_27, %c0_28] : memref<64x1xf32, #tpu.memory_space<vmem>>, vector<64x1xf32>
    %c0_i32_29 = arith.constant 0 : i32
    %c8_i32_30 = arith.constant 8 : i32
    %38 = arith.addi %c0_i32_29, %c8_i32_30 : i32
    %c1_i32_31 = arith.constant 1 : i32
    scf.for %arg12 = %c0_i32_29 to %38 step %c1_i32_31  : i32 {
      %c2_i32_69 = arith.constant 2 : i32
      %79 = arith.muli %c2_i32_69, %arg12 : i32
      %80 = arith.index_cast %79 : i32 to index
      %c0_70 = arith.constant 0 : index
      %c0_71 = arith.constant 0 : index
      %81 = vector.load %arg10[%80, %c0_70, %c0_71] : memref<24x48x8xbf16, #tpu.memory_space<vmem>>, vector<1x48x8xbf16>
      %82 = vector.shape_cast %81 : vector<1x48x8xbf16> to vector<48x8xbf16>
      %cst_72 = arith.constant dense<0.000000e+00> : vector<64x8xf32>
      %83 = tpu.matmul %32, %82, %cst_72 {dimension_numbers = #tpu.dot_dimension_numbers<[1], [0], [0], [1], [0, 0, 1, 1], [], []>} : vector<64x48xbf16>, vector<48x8xbf16>, vector<64x8xf32> -> vector<64x8xf32>
      %c1_i32_73 = arith.constant 1 : i32
      %84 = arith.addi %79, %c1_i32_73 : i32
      %85 = arith.index_cast %84 : i32 to index
      %c0_74 = arith.constant 0 : index
      %c0_75 = arith.constant 0 : index
      %86 = vector.load %arg10[%85, %c0_74, %c0_75] : memref<24x48x8xbf16, #tpu.memory_space<vmem>>, vector<1x48x8xbf16>
      %87 = vector.shape_cast %86 : vector<1x48x8xbf16> to vector<48x8xbf16>
      %cst_76 = arith.constant dense<0.000000e+00> : vector<64x8xf32>
      %88 = tpu.matmul %34, %87, %cst_76 {dimension_numbers = #tpu.dot_dimension_numbers<[1], [0], [0], [1], [0, 0, 1, 1], [], []>} : vector<64x48xbf16>, vector<48x8xbf16>, vector<64x8xf32> -> vector<64x8xf32>
      %89 = arith.addf %83, %88 : vector<64x8xf32>
      %c2_i32_77 = arith.constant 2 : i32
      %90 = arith.addi %79, %c2_i32_77 : i32
      %91 = arith.index_cast %90 : i32 to index
      %c0_78 = arith.constant 0 : index
      %c0_79 = arith.constant 0 : index
      %92 = vector.load %arg10[%91, %c0_78, %c0_79] : memref<24x48x8xbf16, #tpu.memory_space<vmem>>, vector<1x48x8xbf16>
      %93 = vector.shape_cast %92 : vector<1x48x8xbf16> to vector<48x8xbf16>
      %cst_80 = arith.constant dense<0.000000e+00> : vector<64x8xf32>
      %94 = tpu.matmul %36, %93, %cst_80 {dimension_numbers = #tpu.dot_dimension_numbers<[1], [0], [0], [1], [0, 0, 1, 1], [], []>} : vector<64x48xbf16>, vector<48x8xbf16>, vector<64x8xf32> -> vector<64x8xf32>
      %95 = arith.addf %89, %94 : vector<64x8xf32>
      %96 = vector.broadcast %37 : vector<64x1xf32> to vector<64x8xf32>
      %97 = arith.addf %95, %96 : vector<64x8xf32>
      %98 = arith.index_cast %arg12 : i32 to index
      %c0_81 = arith.constant 0 : index
      %c0_82 = arith.constant 0 : index
      %99 = vector.load %arg11[%98, %c0_81, %c0_82] : memref<8x64x8xf32, #tpu.memory_space<vmem>>, vector<1x64x8xf32>
      %100 = vector.shape_cast %99 : vector<1x64x8xf32> to vector<64x8xf32>
      %101 = vector.shape_cast %97 : vector<64x8xf32> to vector<1x64x8xf32>
      tpu.vector_store %arg11[%98, %c0_81, %c0_82], %101 {strides = array<i32>} : memref<8x64x8xf32, #tpu.memory_space<vmem>>, vector<1x64x8xf32>,
    }
    %c8_i32_32 = arith.constant 8 : i32
    %c0_33 = arith.constant 0 : index
    %c0_34 = arith.constant 0 : index
    %c0_35 = arith.constant 0 : index
    %39 = vector.load %arg11[%c0_33, %c0_34, %c0_35] : memref<8x64x8xf32, #tpu.memory_space<vmem>>, vector<1x64x8xf32>
    %40 = vector.shape_cast %39 : vector<1x64x8xf32> to vector<64x8xf32>
    %c0_36 = arith.constant 0 : index
    %c0_37 = arith.constant 0 : index
    %c0_38 = arith.constant 0 : index
    %41 = vector.load %arg9[%c0_36, %c0_37, %c0_38] : memref<1x64x64xf32, #tpu.memory_space<vmem>>, vector<1x64x8xf32>
    %42 = vector.shape_cast %41 : vector<1x64x8xf32> to vector<64x8xf32>
    %43 = vector.shape_cast %40 : vector<64x8xf32> to vector<1x64x8xf32>
    tpu.vector_store %arg9[%c0_36, %c0_37, %c0_38], %43 {strides = array<i32>} : memref<1x64x64xf32, #tpu.memory_space<vmem>>, vector<1x64x8xf32>,
    %c1_39 = arith.constant 1 : index
    %c0_40 = arith.constant 0 : index
    %c0_41 = arith.constant 0 : index
    %44 = vector.load %arg11[%c1_39, %c0_40, %c0_41] : memref<8x64x8xf32, #tpu.memory_space<vmem>>, vector<1x64x8xf32>
    %45 = vector.shape_cast %44 : vector<1x64x8xf32> to vector<64x8xf32>
    %c0_42 = arith.constant 0 : index
    %c0_43 = arith.constant 0 : index
    %c8 = arith.constant 8 : index
    %46 = vector.load %arg9[%c0_42, %c0_43, %c8] : memref<1x64x64xf32, #tpu.memory_space<vmem>>, vector<1x64x8xf32>
    %47 = vector.shape_cast %46 : vector<1x64x8xf32> to vector<64x8xf32>
    %48 = vector.shape_cast %45 : vector<64x8xf32> to vector<1x64x8xf32>
    tpu.vector_store %arg9[%c0_42, %c0_43, %c8], %48 {strides = array<i32>} : memref<1x64x64xf32, #tpu.memory_space<vmem>>, vector<1x64x8xf32>,
    %c2_44 = arith.constant 2 : index
    %c0_45 = arith.constant 0 : index
    %c0_46 = arith.constant 0 : index
    %49 = vector.load %arg11[%c2_44, %c0_45, %c0_46] : memref<8x64x8xf32, #tpu.memory_space<vmem>>, vector<1x64x8xf32>
    %50 = vector.shape_cast %49 : vector<1x64x8xf32> to vector<64x8xf32>
    %c0_47 = arith.constant 0 : index
    %c0_48 = arith.constant 0 : index
    %c16 = arith.constant 16 : index
    %51 = vector.load %arg9[%c0_47, %c0_48, %c16] : memref<1x64x64xf32, #tpu.memory_space<vmem>>, vector<1x64x8xf32>
    %52 = vector.shape_cast %51 : vector<1x64x8xf32> to vector<64x8xf32>
    %53 = vector.shape_cast %50 : vector<64x8xf32> to vector<1x64x8xf32>
    tpu.vector_store %arg9[%c0_47, %c0_48, %c16], %53 {strides = array<i32>} : memref<1x64x64xf32, #tpu.memory_space<vmem>>, vector<1x64x8xf32>,
    %c3 = arith.constant 3 : index
    %c0_49 = arith.constant 0 : index
    %c0_50 = arith.constant 0 : index
    %54 = vector.load %arg11[%c3, %c0_49, %c0_50] : memref<8x64x8xf32, #tpu.memory_space<vmem>>, vector<1x64x8xf32>
    %55 = vector.shape_cast %54 : vector<1x64x8xf32> to vector<64x8xf32>
    %c0_51 = arith.constant 0 : index
    %c0_52 = arith.constant 0 : index
    %c24 = arith.constant 24 : index
    %56 = vector.load %arg9[%c0_51, %c0_52, %c24] : memref<1x64x64xf32, #tpu.memory_space<vmem>>, vector<1x64x8xf32>
    %57 = vector.shape_cast %56 : vector<1x64x8xf32> to vector<64x8xf32>
    %58 = vector.shape_cast %55 : vector<64x8xf32> to vector<1x64x8xf32>
    tpu.vector_store %arg9[%c0_51, %c0_52, %c24], %58 {strides = array<i32>} : memref<1x64x64xf32, #tpu.memory_space<vmem>>, vector<1x64x8xf32>,
    %c4 = arith.constant 4 : index
    %c0_53 = arith.constant 0 : index
    %c0_54 = arith.constant 0 : index
    %59 = vector.load %arg11[%c4, %c0_53, %c0_54] : memref<8x64x8xf32, #tpu.memory_space<vmem>>, vector<1x64x8xf32>
    %60 = vector.shape_cast %59 : vector<1x64x8xf32> to vector<64x8xf32>
    %c0_55 = arith.constant 0 : index
    %c0_56 = arith.constant 0 : index
    %c32 = arith.constant 32 : index
    %61 = vector.load %arg9[%c0_55, %c0_56, %c32] : memref<1x64x64xf32, #tpu.memory_space<vmem>>, vector<1x64x8xf32>
    %62 = vector.shape_cast %61 : vector<1x64x8xf32> to vector<64x8xf32>
    %63 = vector.shape_cast %60 : vector<64x8xf32> to vector<1x64x8xf32>
    tpu.vector_store %arg9[%c0_55, %c0_56, %c32], %63 {strides = array<i32>} : memref<1x64x64xf32, #tpu.memory_space<vmem>>, vector<1x64x8xf32>,
    %c5 = arith.constant 5 : index
    %c0_57 = arith.constant 0 : index
    %c0_58 = arith.constant 0 : index
    %64 = vector.load %arg11[%c5, %c0_57, %c0_58] : memref<8x64x8xf32, #tpu.memory_space<vmem>>, vector<1x64x8xf32>
    %65 = vector.shape_cast %64 : vector<1x64x8xf32> to vector<64x8xf32>
    %c0_59 = arith.constant 0 : index
    %c0_60 = arith.constant 0 : index
    %c40 = arith.constant 40 : index
    %66 = vector.load %arg9[%c0_59, %c0_60, %c40] : memref<1x64x64xf32, #tpu.memory_space<vmem>>, vector<1x64x8xf32>
    %67 = vector.shape_cast %66 : vector<1x64x8xf32> to vector<64x8xf32>
    %68 = vector.shape_cast %65 : vector<64x8xf32> to vector<1x64x8xf32>
    tpu.vector_store %arg9[%c0_59, %c0_60, %c40], %68 {strides = array<i32>} : memref<1x64x64xf32, #tpu.memory_space<vmem>>, vector<1x64x8xf32>,
    %c6 = arith.constant 6 : index
    %c0_61 = arith.constant 0 : index
    %c0_62 = arith.constant 0 : index
    %69 = vector.load %arg11[%c6, %c0_61, %c0_62] : memref<8x64x8xf32, #tpu.memory_space<vmem>>, vector<1x64x8xf32>
    %70 = vector.shape_cast %69 : vector<1x64x8xf32> to vector<64x8xf32>
    %c0_63 = arith.constant 0 : index
    %c0_64 = arith.constant 0 : index
    %c48 = arith.constant 48 : index
    %71 = vector.load %arg9[%c0_63, %c0_64, %c48] : memref<1x64x64xf32, #tpu.memory_space<vmem>>, vector<1x64x8xf32>
    %72 = vector.shape_cast %71 : vector<1x64x8xf32> to vector<64x8xf32>
    %73 = vector.shape_cast %70 : vector<64x8xf32> to vector<1x64x8xf32>
    tpu.vector_store %arg9[%c0_63, %c0_64, %c48], %73 {strides = array<i32>} : memref<1x64x64xf32, #tpu.memory_space<vmem>>, vector<1x64x8xf32>,
    %c7 = arith.constant 7 : index
    %c0_65 = arith.constant 0 : index
    %c0_66 = arith.constant 0 : index
    %74 = vector.load %arg11[%c7, %c0_65, %c0_66] : memref<8x64x8xf32, #tpu.memory_space<vmem>>, vector<1x64x8xf32>
    %75 = vector.shape_cast %74 : vector<1x64x8xf32> to vector<64x8xf32>
    %c0_67 = arith.constant 0 : index
    %c0_68 = arith.constant 0 : index
    %c56 = arith.constant 56 : index
    %76 = vector.load %arg9[%c0_67, %c0_68, %c56] : memref<1x64x64xf32, #tpu.memory_space<vmem>>, vector<1x64x8xf32>
    %77 = vector.shape_cast %76 : vector<1x64x8xf32> to vector<64x8xf32>
    %78 = vector.shape_cast %75 : vector<64x8xf32> to vector<1x64x8xf32>
    tpu.vector_store %arg9[%c0_67, %c0_68, %c56], %78 {strides = array<i32>} : memref<1x64x64xf32, #tpu.memory_space<vmem>>, vector<1x64x8xf32>,
    return
  }
  func.func @transform_0(%arg0: i32, %arg1: i32) -> i32 {
    %c0_i32 = arith.constant 0 : i32
    %c0_i32_0 = arith.constant 0 : i32
    return %c0_i32 : i32
  }
  func.func @transform_1(%arg0: i32, %arg1: i32) -> (i32, i32, i32, i32) {
    %c0_i32 = arith.constant 0 : i32
    %c0_i32_0 = arith.constant 0 : i32
    %c0_i32_1 = arith.constant 0 : i32
    return %arg0, %arg1, %c0_i32, %c0_i32_0 : i32, i32, i32, i32
  }
  func.func @transform_2(%arg0: i32, %arg1: i32) -> (i32, i32, i32, i32) {
    %c0_i32 = arith.constant 0 : i32
    %c0_i32_0 = arith.constant 0 : i32
    %c0_i32_1 = arith.constant 0 : i32
    return %arg0, %arg1, %c0_i32, %c0_i32_0 : i32, i32, i32, i32
  }
  func.func @transform_3(%arg0: i32, %arg1: i32) -> (i32, i32, i32) {
    %c0_i32 = arith.constant 0 : i32
    %c0_i32_0 = arith.constant 0 : i32
    %c0_i32_1 = arith.constant 0 : i32
    %c0_i32_2 = arith.constant 0 : i32
    return %c0_i32, %c0_i32_0, %c0_i32_1 : i32, i32, i32
  }
  func.func @transform_4(%arg0: i32, %arg1: i32) -> (i32, i32) {
    %c0_i32 = arith.constant 0 : i32
    %c0_i32_0 = arith.constant 0 : i32
    %c0_i32_1 = arith.constant 0 : i32
    return %c0_i32, %c0_i32_0 : i32, i32
  }
  func.func @transform_5(%arg0: i32, %arg1: i32) -> (i32, i32, i32) {
    %c0_i32 = arith.constant 0 : i32
    %c0_i32_0 = arith.constant 0 : i32
    %c0_i32_1 = arith.constant 0 : i32
    %c0_i32_2 = arith.constant 0 : i32
    return %c0_i32, %c0_i32_0, %c0_i32_1 : i32, i32, i32
  }
  func.func @transform_6(%arg0: i32, %arg1: i32) -> (i32, i32) {
    %c0_i32 = arith.constant 0 : i32
    %c0_i32_0 = arith.constant 0 : i32
    %c0_i32_1 = arith.constant 0 : i32
    return %c0_i32, %c0_i32_0 : i32, i32
  }
  func.func @transform_7(%arg0: i32, %arg1: i32) -> (i32, i32, i32) {
    %c0_i32 = arith.constant 0 : i32
    %c0_i32_0 = arith.constant 0 : i32
    return %arg0, %c0_i32, %arg1 : i32, i32, i32
  }
}

</mosaic_0001>

<bundles_post_ra>
// kernel: tpu_custom_call.1
= control target key start
LH: loop header
LB: loop body
LE: loop exit
PB: predicated region body
PF: predicated region fallthrough
CT: control target
= control target key end

     0   :  { %s4495_s0 = inlined_call_operand.vmem [shape: f32[32], index: 0, kind: input, shape index: {}]   ;;  %s4496_s1 = inlined_call_operand.vmem [shape: f32[2,1,24,8], index: 1, kind: input, shape index: {}]   ;;  %s4497_s2 = inlined_call_operand.vmem [shape: f32[2,1,24,9], index: 2, kind: input, shape index: {}]   ;;  %s4498_s3 = inlined_call_operand.vmem [shape: f32[3,16,1], index: 3, kind: input, shape index: {}]   ;;  %s4499_s4 = inlined_call_operand.vmem [shape: f32[16,1], index: 4, kind: input, shape index: {}]   ;;  %s4500_s5 = inlined_call_operand.vmem [shape: bf16[3,64,48], index: 5, kind: input, shape index: {}]   ;;  %s4501_s6 = inlined_call_operand.vmem [shape: f32[64,1], index: 6, kind: input, shape index: {}]   ;;  %s4502_s7 = inlined_call_operand.hbm [shape: f32[2,64,64], index: 7, kind: output, shape index: {}]  }
   0x1   :  { %4548 = sst [smem:[#allocation58_spill]] %s4495_s0 }
   0x2   :  { %4549 = sst [smem:[#allocation59_spill]] %s4496_s1 }
   0x3   :  { %4550 = sst [smem:[#allocation60_spill]] %s4497_s2 }
   0x4   :  { %4551 = sst [smem:[#allocation61_spill]] %s4498_s3 }
   0x5   :  { %4552 = sst [smem:[#allocation62_spill]] %s4499_s4 }
   0x6   :  { %12 = vsyncpa [#allocation6], 0 }
   0x7   :  { %13 = vsyncpa [#allocation5], 0 }
   0x8   :  { %15 = vsyncpa [#allocation5 + $0x1], 0  ;;  %s3235_s24 = smov 0   ;;  %s3237_s25 = smov 0  }
   0x9   :  { %s3239_s26 = smov 0   ;;  %s3241_s27 = smov 0  }
   0xa   :  { %s3243_s28 = smov 0   ;;  %s3245_s29 = smov 0  }
   0xb LB: > { %4553 = sst [smem:[#allocation10_spill]] %s3158_s26  ;;  %s2683_s30 = sadd.s32 4294967295, %s3170_s29   ;;  %s3170_s29 = sphi %s3245_s29, %s21_s29   ;;  %s3166_s28 = sphi %s3243_s28, %s4672_s28   ;;  %s3162_s27 = sphi %s3241_s27, %s4671_s27   ;;  %s3158_s26 = sphi %s3239_s26, %s4670_s26   ;;  %s3154_s25 = sphi %s3237_s25, %s4674_s25   ;;  %s3150_s24 = sphi %s3235_s24, %s4673_s24  }
   0xc   : > { %4554 = sst [smem:[#allocation11_spill]] %s3166_s28  ;;  %s2684_s8 = sadd.s32 4294967294, %s3170_s29  }
   0xd   : > { %s33_s9 = sadd.s32 1, %s3166_s28  ;;  %s203_s10 = sadd.s32 1, %s3158_s26 }
   0xe   : > { %p35_p0 = scmp.ge.s32.totalorder %s33_s9, 2  ;;  %p213_p1 = scmp.ne.s32.totalorder %s3158_s26, %s3154_s25 }
   0xf   : > { %p214_p2 = scmp.eq.s32.totalorder %s2683_s30, 1  ;;  %p219_p3 = scmp.ne.s32.totalorder %s3154_s25, %s3150_s24 }
  0x10   : > { %s4676_s9 = smov (%p35_p0, %s33_s9), 0  ;;  %p220_p5 = scmp.eq.s32.totalorder %s2684_s8, 1 }
  0x11   : > { %4555 = sst [smem:[#allocation12_spill]] %s4676_s9  ;;  %p3275_p4 = por %p214_p2, %p213_p1 }
  0x12   : > { %s198_s12 = ssub.s32 %s3166_s28, %s4676_s9  ;;  %p2685_p6 = scmp.ge.s32.totalorder %s3170_s29, 1 }
  0x13   : > { %p201_p7 = scmp.eq.s32.totalorder %s198_s12, 0  ;;  %p3282_p8 = por %p220_p5, %p219_p3 }
  0x14   : > { %p227_p9 = scmp.lt.s32.totalorder %s3170_s29, 3  ;;  %p3294_p11 = scmp.eq.s32.totalorder %s2683_s30, 0 }
  0x15   : > { %s4557_s13 = scalar_select %p3282_p8, 1, 0 }
  0x16   : > { %s3288_s14 = scalar_select %p201_p7, %s3158_s26, %s203_s10  }
  0x17   : > { %4558 = sst [smem:[#allocation13_spill]] %s4557_s13  ;;  %p3290_p10 = pnand %p2685_p6, %p227_p9 }
  0x18   : > { %4559 = sst [smem:[#allocation14_spill]] %s3288_s14 }
  0x19   : > { %s4562_s0 = sld [smem:[#allocation58_spill]]  ;;  %p2948_p12 = pneg %p3290_p10 }
  0x1b   : > { %p2949_p13 = pnand %p3294_p11, %p2948_p12 }
  0x1d   : > { %p3069_p1 = pneg %p2949_p13 }
  0x1f   : > { %s240_s19 = sshll.u32 %s4562_s0, 4  ;;  %s241_s19 = int_to_ptr.vmem [resolvable:$true] %s240_s19 }
  0x20   : > { %s3067_s20 = scalar_lea.vmem %s241_s19, 16  ;;  %p3075_p5 = scmp.lt.s32.totalorder %s241_s19, %s241_s19 }
  0x21   : > { %p3068_p0 = scmp.ne.s32.totalorder %s241_s19, %s3067_s20  ;;  %p3076_p6 = scmp.lt.s32.totalorder %s3067_s20, %s3067_s20 }
  0x23   : > { %p3070_p2 = pnand %p3069_p1, %p3068_p0  ;;  %p3077_p7 = por %p3076_p6, %p3075_p5 }
  0x25   : > { %p3071_p3 = pneg %p3070_p2 }
  0x27   : > { %p3078_p9 = pnand %p3077_p7, %p3071_p3 }
  0x29   : > { %3081 = shalt.err (!%p3078_p9)
}
  0x2a   : > { %s3180_s21 = smov [#allocation4]   ;;  %289 = sbr.rel (%p3290_p10) target bundleno = 892 (0x37c), region = 48 }
  0x2b   : > { %2951 = dma.vmem_to_smem (!%p2949_p13), %s241_s19, 16, %s3180_s21, [#allocation6]  }
  0x2f   : > { %3141 = dma.done.wait (%p3294_p11), [#allocation6], 16  }
  0x30   : > { %3143 = vsyncadd (%p3294_p11), [#allocation6], 4294967280 }
  0x31   : > { %295 = sfence }
  0x32   : > { %s4503_s22 = sand.u32 1, %s3154_s25   ;;  %p335_p12 = scmp.lt.s32.totalorder %s3162_s27, 1  ;;  %v356_v0 = vlaneseq }
  0x33   : > { %s4563_s3 = sld [smem:[#allocation61_spill]]  ;;  %s2690_s16 = sshll.u32 %s4503_s22, 6 }
  0x34   : > { %v357_v7 = vand.u32 127, %v356_v0  ;;  %v3345_v8 = vshrl.u32 %v356_v0, 7  ;;  %s4571_s4 = sld [smem:[#allocation62_spill]]  ;;  %s3373_s8 = scalar_lea.vmem [#allocation7], %s2690_s16 }
  0x35   : > { %s336_s15 = scalar_select %p335_p12, %s3162_s27, 1 }
  0x36   : > { %4570 = vst [vmem:[#allocation21_spill] sm:$0xff] %v3345_v8  ;;  %v358_v11 = vcvt.s32.f32 %v357_v7  ;;  %s4575_s1 = sld [smem:[#allocation59_spill]]  ;;  %s3375_s10 = smov 0  }
  0x37   : > { %s2941_s17 = smul.u32 24, %s336_s15  ;;  %s4576_s2 = sld [smem:[#allocation60_spill]] }
  0x38   : > { %v3358_v12 = vmul.f32 2.0, %v358_v11 }
  0x39   : > { %v3316_v1 = vld [vmem:[%s4563_s3] sm:$0xff]  ;;  %v3321_v2 = vld [vmem:[%s4563_s3 + $0x8] sm:$0xff]  ;;  %v3326_v3 = vld [vmem:[%s4563_s3 + $0x10] sm:$0xff] }
  0x3a   : > { %4564 = vst [vmem:[#allocation15_spill] sm:$0xff] %v3316_v1  ;;  %4565 = vst [vmem:[#allocation16_spill] sm:$0xff] %v3321_v2  ;;  %v3333_v4 = vld [vmem:[%s4563_s3 + $0x18] sm:$0xff]  ;;  %v3338_v5 = vld [vmem:[%s4563_s3 + $0x20] sm:$0xff]  ;;  %v3371_v13 = vadd.f32 -1.0, %v3358_v12 }
  0x3b   : > { %4566 = vst [vmem:[#allocation17_spill] sm:$0xff] %v3326_v3  ;;  %4567 = vst [vmem:[#allocation18_spill] sm:$0xff] %v3333_v4  ;;  %v3343_v6 = vld [vmem:[%s4563_s3 + $0x28] sm:$0xff]  ;;  %v3350_v9 = vld [vmem:[%s4571_s4] sm:$0xff] }
  0x3c   : > { %4568 = vst [vmem:[#allocation19_spill] sm:$0xff] %v3338_v5  ;;  %4569 = vst [vmem:[#allocation20_spill] sm:$0xff] %v3343_v6  ;;  %v3355_v10 = vld [vmem:[%s4571_s4 + $0x8] sm:$0xff]  ;;  %s3363_s20 = scalar_lea.vmem %s4575_s1, %s2941_s17 }
  0x3d   : > { %4572 = vst [vmem:[#allocation22_spill] sm:$0xff] %v3350_v9  ;;  %4573 = vst [vmem:[#allocation23_spill] sm:$0xff] %v3355_v10  ;;  %s3368_s30 = scalar_lea.vmem %s4576_s2, %s2941_s17 }
  0x3e   : > { %4574 = vst [vmem:[#allocation24_spill] sm:$0xff] %v3358_v12  ;;  %4577 = vst [vmem:[#allocation25_spill] sm:$0xff] %v3371_v13 }
  0x3f LB: >> { %v4580_v8 = vld [vmem:[#allocation21_spill] sm:$0xff]  ;;  %v3181_v14 = vmov 0   ;;  %s3381_s12 = sshll.u32 %s3162_s27, 4  ;;  %s3386_s16 = sshll.u32 %s3174_s10, 3  ;;  %vm1463_vm8 = vcmask 60416   ;;  %s3174_s10 = sphi %s3375_s10, %s378_s10  }
  0x40   : >> { %3038 = vset.pattern.permute.xlu1 %v3181_v14  ;;  %3037 = vset.pattern.permute.xlu0 %v3181_v14  ;;  %s380_s15 = sadd.s32 4294967295, %s3386_s16  ;;  %s3390_s17 = sld [smem:[#allocation4 + %s3381_s12]] }
  0x41   : >> { %v4582_v1 = vld [vmem:[#allocation15_spill] sm:$0xff]  ;;  %s390_s18 = sadd.s32 1, %s3381_s12  ;;  %v381_v15 = vstv %s380_s15  ;;  %s2817_s19 = sadd.s32 2, %s3381_s12  ;;  %v4584_v2 = vld [vmem:[#allocation16_spill] sm:$0xff] }
  0x42   : >> { %v4581_v3 = vld [vmem:[#allocation17_spill] sm:$0xff]  ;;  %618 = vperm.xlu0 %3037, %v4582_v1   ;;  %s2819_s21 = sadd.s32 4, %s3381_s12  ;;  %v4583_v4 = vld [vmem:[#allocation18_spill] sm:$0xff]  ;;  %s406_s23 = sadd.s32 1, %s2817_s19  ;;  %v382_v16 = vadd.s32 %v381_v15, %v4580_v8 }
  0x43   : >> { %734 = vperm.xlu1 %3038, %v4581_v3   ;;  %s3397_s22 = sld [smem:[#allocation4 + %s390_s18]]  ;;  %s421_s1 = sadd.s32 1, %s2819_s21  ;;  %v4585_v6 = vld [vmem:[#allocation20_spill] sm:$0xff]  ;;  %v4586_v5 = vld [vmem:[#allocation19_spill] sm:$0xff] }
  0x44   : >> { %s3400_s0 = sld [smem:[#allocation4 + %s2817_s19]]  ;;  %s2823_s3 = sadd.s32 8, %s3381_s12  ;;  %v3411_v17 = vcvt.s32.f32 %v382_v16  ;;  %v4587_v10 = vld [vmem:[#allocation23_spill] sm:$0xff]  ;;  %v4588_v9 = vld [vmem:[#allocation22_spill] sm:$0xff] }
  0x45   : >> { %v4578_v13 = vld [vmem:[#allocation25_spill] sm:$0xff]  ;;  %v4579_v12 = vld [vmem:[#allocation24_spill] sm:$0xff]  ;;  %s3402_s2 = sld [smem:[#allocation4 + %s406_s23]]  ;;  %s460_s18 = sadd.s32 1, %s2823_s3 }
  0x46   : >> { %623 = vperm.xlu0 %3037, %v4584_v2   ;;  %s3406_s15 = sld [smem:[#allocation4 + %s2819_s21]]  ;;  %s2825_s9 = sadd.s32 10, %s3381_s12  ;;  %v392_v18 = vstv %s3390_s17 }
  0x47   : >> { %739 = vperm.xlu1 %3038, %v4583_v4   ;;  %s3409_s4 = sld [smem:[#allocation4 + %s421_s1]]  ;;  %s475_s28 = sadd.s32 1, %s2825_s9  ;;  %v393_v20 = vsub.f32 %v3411_v17, %v392_v18 }
  0x48   : >> { %s459_s19 = sld [smem:[#allocation4 + %s2823_s3]]  ;;  %s2827_s1 = sadd.s32 12, %s3381_s12 }
  0x49   : >> { %s3415_s23 = sld [smem:[#allocation4 + %s460_s18]]  ;;  %v395_v19 = vstv %s3397_s22  ;;  %s490_s26 = sadd.s32 1, %s2827_s1  ;;  %v394_v26 = vmul.f32 0.2, %v393_v20 }
  0x4a   : >> { %866 = vperm.xlu0 %3037, %v4586_v5   ;;  %s474_s21 = sld [smem:[#allocation4 + %s2825_s9]]  ;;  %s2829_s17 = sadd.s32 14, %s3381_s12  ;;  %v396_v21 = vsub.f32 %v4579_v12, %v395_v19  ;;  %v408_v23 = vstv %s3400_s0  ;;  %v956_v16 = vsub.f32 %v4578_v13, %v395_v19 }
  0x4b   : >> { %871 = vperm.xlu1 %3038, %v4585_v6   ;;  %s3421_s14 = sld [smem:[#allocation4 + %s475_s28]]  ;;  %s505_s13 = sadd.s32 1, %s2829_s17  ;;  %v411_v28 = vstv %s3402_s2  ;;  %v409_v33 = vsub.f32 %v3411_v17, %v408_v23  ;;  %v398_v58 = vmul.f32 %v394_v26, %v394_v26 }
  0x4c   : >> { %s3424_s3 = sld [smem:[#allocation4 + %s2827_s1]]  ;;  %s2821_s22 = sadd.s32 6, %s3381_s12  ;;  %v397_v32 = vmul.f32 0.2, %v396_v21  ;;  %v412_v40 = vsub.f32 %v4579_v12, %v411_v28  ;;  %v423_v49 = vstv %s3406_s15  ;;  %v961_v21 = vsub.f32 %v4578_v13, %v411_v28 }
  0x4d   : >> { %s3427_s18 = sld [smem:[#allocation4 + %s490_s26]]  ;;  %s436_s26 = sadd.s32 1, %s2821_s22  ;;  %v410_v48 = vmul.f32 0.2, %v409_v33  ;;  %v426_v50 = vstv %s3409_s4  ;;  %v424_v61 = vsub.f32 %v3411_v17, %v423_v49 }
  0x4e   : >> { %908 = vperm.xlu0 %3037, %v4588_v9   ;;  %v462_v22 = vstv %s459_s19  ;;  %s3430_s9 = sld [smem:[#allocation4 + %s2829_s17]]  ;;  %v399_v59 = vmul.f32 %v397_v32, %v397_v32  ;;  %v413_v60 = vmul.f32 0.2, %v412_v40  ;;  %v427_v63 = vsub.f32 %v4579_v12, %v426_v50  ;;  %s384_s4 = scalar_lea.vmem %s3363_s20, %s3386_s16 }
  0x4f   : >> { %913 = vperm.xlu1 %3038, %v4587_v10   ;;  %v463_v24 = vsub.f32 %v3411_v17, %v462_v22  ;;  %v465_v25 = vstv %s3415_s23  ;;  %s3436_s28 = sld [smem:[#allocation4 + %s505_s13]]  ;;  %v414_v62 = vmul.f32 %v410_v48, %v410_v48  ;;  %v966_v26 = vsub.f32 %v4578_v13, %v426_v50  ;;  %s386_s13 = scalar_lea.vmem %s3368_s30, %s3386_s16 }
  0x50   : >> { %v466_v27 = vsub.f32 %v4579_v12, %v465_v25  ;;  %v477_v30 = vstv %s474_s21  ;;  %s3442_s0 = sld [smem:[#allocation4 + %s2821_s22]]  ;;  %v985_v22 = vsub.f32 %v4578_v13, %v465_v25  ;;  %v962_v33 = vmul.f32 0.2, %v961_v21  ;;  %s3183_s12 = smov 127  }
  0x51   : >> { %v464_v29 = vmul.f32 0.2, %v463_v24  ;;  %v480_v31 = vstv %s3421_s14  ;;  %v478_v35 = vsub.f32 %v3411_v17, %v477_v30  ;;  %s3452_s2 = sld [smem:[#allocation4 + %s436_s26]]  ;;  %v957_v24 = vmul.f32 0.2, %v956_v16  ;;  %s2846_s14 = smul.u32 192, %s3174_s10 }
  0x52   : >> { %v467_v34 = vmul.f32 0.2, %v466_v27  ;;  %v481_v37 = vsub.f32 %v4579_v12, %v480_v31  ;;  %v492_v38 = vstv %s3424_s3  ;;  %v990_v27 = vsub.f32 %v4578_v13, %v480_v31  ;;  %s378_s10 = sadd.s32 1, %s3174_s10  }
  0x53   : >> { %v3445_v36 = vmul.f32 %v464_v29, %v464_v29  ;;  %v495_v39 = vstv %s3427_s18  ;;  %v479_v42 = vmul.f32 0.2, %v478_v35  ;;  %v493_v43 = vsub.f32 %v3411_v17, %v492_v38  ;;  %s3782_s16 = scalar_lea.vmem [#allocation2], %s2846_s14  ;;  %p375_p10 = scmp.ge.s32.totalorder %s378_s10, 3  }
  0x54   : >> { %v469_v41 = vmul.f32 %v467_v34, %v467_v34  ;;  %v482_v44 = vmul.f32 0.2, %v481_v37  ;;  %v496_v45 = vsub.f32 %v4579_v12, %v495_v39  ;;  %v507_v46 = vstv %s3430_s9 }
  0x55   : >> { %v510_v47 = vstv %s3436_s28  ;;  %v508_v51 = vsub.f32 %v3411_v17, %v507_v46  ;;  %v483_v53 = vmul.f32 %v479_v42, %v479_v42  ;;  %v494_v55 = vmul.f32 0.2, %v493_v43 }
  0x56   : >> { %v470_v52 = vadd.f32 %v469_v41, %v3445_v36  ;;  %v484_v54 = vmul.f32 %v482_v44, %v482_v44  ;;  %v497_v56 = vmul.f32 0.2, %v496_v45  ;;  %v511_v57 = vsub.f32 %v4579_v12, %v510_v47 }
  0x57   : >> { %v438_v0 = vstv %s3442_s0  ;;  %v509_v7 = vmul.f32 0.2, %v508_v51  ;;  %v498_v15 = vmul.f32 %v494_v55, %v494_v55  ;;  %v441_v23 = vstv %s3452_s2 }
  0x58   : >> { %v471_v11 = vmin.f32 %v470_v52, 1000000.0  ;;  %v485_v14 = vadd.f32 %v484_v54, %v483_v53  ;;  %v499_v18 = vmul.f32 %v497_v56, %v497_v56  ;;  %v512_v20 = vmul.f32 0.2, %v511_v57 }
  0x59   : >> { %v425_v29 = vmul.f32 0.2, %v424_v61  ;;  %v439_v30 = vsub.f32 %v3411_v17, %v438_v0  ;;  %v513_v32 = vmul.f32 %v509_v7, %v509_v7  ;;  %v958_v34 = vmul.f32 %v957_v24, %v957_v24 }
  0x5a   : >> { %v986_v35 = vmul.f32 0.2, %v985_v22  ;;  %v991_v19 = vmul.f32 0.2, %v990_v27  ;;  %v995_v37 = vsub.f32 %v4578_v13, %v495_v39  ;;  %v486_v38 = vmin.f32 %v471_v11, %v485_v14 }
  0x5b   : >> { %v500_v28 = vadd.f32 %v499_v18, %v498_v15  ;;  %v514_v40 = vmul.f32 %v512_v20, %v512_v20  ;;  %v971_v25 = vsub.f32 %v4578_v13, %v441_v23  ;;  %v415_v41 = vmul.f32 %v413_v60, %v413_v60 }
  0x5c   : >> { %v428_v42 = vmul.f32 0.2, %v427_v63  ;;  %v963_v43 = vmul.f32 %v962_v33, %v962_v33  ;;  %v967_v44 = vmul.f32 0.2, %v966_v26  ;;  %v429_v31 = vmul.f32 %v425_v29, %v425_v29 }
  0x5d   : >> { %v440_v45 = vmul.f32 0.2, %v439_v30  ;;  %v442_v17 = vsub.f32 %v4579_v12, %v441_v23  ;;  %v959_v46 = vadd.f32 %v958_v34, %v398_v58  ;;  %v987_v48 = vmul.f32 %v986_v35, %v986_v35 }
  0x5e   : >> { %v992_v49 = vmul.f32 %v991_v19, %v991_v19  ;;  %v996_v50 = vmul.f32 0.2, %v995_v37  ;;  %v1000_v51 = vsub.f32 %v4578_v13, %v510_v47  ;;  %v501_v39 = vmin.f32 %v486_v38, %v500_v28 }
  0x5f   : >> { %v515_v52 = vadd.f32 %v514_v40, %v513_v32  ;;  %v972_v54 = vmul.f32 0.2, %v971_v25  ;;  %v400_v55 = vadd.f32 %v399_v59, %v398_v58  ;;  %v960_v56 = vmin.f32 %v959_v46, 1000000.0 }
  0x60   : >> { %v964_v57 = vadd.f32 %v963_v43, %v414_v62  ;;  %v968_v60 = vmul.f32 %v967_v44, %v967_v44  ;;  %v988_v61 = vadd.f32 %v987_v48, %v3445_v36  ;;  %v416_v63 = vadd.f32 %v415_v41, %v414_v62 }
  0x61   : >> { %v430_v0 = vmul.f32 %v428_v42, %v428_v42  ;;  %v443_v7 = vmul.f32 0.2, %v442_v17  ;;  %v401_v11 = vmin.f32 %v400_v55, 1000000.0  ;;  %v993_v16 = vadd.f32 %v992_v49, %v483_v53  ;;  %v385_v55 = vld [vmem:[%s384_s4] sm:$0xff] }
  0x62   : >> { %v989_v14 = vmin.f32 %v988_v61, 1000000.0  ;;  %v997_v18 = vmul.f32 %v996_v50, %v996_v50  ;;  %v1001_v20 = vmul.f32 0.2, %v1000_v51  ;;  %v444_v21 = vmul.f32 %v440_v45, %v440_v45 }
  0x63   : >> { %v516_v22 = vmin.f32 %v501_v39, %v515_v52  ;;  %v965_v47 = vmin.f32 %v960_v56, %v964_v57  ;;  %v969_v23 = vadd.f32 %v968_v60, %v429_v31  ;;  %v973_v24 = vmul.f32 %v972_v54, %v972_v54 }
  0x64   : >> { %v431_v26 = vadd.f32 %v430_v0, %v429_v31  ;;  %v445_v58 = vmul.f32 %v443_v7, %v443_v7  ;;  %v417_v59 = vmin.f32 %v401_v11, %v416_v63  ;;  %v994_v27 = vmin.f32 %v989_v14, %v993_v16  ;;  %v387_v16 = vld [vmem:[%s386_s13] sm:$0xff] }
  0x65   : >> { %v998_v29 = vadd.f32 %v997_v18, %v498_v15  ;;  %v1002_v30 = vmul.f32 %v1001_v20, %v1001_v20  ;;  %3040 = vrsqrt.f32 %v516_v22  ;;  %v970_v36 = vmin.f32 %v965_v47, %v969_v23 }
  0x66   : >> { %v974_v62 = vadd.f32 %v973_v24, %v444_v21  ;;  %v446_v33 = vadd.f32 %v445_v58, %v444_v21  ;;  %v432_v34 = vmin.f32 %v417_v59, %v431_v26  ;;  %vm519_vm0 = vcmp.eq.f32.partialorder %v516_v22, inf }
  0x67   : >> { %v999_v35 = vmin.f32 %v994_v27, %v998_v29  ;;  %v1003_v53 = vadd.f32 %v1002_v30, %v513_v32  ;;  %v522_v25 = vand.u32 2147483648, %v516_v22  ;;  %vm521_vm1 = vcmp.eq.f32.partialorder %v516_v22, 0.0 }
  0x68   : >> { %v975_v19 = vmin.f32 %v970_v36, %v974_v62  ;;  %v447_v37 = vmin.f32 %v432_v34, %v446_v33  ;;  %v3182_v46 = vmov 1966171168   ;;  %v775_v63 = vcombine.high %v385_v55, %v385_v55 }
  0x69   : >> { %v1004_v38 = vmin.f32 %v999_v35, %v1003_v53  ;;  %v529_v48 = vunpack.c.l.s4 %v3182_v46  ;;  %v1243_v21 = vcombine.high %v387_v16, %v387_v16  ;;  %v3495_v53 = vsub.s32 0, %v4580_v8 }
  0x6a   : >> { %3042 = vrsqrt.f32 %v975_v19  ;;  %vm978_vm2 = vcmp.eq.f32.partialorder %v975_v19, inf  ;;  %vm450_vm3 = vcmp.eq.f32.partialorder %v447_v37, inf  ;;  %v981_v49 = vand.u32 2147483648, %v975_v19 }
  0x6b   : >> { %3044 = vrsqrt.f32 %v447_v37  ;;  %vm1007_vm4 = vcmp.eq.f32.partialorder %v1004_v38, inf  ;;  %vm980_vm5 = vcmp.eq.f32.partialorder %v975_v19, 0.0  ;;  %v453_v51 = vand.u32 2147483648, %v447_v37 }
  0x6c   : >> { %3046 = vrsqrt.f32 %v1004_v38  ;;  %v1010_v39 = vand.u32 2147483648, %v1004_v38  ;;  %vm452_vm6 = vcmp.eq.f32.partialorder %v447_v37, 0.0  ;;  %vm1009_vm7 = vcmp.eq.f32.partialorder %v1004_v38, 0.0 }
  0x6d   : >> { %v530_v56 = vunpack.c.0.s8 %v529_v48  ;;  %vm1616_vm9 = vcmask (%p375_p10), 3072  }
  0x6f   : >> { %v3482_v7 = vsub.s32 %v530_v56, %v4580_v8 }
  0x71   : >> { %v782_v18 = vrot.slane %v385_v55, %v3482_v7  ;;  %v789_v20 = vrot.slane %v775_v63, %v3482_v7  ;;  %v1250_v23 = vrot.slane %v387_v16, %v3482_v7  ;;  %v1257_v58 = vrot.slane %v1243_v21, %v3482_v7 }
  0x72   : >> { %v3041_v28 = vpop.eup %3040 }
  0x73   : >> { %v518_v40 = vmul.f32 %v3041_v28, %v516_v22  ;;  %v791_v47 = vcombine.high %v789_v20, %v789_v20  ;;  %v798_v26 = vrot.slane %v782_v18, %v3482_v7  ;;  %v805_v59 = vrot.slane %v789_v20, %v3482_v7 }
  0x74   : >> { %v1258_v36 = vcombine.high %v1250_v23, %v1250_v23  ;;  %v1266_v62 = vrot.slane %v1250_v23, %v3482_v7  ;;  %v1259_v35 = vcombine.high %v1257_v58, %v1257_v58 }
  0x75   : >> { %v520_v41 = vsel %vm519_vm0, %v516_v22, %v518_v40  ;;  %v790_v22 = vcombine.high %v782_v18, %v782_v18  ;;  %v819_v30 = vrot.slane %v791_v47, %v3482_v7  ;;  %v820_v34 = vcombine.high %v798_v26, %v798_v26 }
  0x76   : >> { %v523_v44 = vsel %vm521_vm1, %v522_v25, %v520_v41  ;;  %v1280_v40 = vrot.slane %v1258_v36, %v3482_v7  ;;  %v3500_v41 = vrot.slane %v798_v26, %v3495_v53  ;;  %v3514_v48 = vrot.slane %v805_v59, %v3495_v53 }
  0x77   : >> { %v3043_v15 = vpop.eup %3042  ;;  %v524_v45 = vmul.f32 2.0, %v523_v44  ;;  %v812_v27 = vrot.slane %v790_v22, %v3482_v7  ;;  %v823_v28 = vcombine.high %v819_v30, %v819_v30 }
  0x78   : >> { %v3045_v42 = vpop.eup %3044  ;;  %v977_v31 = vmul.f32 %v3043_v15, %v975_v19  ;;  %v1288_v15 = vcombine.high %v1266_v62, %v1266_v62  ;;  %v3537_v20 = vrot.slane %v1280_v40, %v3495_v53 }
  0x79   : >> { %v3047_v43 = vpop.eup %3046  ;;  %v449_v32 = vmul.f32 %v3045_v42, %v447_v37  ;;  %3048 = vtanh.f32 %v524_v45  ;;  %v1273_v42 = vrot.slane %v1257_v58, %v3482_v7  ;;  %v1287_v45 = vrot.slane %v1259_v35, %v3482_v7 }
  0x7a   : >> { %v1006_v17 = vmul.f32 %v3047_v43, %v1004_v38  ;;  %v979_v50 = vsel %vm978_vm2, %v975_v19, %v977_v31  ;;  %v821_v19 = vcombine.high %v805_v59, %v805_v59  ;;  %v3504_v31 = vrot.slane %v812_v27, %v3495_v53  ;;  %4591 = vst [vmem:[#allocation28_spill] sm:$0xff] %v3537_v20 }
  0x7b   : >> { %v451_v52 = vsel %vm450_vm3, %v447_v37, %v449_v32  ;;  %v982_v57 = vsel %vm980_vm5, %v981_v49, %v979_v50  ;;  %v822_v37 = vcombine.high %v812_v27, %v812_v27  ;;  %v3507_v32 = vrot.slane %v820_v34, %v3495_v53 }
  0x7c   : >> { %v1008_v54 = vsel %vm1007_vm4, %v1004_v38, %v1006_v17  ;;  %v454_v60 = vsel %vm452_vm6, %v453_v51, %v451_v52  ;;  %v983_v0 = vmul.f32 2.0, %v982_v57  ;;  %v3517_v49 = vrot.slane %v819_v30, %v3495_v53 }
  0x7d   : >> { %v1011_v61 = vsel %vm1009_vm7, %v1010_v39, %v1008_v54  ;;  %v455_v11 = vmul.f32 2.0, %v454_v60  ;;  %v3511_v46 = vrot.slane %v822_v37, %v3495_v53  ;;  %v3520_v50 = vrot.slane %v821_v19, %v3495_v53 }
  0x7e   : >> { %v1012_v14 = vmul.f32 2.0, %v1011_v61  ;;  %3050 = vtanh.f32 %v983_v0  ;;  %v3523_v39 = vrot.slane %v823_v28, %v3495_v53  ;;  %v3526_v52 = vrot.slane %v1266_v62, %v3495_v53 }
  0x7f   : >> { %3052 = vtanh.f32 %v455_v11  ;;  %v1290_v54 = vcombine.high %v1280_v40, %v1280_v40  ;;  %v3530_v57 = vrot.slane %v1288_v15, %v3495_v53  ;;  %v1289_v60 = vcombine.high %v1273_v42, %v1273_v42 }
  0x80   : >> { %3054 = vtanh.f32 %v1012_v14  ;;  %4589 = vst [vmem:[#allocation26_spill] sm:$0xff] %v3526_v52  ;;  %v1291_v11 = vcombine.high %v1287_v45, %v1287_v45  ;;  %v3545_v23 = vrot.slane %v1273_v42, %v3495_v53  ;;  %v3549_v58 = vrot.slane %v1287_v45, %v3495_v53 }
  0x81   : >> { %4590 = vst [vmem:[#allocation27_spill] sm:$0xff] %v3530_v57  ;;  %v3542_v47 = vrot.slane %v1290_v54, %v3495_v53  ;;  %v3552_v59 = vrot.slane %v1289_v60, %v3495_v53 }
  0x82   : >> { %4593 = vst [vmem:[#allocation30_spill] sm:$0xff] %v3545_v23  ;;  %4594 = vst [vmem:[#allocation31_spill] sm:$0xff] %v3549_v58  ;;  %v3557_v36 = vrot.slane %v1291_v11, %v3495_v53 }
  0x83   : >> { %4592 = vst [vmem:[#allocation29_spill] sm:$0xff] %v3542_v47  ;;  %4595 = vst [vmem:[#allocation32_spill] sm:$0xff] %v3552_v59 }
  0x84   : >> { %4596 = vst [vmem:[#allocation33_spill] sm:$0xff] %v3557_v36 }
  0x86   : >> { %v3049_v24 = vpop.eup %3048 }
  0x87   : >> { %v643_v29 = vcombine.high %v3049_v24, %v3049_v24  ;;  %v650_v33 = vrot.slane %v3049_v24, %v3482_v7 }
  0x89   : >> { %v657_v38 = vrot.slane %v643_v29, %v3482_v7  ;;  %v658_v44 = vcombine.high %v650_v33, %v650_v33  ;;  %v666_v55 = vrot.slane %v650_v33, %v3482_v7 }
  0x8b   : >> { %v3051_v25 = vpop.eup %3050  ;;  %v659_v51 = vcombine.high %v657_v38, %v657_v38  ;;  %v680_v61 = vrot.slane %v658_v44, %v3482_v7  ;;  %v673_v14 = vrot.slane %v657_v38, %v3482_v7  ;;  %v688_v24 = vcombine.high %v666_v55, %v666_v55 }
  0x8c   : >> { %v3053_v43 = vpop.eup %3052  ;;  %v1015_v63 = vcombine.high %v3051_v25, %v3051_v25  ;;  %v1022_v16 = vrot.slane %v3051_v25, %v3482_v7  ;;  %v3560_v33 = vrot.slane %v666_v55, %v3495_v53 }
  0x8d   : >> { %v3055_v17 = vpop.eup %3054  ;;  %v527_v56 = vcombine.high %v3053_v43, %v3053_v43  ;;  %v534_v18 = vrot.slane %v3053_v43, %v3482_v7  ;;  %v687_v21 = vrot.slane %v659_v51, %v3482_v7  ;;  %v690_v27 = vcombine.high %v680_v61, %v680_v61 }
  0x8e   : >> { %v1121_v0 = vcombine.high %v3055_v17, %v3055_v17  ;;  %v1128_v22 = vrot.slane %v3055_v17, %v3482_v7  ;;  %v1029_v29 = vrot.slane %v1015_v63, %v3482_v7  ;;  %v689_v62 = vcombine.high %v673_v14, %v673_v14 }
  0x8f   : >> { %v541_v26 = vrot.slane %v527_v56, %v3482_v7  ;;  %v542_v34 = vcombine.high %v534_v18, %v534_v18  ;;  %v1030_v35 = vcombine.high %v1022_v16, %v1022_v16  ;;  %v691_v19 = vcombine.high %v687_v21, %v687_v21 }
  0x90   : >> { %v1135_v30 = vrot.slane %v1121_v0, %v3482_v7  ;;  %v3563_v37 = vrot.slane %v680_v61, %v3495_v53  ;;  %v1038_v38 = vrot.slane %v1022_v16, %v3482_v7  ;;  %v1136_v28 = vcombine.high %v1128_v22, %v1128_v22 }
  0x91   : >> { %v3567_v40 = vrot.slane %v688_v24, %v3495_v53  ;;  %v3570_v25 = vrot.slane %v673_v14, %v3495_v53  ;;  %v1144_v15 = vrot.slane %v1128_v22, %v3482_v7  ;;  %v543_v42 = vcombine.high %v541_v26, %v541_v26 }
  0x92   : >> { %v3574_v43 = vrot.slane %v690_v27, %v3495_v53  ;;  %v3577_v44 = vrot.slane %v687_v21, %v3495_v53  ;;  %v1031_v45 = vcombine.high %v1029_v29, %v1029_v29  ;;  %v1137_v17 = vcombine.high %v1135_v30, %v1135_v30 }
  0x93   : >> { %v3580_v51 = vrot.slane %v689_v62, %v3495_v53  ;;  %v550_v54 = vrot.slane %v534_v18, %v3482_v7  ;;  %v564_v55 = vrot.slane %v542_v34, %v3482_v7  ;;  %v1052_v56 = vrot.slane %v1030_v35, %v3482_v7 }
  0x94   : >> { %v3586_v60 = vrot.slane %v691_v19, %v3495_v53  ;;  %v557_v61 = vrot.slane %v541_v26, %v3482_v7  ;;  %v1158_v63 = vrot.slane %v1136_v28, %v3482_v7  ;;  %v1060_v0 = vcombine.high %v1038_v38, %v1038_v38 }
  0x95   : >> { %v3591_v11 = vrot.slane %v1038_v38, %v3495_v53  ;;  %v571_v14 = vrot.slane %v543_v42, %v3482_v7  ;;  %v1166_v16 = vcombine.high %v1144_v15, %v1144_v15  ;;  %v1045_v18 = vrot.slane %v1029_v29, %v3482_v7 }
  0x96   : >> { %v3596_v21 = vrot.slane %v1052_v56, %v3495_v53  ;;  %v1151_v22 = vrot.slane %v1135_v30, %v3482_v7  ;;  %v1059_v24 = vrot.slane %v1031_v45, %v3482_v7  ;;  %v1165_v26 = vrot.slane %v1137_v17, %v3482_v7 }
  0x97   : >> { %4597 = vst [vmem:[#allocation34_spill] sm:$0xff] %v3591_v11  ;;  %v3602_v27 = vrot.slane %v1144_v15, %v3495_v53  ;;  %v572_v62 = vcombine.high %v550_v54, %v550_v54  ;;  %v574_v34 = vcombine.high %v564_v55, %v564_v55  ;;  %v1062_v35 = vcombine.high %v1052_v56, %v1052_v56 }
  0x98   : >> { %4598 = vst [vmem:[#allocation35_spill] sm:$0xff] %v3596_v21  ;;  %v573_v19 = vcombine.high %v557_v61, %v557_v61  ;;  %v579_v38 = vrot.slane %v550_v54, %v3495_v53  ;;  %v3606_v29 = vrot.slane %v1060_v0, %v3495_v53  ;;  %v1168_v28 = vcombine.high %v1158_v63, %v1158_v63 }
  0x99   : >> { %4599 = vst [vmem:[#allocation36_spill] sm:$0xff] %v3602_v27  ;;  %v575_v42 = vcombine.high %v571_v14, %v571_v14  ;;  %v3609_v30 = vrot.slane %v1158_v63, %v3495_v53  ;;  %v3612_v45 = vrot.slane %v1166_v16, %v3495_v53  ;;  %v1061_v7 = vcombine.high %v1045_v18, %v1045_v18 }
  0x9a   : >> { %4600 = vst [vmem:[#allocation37_spill] sm:$0xff] %v3606_v29  ;;  %v583_v15 = vrot.slane %v564_v55, %v3495_v53  ;;  %v1167_v17 = vcombine.high %v1151_v22, %v1151_v22  ;;  %v1063_v1 = vcombine.high %v1059_v24, %v1059_v24  ;;  %v1169_v56 = vcombine.high %v1165_v26, %v1165_v26 }
  0x9b   : >> { %4601 = vst [vmem:[#allocation38_spill] sm:$0xff] %v3609_v30  ;;  %4602 = vst [vmem:[#allocation39_spill] sm:$0xff] %v3612_v45  ;;  %v587_v2 = vrot.slane %v572_v62, %v3495_v53  ;;  %v591_v54 = vrot.slane %v574_v34, %v3495_v53  ;;  %v595_v0 = vrot.slane %v557_v61, %v3495_v53 }
  0x9c   : >> { %v3619_v3 = vrot.slane %v1062_v35, %v3495_v53  ;;  %v599_v63 = vrot.slane %v571_v14, %v3495_v53  ;;  %v3623_v16 = vrot.slane %v573_v19, %v3495_v53  ;;  %v3626_v4 = vrot.slane %v1168_v28, %v3495_v53 }
  0x9d   : >> { %v3629_v55 = vrot.slane %v1045_v18, %v3495_v53  ;;  %v3632_v62 = vrot.slane %v575_v42, %v3495_v53  ;;  %v3635_v34 = vrot.slane %v1151_v22, %v3495_v53  ;;  %v3638_v61 = vrot.slane %v1059_v24, %v3495_v53 }
  0x9e   : >> { %4603 = vst [vmem:[#allocation40_spill] sm:$0xff] %v3619_v3  ;;  %4604 = vst [vmem:[#allocation41_spill] sm:$0xff] %v3626_v4  ;;  %v3641_v14 = vrot.slane %v1061_v7, %v3495_v53  ;;  %v3648_v28 = vrot.slane %v1165_v26, %v3495_v53  ;;  %v3651_v18 = vrot.slane %v1167_v17, %v3495_v53 }
  0x9f   : >> { %4605 = vst [vmem:[#allocation42_spill] sm:$0xff] %v3629_v55  ;;  %4606 = vst [vmem:[#allocation43_spill] sm:$0xff] %v3635_v34  ;;  %v3654_v42 = vrot.slane %v1063_v1, %v3495_v53  ;;  %v3657_v22 = vrot.slane %v1169_v56, %v3495_v53 }
  0xa0   : >> { %4607 = vst [vmem:[#allocation44_spill] sm:$0xff] %v3638_v61  ;;  %4608 = vst [vmem:[#allocation45_spill] sm:$0xff] %v3641_v14 }
  0xa1   : >> { %4611 = vst [vmem:[#allocation48_spill] sm:$0xff] %v3648_v28  ;;  %4612 = vst [vmem:[#allocation49_spill] sm:$0xff] %v3651_v18 }
  0xa2   : >> { %4613 = vst [vmem:[#allocation50_spill] sm:$0xff] %v3654_v42  ;;  %4614 = vst [vmem:[#allocation51_spill] sm:$0xff] %v3657_v22 }
  0xbd   : >> { %v3645_v19 = vpop.permute.xlu0 %618 }
  0xbe   : >> { %v3643_v35 = vpop.permute.xlu1 %734  ;;  %4610 = vst [vmem:[#allocation47_spill] sm:$0xff] %v3645_v19  ;;  %v626_v6 = vmul.f32 %v3645_v19, %v579_v38  ;;  %v628_v8 = vmul.f32 %v3645_v19, %v583_v15  ;;  %v630_v9 = vmul.f32 %v3645_v19, %v587_v2  ;;  %v632_v10 = vmul.f32 %v3645_v19, %v591_v54 }
  0xbf   : >> { %4609 = vst [vmem:[#allocation46_spill] sm:$0xff] %v3643_v35  ;;  %v742_v24 = vmul.f32 %v3643_v35, %v3560_v33  ;;  %v744_v7 = vmul.f32 %v3643_v35, %v3563_v37  ;;  %v746_v5 = vmul.f32 %v3643_v35, %v3567_v40  ;;  %v748_v26 = vmul.f32 %v3643_v35, %v3574_v43 }
  0xc0   : >> { %v3669_v17 = vmul.f32 %v3643_v35, %v3570_v25  ;;  %v3673_v1 = vmul.f32 %v3643_v35, %v3577_v44  ;;  %v3677_v53 = vmul.f32 %v3643_v35, %v3580_v51  ;;  %v3681_v56 = vmul.f32 %v3643_v35, %v3586_v60 }
  0xc1   : >> { %v3689_v13 = vpop.permute.xlu0 %623  ;;  %v634_v36 = vmul.f32 %v3645_v19, %v595_v0  ;;  %v636_v22 = vmul.f32 %v3645_v19, %v599_v63  ;;  %v638_v42 = vmul.f32 %v3645_v19, %v3623_v16  ;;  %v640_v59 = vmul.f32 %v3645_v19, %v3632_v62 }
  0xc2   : >> { %4615 = vst [vmem:[#allocation52_spill] sm:$0xff] %v3677_v53  ;;  %4616 = vst [vmem:[#allocation53_spill] sm:$0xff] %v3681_v56  ;;  %v3687_v12 = vpop.permute.xlu1 %739  ;;  %v629_v55 = vmul.f32 %v3689_v13, %v583_v15  ;;  %v637_v4 = vmul.f32 %v3689_v13, %v599_v63  ;;  %v641_v21 = vmul.f32 %v3689_v13, %v3632_v62 }
  0xc3   : >> { %4617 = vst [vmem:[#allocation54_spill] sm:$0xff] %v3687_v12  ;;  %4618 = vst [vmem:[#allocation55_spill] sm:$0xff] %v3689_v13  ;;  %v743_v18 = vmul.f32 %v3687_v12, %v3560_v33  ;;  %v745_v14 = vmul.f32 %v3687_v12, %v3563_v37  ;;  %v747_v58 = vmul.f32 %v3687_v12, %v3567_v40 }
  0xc4   : >> { %v749_v28 = vmul.f32 %v3687_v12, %v3574_v43  ;;  %v751_v61 = vmul.f32 %v3687_v12, %v3570_v25  ;;  %v753_v23 = vmul.f32 %v3687_v12, %v3577_v44  ;;  %v755_v34 = vmul.f32 %v3687_v12, %v3580_v51 }
  0xc5   : >> { %v757_v33 = vmul.f32 %v3687_v12, %v3586_v60  ;;  %v1105_v37 = vmul.f32 %v3591_v11, %v3689_v13  ;;  %v1211_v40 = vmul.f32 %v3602_v27, %v3687_v12  ;;  %v627_v43 = vmul.f32 %v3689_v13, %v579_v38  ;;  %v3721_v47 = vpop.permute.xlu0 %866 }
  0xc6   : >> { %v3719_v25 = vpop.permute.xlu1 %871  ;;  %4620 = vst [vmem:[#allocation57_spill] sm:$0xff] %v3721_v47  ;;  %v631_v44 = vmul.f32 %v3689_v13, %v587_v2  ;;  %v633_v51 = vmul.f32 %v3689_v13, %v591_v54  ;;  %v635_v60 = vmul.f32 %v3689_v13, %v595_v0  ;;  %v874_v3 = vmul.f32 %v3721_v47, %v3500_v41 }
  0xc7   : >> { %4619 = vst [vmem:[#allocation56_spill] sm:$0xff] %v3719_v25  ;;  %v875_v38 = vmul.f32 %v3719_v25, %v3500_v41  ;;  %v876_v15 = vmul.f32 %v3721_v47, %v3504_v31  ;;  %v877_v57 = vmul.f32 %v3719_v25, %v3504_v31  ;;  %v878_v2 = vmul.f32 %v3721_v47, %v3507_v32 }
  0xc8   : >> { %v879_v54 = vmul.f32 %v3719_v25, %v3507_v32  ;;  %v880_v0 = vmul.f32 %v3721_v47, %v3511_v46  ;;  %v881_v63 = vmul.f32 %v3719_v25, %v3511_v46  ;;  %v882_v41 = vmul.f32 %v3721_v47, %v3514_v48 }
  0xc9   : >> { %v883_v45 = vmul.f32 %v3719_v25, %v3514_v48  ;;  %v884_v31 = vmul.f32 %v3721_v47, %v3517_v49  ;;  %v885_v29 = vmul.f32 %v3719_v25, %v3517_v49  ;;  %v886_v32 = vmul.f32 %v3721_v47, %v3520_v50 }
  0xca   : >> { %v887_v20 = vmul.f32 %v3719_v25, %v3520_v50  ;;  %v888_v46 = vmul.f32 %v3721_v47, %v3523_v39  ;;  %v889_v30 = vmul.f32 %v3719_v25, %v3523_v39  ;;  %v1227_v48 = vadd.f32 %v1211_v40, %v1105_v37  ;;  %v3765_v27 = vpop.permute.xlu1 %913 }
  0xcb   : >> { %v1333_v12 = vmul.f32 %v3526_v52, %v3719_v25  ;;  %v639_v49 = vmul.f32 %v3689_v13, %v3623_v16  ;;  %v758_v50 = vadd.f32 %v742_v24, %v626_v6  ;;  %v759_v35 = vadd.f32 %v743_v18, %v627_v43  ;;  %v4621_v13 = vld [vmem:[#allocation52_spill] sm:$0xff]  ;;  %v4622_v18 = vld [vmem:[#allocation53_spill] sm:$0xff] }
  0xcc   : >> { %v760_v47 = vadd.f32 %v744_v7, %v628_v8  ;;  %v761_v11 = vadd.f32 %v745_v14, %v629_v55  ;;  %v762_v56 = vadd.f32 %v746_v5, %v630_v9  ;;  %v763_v39 = vadd.f32 %v747_v58, %v631_v44 }
  0xcd   : >> { %v1349_v19 = vadd.f32 %v1333_v12, %v1227_v48  ;;  %v764_v53 = vadd.f32 %v748_v26, %v632_v10  ;;  %v765_v37 = vadd.f32 %v749_v28, %v633_v51  ;;  %v766_v40 = vadd.f32 %v3669_v17, %v634_v36  ;;  %v3773_v28 = vpop.permute.xlu0 %908 }
  0xce   : >> { %v767_v25 = vadd.f32 %v751_v61, %v635_v60  ;;  %v768_v16 = vadd.f32 %v3673_v1, %v636_v22  ;;  %v769_v62 = vadd.f32 %v753_v23, %v637_v4  ;;  %v770_v6 = vadd.f32 %v4621_v13, %v638_v42 }
  0xcf   : >> { %v1365_v52 = vadd.f32 %v1349_v19, %v3765_v27  ;;  %v771_v24 = vadd.f32 %v755_v34, %v639_v49  ;;  %v772_v8 = vadd.f32 %v4622_v18, %v640_v59  ;;  %v773_v55 = vadd.f32 %v757_v33, %v641_v21 }
  0xd0   : >> { %v890_v12 = vadd.f32 %v874_v3, %v758_v50  ;;  %v891_v5 = vadd.f32 %v875_v38, %v759_v35  ;;  %v892_v10 = vadd.f32 %v876_v15, %v760_v47  ;;  %v893_v58 = vadd.f32 %v877_v57, %v761_v11 }
  0xd1   : >> { %v1381_v9 = vmax.f32 %v1365_v52, 0.0  ;;  %v894_v14 = vadd.f32 %v878_v2, %v762_v56  ;;  %v895_v36 = vadd.f32 %v879_v54, %v763_v39  ;;  %v896_v61 = vadd.f32 %v880_v0, %v764_v53 }
  0xd2   : >> { %v897_v22 = vadd.f32 %v881_v63, %v765_v37  ;;  %v898_v19 = vadd.f32 %v882_v41, %v766_v40  ;;  %v899_v23 = vadd.f32 %v883_v45, %v767_v25  ;;  %v900_v13 = vadd.f32 %v884_v31, %v768_v16 }
  0xd3   : >> { %v2831_v4 = vpack.c.bf16 %v1381_v9, %v1381_v9  ;;  %v901_v34 = vadd.f32 %v885_v29, %v769_v62  ;;  %v902_v42 = vadd.f32 %v886_v32, %v770_v6  ;;  %v903_v59 = vadd.f32 %v887_v20, %v771_v24 }
  0xd4   : >> { %v904_v21 = vadd.f32 %v888_v46, %v772_v8  ;;  %v905_v3 = vadd.f32 %v889_v30, %v773_v55  ;;  %v916_v52 = vadd.f32 %v3773_v28, %v890_v12  ;;  %v917_v57 = vadd.f32 %v3765_v27, %v891_v5 }
  0xd5   : >> { %1554 = vrot.lane.b32.xlu1 %v2831_v4, %s3183_s12  ;;  %v918_v47 = vadd.f32 %v3773_v28, %v892_v10  ;;  %v919_v11 = vadd.f32 %v3765_v27, %v893_v58  ;;  %1465 = vst.msk [vmem:[%s3782_s16 + $0x4] sm:$0xf] %vm1463_vm8, %v2831_v4  ;;  %v920_v20 = vadd.f32 %v3773_v28, %v894_v14  ;;  %v4623_v58 = vld [vmem:[#allocation47_spill] sm:$0xff]  ;;  %v4624_v14 = vld [vmem:[#allocation34_spill] sm:$0xff]  ;;  %v4627_v4 = vld [vmem:[#allocation57_spill] sm:$0xff] }
  0xd6   : >> { %v921_v29 = vadd.f32 %v3765_v27, %v895_v36  ;;  %v922_v30 = vadd.f32 %v3773_v28, %v896_v61  ;;  %v923_v45 = vadd.f32 %v3765_v27, %v897_v22  ;;  %v924_v35 = vadd.f32 %v3773_v28, %v898_v19  ;;  %v4625_v61 = vld [vmem:[#allocation46_spill] sm:$0xff]  ;;  %v4626_v22 = vld [vmem:[#allocation36_spill] sm:$0xff] }
  0xd7   : >> { %v925_v7 = vadd.f32 %v3765_v27, %v899_v23  ;;  %v926_v26 = vadd.f32 %v3773_v28, %v900_v13  ;;  %v927_v17 = vadd.f32 %v3765_v27, %v901_v34  ;;  %v928_v1 = vadd.f32 %v3773_v28, %v902_v42  ;;  %v4628_v23 = vld [vmem:[#allocation26_spill] sm:$0xff]  ;;  %v4629_v34 = vld [vmem:[#allocation55_spill] sm:$0xff] }
  0xd8   : >> { %v929_v53 = vadd.f32 %v3765_v27, %v903_v59  ;;  %v930_v56 = vadd.f32 %v3773_v28, %v904_v21  ;;  %v931_v33 = vadd.f32 %v3765_v27, %v905_v3  ;;  %v932_v43 = vmax.f32 %v916_v52, 0.0  ;;  %v4630_v42 = vld [vmem:[#allocation35_spill] sm:$0xff]  ;;  %v4631_v21 = vld [vmem:[#allocation54_spill] sm:$0xff] }
  0xd9   : >> { %v933_v25 = vmax.f32 %v917_v57, 0.0  ;;  %v934_v44 = vmax.f32 %v918_v47, 0.0  ;;  %v935_v51 = vmax.f32 %v919_v11, 0.0  ;;  %v936_v60 = vmax.f32 %v920_v20, 0.0  ;;  %v4632_v3 = vld [vmem:[#allocation38_spill] sm:$0xff]  ;;  %v4633_v57 = vld [vmem:[#allocation56_spill] sm:$0xff] }
  0xda   : >> { %v937_v38 = vmax.f32 %v921_v29, 0.0  ;;  %v938_v15 = vmax.f32 %v922_v30, 0.0  ;;  %v939_v2 = vmax.f32 %v923_v45, 0.0  ;;  %v940_v54 = vmax.f32 %v924_v35, 0.0  ;;  %v4634_v47 = vld [vmem:[#allocation28_spill] sm:$0xff]  ;;  %v4635_v35 = vld [vmem:[#allocation37_spill] sm:$0xff] }
  0xdb   : >> { %v941_v0 = vmax.f32 %v925_v7, 0.0  ;;  %v942_v63 = vmax.f32 %v926_v26, 0.0  ;;  %v943_v41 = vmax.f32 %v927_v17, 0.0  ;;  %v944_v31 = vmax.f32 %v928_v1, 0.0  ;;  %v4636_v26 = vld [vmem:[#allocation39_spill] sm:$0xff] }
  0xdc   : >> { %v945_v32 = vmax.f32 %v929_v53, 0.0  ;;  %v946_v46 = vmax.f32 %v930_v56, 0.0  ;;  %v947_v48 = vmax.f32 %v931_v33, 0.0  ;;  %v2847_v49 = vpack.c.bf16 %v932_v43, %v932_v43  ;;  %v4637_v56 = vld [vmem:[#allocation27_spill] sm:$0xff] }
  0xdd   : >> { %v2848_v50 = vpack.c.bf16 %v933_v25, %v933_v25  ;;  %v2849_v39 = vpack.c.bf16 %v934_v44, %v934_v44  ;;  %v2850_v37 = vpack.c.bf16 %v935_v51, %v935_v51  ;;  %v2851_v40 = vpack.c.bf16 %v936_v60, %v936_v60 }
  0xde   : >> { %v2852_v16 = vpack.c.bf16 %v937_v38, %v937_v38  ;;  %v2853_v62 = vpack.c.bf16 %v938_v15, %v938_v15  ;;  %v2854_v6 = vpack.c.bf16 %v939_v2, %v939_v2  ;;  %v2855_v24 = vpack.c.bf16 %v940_v54, %v940_v54  ;;  %1536 = vst.msk [vmem:[%s3782_s16 + $0x8] sm:$0xf] %vm1463_vm8, %v2847_v49  ;;  %v4638_v2 = vld [vmem:[#allocation40_spill] sm:$0xff] }
  0xdf   : >> { %v2856_v18 = vpack.c.bf16 %v941_v0, %v941_v0  ;;  %v2857_v8 = vpack.c.bf16 %v942_v63, %v942_v63  ;;  %v2858_v55 = vpack.c.bf16 %v943_v41, %v943_v41  ;;  %1537 = vst.msk [vmem:[%s3782_s16 + $0xc] sm:$0xf] %vm1463_vm8, %v2848_v50  ;;  %1538 = vst.msk [vmem:[%s3782_s16 + $0x20] sm:$0xf] %vm1463_vm8, %v2849_v39  ;;  %v4639_v0 = vld [vmem:[#allocation41_spill] sm:$0xff] }
  0xe0   : >> { %1539 = vst.msk [vmem:[%s3782_s16 + $0x24] sm:$0xf] %vm1463_vm8, %v2850_v37  ;;  %v2859_v12 = vpack.c.bf16 %v944_v31, %v944_v31  ;;  %v2860_v5 = vpack.c.bf16 %v945_v32, %v945_v32  ;;  %v2861_v9 = vpack.c.bf16 %v946_v46, %v946_v46  ;;  %v2862_v10 = vpack.c.bf16 %v947_v48, %v947_v48  ;;  %v4640_v46 = vld [vmem:[#allocation29_spill] sm:$0xff] }
  0xe1   : >> { %1540 = vst.msk [vmem:[%s3782_s16 + $0x38] sm:$0xf] %vm1463_vm8, %v2851_v40  ;;  %1541 = vst.msk [vmem:[%s3782_s16 + $0x3c] sm:$0xf] %vm1463_vm8, %v2852_v16  ;;  %v1104_v36 = vmul.f32 %v4624_v14, %v4623_v58  ;;  %v1210_v19 = vmul.f32 %v4626_v22, %v4625_v61  ;;  %v1332_v13 = vmul.f32 %v4628_v23, %v4627_v4 }
  0xe2   : >> { %1542 = vst.msk [vmem:[%s3782_s16 + $0x50] sm:$0xf] %vm1463_vm8, %v2853_v62  ;;  %1543 = vst.msk [vmem:[%s3782_s16 + $0x54] sm:$0xf] %vm1463_vm8, %v2854_v6  ;;  %v1107_v59 = vmul.f32 %v4630_v42, %v4629_v34  ;;  %v1213_v52 = vmul.f32 %v4632_v3, %v4631_v21  ;;  %v1335_v11 = vmul.f32 %v4634_v47, %v4633_v57 }
  0xe3   : >> { %1544 = vst.msk [vmem:[%s3782_s16 + $0x68] sm:$0xf] %vm1463_vm8, %v2855_v24  ;;  %1545 = vst.msk [vmem:[%s3782_s16 + $0x6c] sm:$0xf] %vm1463_vm8, %v2856_v18  ;;  %v1106_v20 = vmul.f32 %v4630_v42, %v4623_v58  ;;  %v1212_v29 = vmul.f32 %v4632_v3, %v4625_v61  ;;  %v1226_v30 = vadd.f32 %v1210_v19, %v1104_v36  ;;  %v4641_v19 = vld [vmem:[#allocation42_spill] sm:$0xff]  ;;  %v4642_v3 = vld [vmem:[#allocation43_spill] sm:$0xff] }
  0xe4   : >> { %1546 = vst.msk [vmem:[%s3782_s16 + $0x80] sm:$0xf] %vm1463_vm8, %v2857_v8  ;;  %1547 = vst.msk [vmem:[%s3782_s16 + $0x84] sm:$0xf] %vm1463_vm8, %v2858_v55  ;;  %v1334_v45 = vmul.f32 %v4634_v47, %v4627_v4  ;;  %v1109_v7 = vmul.f32 %v4635_v35, %v4629_v34  ;;  %v1215_v17 = vmul.f32 %v4636_v26, %v4631_v21 }
  0xe5   : >> { %1548 = vst.msk [vmem:[%s3782_s16 + $0x98] sm:$0xf] %vm1463_vm8, %v2859_v12  ;;  %1549 = vst.msk [vmem:[%s3782_s16 + $0x9c] sm:$0xf] %vm1463_vm8, %v2860_v5  ;;  %v1229_v1 = vadd.f32 %v1213_v52, %v1107_v59  ;;  %v1228_v53 = vadd.f32 %v1212_v29, %v1106_v20  ;;  %v1337_v33 = vmul.f32 %v4637_v56, %v4633_v57 }
  0xe6   : >> { %1550 = vst.msk [vmem:[%s3782_s16 + $0xb0] sm:$0xf] %vm1463_vm8, %v2861_v9  ;;  %1551 = vst.msk [vmem:[%s3782_s16 + $0xb4] sm:$0xf] %vm1463_vm8, %v2862_v10  ;;  %v1108_v43 = vmul.f32 %v4635_v35, %v4623_v58  ;;  %v1348_v25 = vadd.f32 %v1332_v13, %v1226_v30  ;;  %v1231_v44 = vadd.f32 %v1215_v17, %v1109_v7 }
  0xe7   : >> { %v1214_v51 = vmul.f32 %v4636_v26, %v4625_v61  ;;  %v1336_v60 = vmul.f32 %v4637_v56, %v4627_v4  ;;  %v1351_v38 = vadd.f32 %v1335_v11, %v1229_v1  ;;  %v1350_v15 = vadd.f32 %v1334_v45, %v1228_v53  ;;  %v4643_v11 = vld [vmem:[#allocation30_spill] sm:$0xff]  ;;  %v4644_v53 = vld [vmem:[#allocation44_spill] sm:$0xff] }
  0xe8   : >> { %v1111_v54 = vmul.f32 %v4638_v2, %v4629_v34  ;;  %v1217_v63 = vmul.f32 %v4639_v0, %v4631_v21  ;;  %v1364_v41 = vadd.f32 %v1348_v25, %v3773_v28  ;;  %v1353_v31 = vadd.f32 %v1337_v33, %v1231_v44  ;;  %v4645_v33 = vld [vmem:[#allocation48_spill] sm:$0xff] }
  0xe9   : >> { %v1230_v32 = vadd.f32 %v1214_v51, %v1108_v43  ;;  %v1339_v48 = vmul.f32 %v4640_v46, %v4633_v57  ;;  %v1367_v49 = vadd.f32 %v1351_v38, %v3765_v27  ;;  %v1366_v50 = vadd.f32 %v1350_v15, %v3773_v28  ;;  %v4646_v51 = vld [vmem:[#allocation31_spill] sm:$0xff] }
  0xea   : >> { %v1233_v39 = vadd.f32 %v1217_v63, %v1111_v54  ;;  %v1110_v37 = vmul.f32 %v4638_v2, %v4623_v58  ;;  %v1380_v40 = vmax.f32 %v1364_v41, 0.0  ;;  %v1369_v16 = vadd.f32 %v1353_v31, %v3765_v27  ;;  %v4647_v31 = vld [vmem:[#allocation45_spill] sm:$0xff] }
  0xeb   : >> { %v1352_v62 = vadd.f32 %v1336_v60, %v1230_v32  ;;  %v1216_v6 = vmul.f32 %v4639_v0, %v4625_v61  ;;  %v1383_v24 = vmax.f32 %v1367_v49, 0.0  ;;  %v1382_v18 = vmax.f32 %v1366_v50, 0.0 }
  0xec   : >> { %v1355_v8 = vadd.f32 %v1339_v48, %v1233_v39  ;;  %v1338_v55 = vmul.f32 %v4640_v46, %v4627_v4  ;;  %v2830_v12 = vpack.c.bf16 %v1380_v40, %v1380_v40  ;;  %v1385_v5 = vmax.f32 %v1369_v16, 0.0  ;;  %v4648_v46 = vld [vmem:[#allocation49_spill] sm:$0xff] }
  0xed   : >> { %v1368_v9 = vadd.f32 %v1352_v62, %v3773_v28  ;;  %v1232_v10 = vadd.f32 %v1216_v6, %v1110_v37  ;;  %v2833_v14 = vpack.c.bf16 %v1383_v24, %v1383_v24  ;;  %v2832_v36 = vpack.c.bf16 %v1382_v18, %v1382_v18  ;;  %v4649_v37 = vld [vmem:[#allocation32_spill] sm:$0xff] }
  0xee   : >> { %v1371_v22 = vadd.f32 %v1355_v8, %v3765_v27  ;;  %v1113_v23 = vmul.f32 %v4641_v19, %v4629_v34  ;;  %1552 = vrot.lane.b32.xlu0 %v2830_v12, %s3183_s12  ;;  %1464 = vst.msk [vmem:[%s3782_s16] sm:$0xf] %vm1463_vm8, %v2830_v12  ;;  %v2835_v13 = vpack.c.bf16 %v1385_v5, %v1385_v5 }
  0xef   : >> { %v1384_v42 = vmax.f32 %v1368_v9, 0.0  ;;  %v1354_v59 = vadd.f32 %v1338_v55, %v1232_v10  ;;  %v1219_v52 = vmul.f32 %v4642_v3, %v4631_v21  ;;  %1558 = vrot.lane.b32.xlu1 %v2833_v14, %s3183_s12  ;;  %1467 = vst.msk [vmem:[%s3782_s16 + $0x1c] sm:$0xf] %vm1463_vm8, %v2833_v14  ;;  %1466 = vst.msk [vmem:[%s3782_s16 + $0x18] sm:$0xf] %vm1463_vm8, %v2832_v36  ;;  %v4650_v14 = vld [vmem:[#allocation50_spill] sm:$0xff] }
  0xf0   : >> { %v1387_v47 = vmax.f32 %v1371_v22, 0.0  ;;  %v1341_v20 = vmul.f32 %v4643_v11, %v4633_v57  ;;  %v1112_v29 = vmul.f32 %v4641_v19, %v4623_v58  ;;  %v1218_v30 = vmul.f32 %v4642_v3, %v4625_v61  ;;  %1469 = vst.msk [vmem:[%s3782_s16 + $0x34] sm:$0xf] %vm1463_vm8, %v2835_v13 }
  0xf1   : >> { %v2834_v45 = vpack.c.bf16 %v1384_v42, %v1384_v42  ;;  %v1370_v35 = vadd.f32 %v1354_v59, %v3773_v28  ;;  %v1235_v7 = vadd.f32 %v1219_v52, %v1113_v23  ;;  %v1340_v26 = vmul.f32 %v4643_v11, %v4627_v4  ;;  %v4652_v52 = vld [vmem:[#allocation33_spill] sm:$0xff] }
  0xf2   : >> { %v2837_v17 = vpack.c.bf16 %v1387_v47, %v1387_v47  ;;  %v1234_v1 = vadd.f32 %v1218_v30, %v1112_v29  ;;  %v1115_v56 = vmul.f32 %v4644_v53, %v4629_v34  ;;  %v1221_v43 = vmul.f32 %v4645_v33, %v4631_v21  ;;  %1556 = vrot.lane.b32.xlu0 %v2832_v36, %s3183_s12 }
  0xf3   : >> { %1468 = vst.msk [vmem:[%s3782_s16 + $0x30] sm:$0xf] %vm1463_vm8, %v2834_v45  ;;  %v1386_v25 = vmax.f32 %v1370_v35, 0.0  ;;  %v1357_v44 = vadd.f32 %v1341_v20, %v1235_v7  ;;  %v1343_v60 = vmul.f32 %v4646_v51, %v4633_v57  ;;  %v1114_v38 = vmul.f32 %v4644_v53, %v4623_v58  ;;  %1562 = vrot.lane.b32.xlu1 %v2835_v13, %s3183_s12  ;;  %v4651_v13 = vld [vmem:[#allocation51_spill] sm:$0xff] }
  0xf4   : >> { %1471 = vst.msk [vmem:[%s3782_s16 + $0x4c] sm:$0xf] %vm1463_vm8, %v2837_v17  ;;  %v1356_v15 = vadd.f32 %v1340_v26, %v1234_v1  ;;  %v1237_v2 = vadd.f32 %v1221_v43, %v1115_v56  ;;  %v1220_v54 = vmul.f32 %v4645_v33, %v4625_v61  ;;  %v1342_v0 = vmul.f32 %v4646_v51, %v4627_v4 }
  0xf5   : >> { %v2836_v63 = vpack.c.bf16 %v1386_v25, %v1386_v25  ;;  %v1373_v41 = vadd.f32 %v1357_v44, %v3765_v27  ;;  %v1117_v32 = vmul.f32 %v4647_v31, %v4629_v34  ;;  %v1223_v48 = vmul.f32 %v4648_v46, %v4631_v21 }
  0xf6   : >> { %v1372_v49 = vadd.f32 %v1356_v15, %v3773_v28  ;;  %v1359_v50 = vadd.f32 %v1343_v60, %v1237_v2  ;;  %v1236_v39 = vadd.f32 %v1220_v54, %v1114_v38  ;;  %v1345_v40 = vmul.f32 %v4649_v37, %v4633_v57  ;;  %1560 = vrot.lane.b32.xlu0 %v2834_v45, %s3183_s12 }
  0xf7   : >> { %1470 = vst.msk [vmem:[%s3782_s16 + $0x48] sm:$0xf] %vm1463_vm8, %v2836_v63  ;;  %v1389_v16 = vmax.f32 %v1373_v41, 0.0  ;;  %v1239_v62 = vadd.f32 %v1223_v48, %v1117_v32  ;;  %v1116_v6 = vmul.f32 %v4647_v31, %v4623_v58  ;;  %v1222_v24 = vmul.f32 %v4648_v46, %v4625_v61  ;;  %1566 = vrot.lane.b32.xlu1 %v2837_v17, %s3183_s12 }
  0xf8   : >> { %v1388_v18 = vmax.f32 %v1372_v49, 0.0  ;;  %v1375_v8 = vadd.f32 %v1359_v50, %v3765_v27  ;;  %v1358_v55 = vadd.f32 %v1342_v0, %v1236_v39  ;;  %v1344_v12 = vmul.f32 %v4649_v37, %v4627_v4  ;;  %v4018_v49 = vld [vmem:[%s4500_s5] sm:$0xf] (%p375_p10)  ;;  %v4023_v50 = vld [vmem:[%s4500_s5 + $0x4] sm:$0xf] (%p375_p10) }
  0xf9   : >> { %v2839_v5 = vpack.c.bf16 %v1389_v16, %v1389_v16  ;;  %v1361_v9 = vadd.f32 %v1345_v40, %v1239_v62  ;;  %v1238_v10 = vadd.f32 %v1222_v24, %v1116_v6  ;;  %v1119_v36 = vmul.f32 %v4650_v14, %v4629_v34  ;;  %v4080_v37 = vld [vmem:[%s4500_s5 + $0x8] sm:$0xf] (%p375_p10)  ;;  %v4085_v40 = vld [vmem:[%s4500_s5 + $0xc] sm:$0xf] (%p375_p10)  ;;  %v4090_v16 = vld [vmem:[%s4500_s5 + $0x10] sm:$0xf] (%p375_p10) }
  0xfa   : >> { %v2838_v22 = vpack.c.bf16 %v1388_v18, %v1388_v18  ;;  %v1391_v19 = vmax.f32 %v1375_v8, 0.0  ;;  %v1374_v23 = vadd.f32 %v1358_v55, %v3773_v28  ;;  %v1225_v42 = vmul.f32 %v4651_v13, %v4631_v21  ;;  %1564 = vrot.lane.b32.xlu0 %v2836_v63, %s3183_s12  ;;  %v4096_v62 = vld [vmem:[%s4500_s5 + $0x14] sm:$0xf] (%p375_p10)  ;;  %v4101_v6 = vld [vmem:[%s4500_s5 + $0x18] sm:$0xf] (%p375_p10) }
  0xfb   : >> { %1473 = vst.msk [vmem:[%s3782_s16 + $0x64] sm:$0xf] %vm1463_vm8, %v2839_v5  ;;  %v1377_v59 = vadd.f32 %v1361_v9, %v3765_v27  ;;  %v1360_v3 = vadd.f32 %v1344_v12, %v1238_v10  ;;  %v1347_v47 = vmul.f32 %v4652_v52, %v4633_v57  ;;  %v1118_v34 = vmul.f32 %v4650_v14, %v4623_v58  ;;  %v4106_v24 = vld [vmem:[%s4500_s5 + $0x1c] sm:$0xf] (%p375_p10)  ;;  %v4112_v18 = vld [vmem:[%s4500_s5 + $0x20] sm:$0xf] (%p375_p10) }
  0xfc   : >> { %1570 = vrot.lane.b32.xlu1 %v2839_v5, %s3183_s12  ;;  %1472 = vst.msk [vmem:[%s3782_s16 + $0x60] sm:$0xf] %vm1463_vm8, %v2838_v22  ;;  %v2841_v21 = vpack.c.bf16 %v1391_v19, %v1391_v19  ;;  %v1390_v11 = vmax.f32 %v1374_v23, 0.0  ;;  %v1241_v20 = vadd.f32 %v1225_v42, %v1119_v36  ;;  %v1224_v29 = vmul.f32 %v4651_v13, %v4625_v61  ;;  %v4117_v8 = vld [vmem:[%s4500_s5 + $0x24] sm:$0xf] (%p375_p10) }
  0xfd   : >> { %v1393_v30 = vmax.f32 %v1377_v59, 0.0  ;;  %v1376_v45 = vadd.f32 %v1360_v3, %v3773_v28  ;;  %v1346_v57 = vmul.f32 %v4652_v52, %v4627_v4  ;;  %v3184_v39 = vmov (%p375_p10), 0   ;;  %4653 = vst [vmem:[#allocation15_spill] sm:$0xff] (%p375_p10), %v4101_v6  ;;  %4654 = vst [vmem:[#allocation16_spill] sm:$0xff] (%p375_p10), %v4117_v8  ;;  %v4122_v55 = vld [vmem:[%s4500_s5 + $0x28] sm:$0xf] (%p375_p10) }
  0xfe   : >> { %1475 = vst.msk [vmem:[%s3782_s16 + $0x7c] sm:$0xf] %vm1463_vm8, %v2841_v21  ;;  %v2840_v58 = vpack.c.bf16 %v1390_v11, %v1390_v11  ;;  %v1363_v35 = vadd.f32 %v1347_v47, %v1241_v20  ;;  %v1240_v7 = vadd.f32 %v1224_v29, %v1118_v34  ;;  %1568 = vrot.lane.b32.xlu0 %v2838_v22, %s3183_s12  ;;  %v4127_v12 = vld [vmem:[%s4500_s5 + $0x2c] sm:$0xf] (%p375_p10)  ;;  %v4132_v5 = vld [vmem:[%s4500_s5 + $0x30] sm:$0xf] (%p375_p10) }
  0xff   : >> { %v2843_v26 = vpack.c.bf16 %v1393_v30, %v1393_v30  ;;  %v1392_v17 = vmax.f32 %v1376_v45, 0.0  ;;  %4655 = vst [vmem:[#allocation17_spill] sm:$0xff] (%p375_p10), %v4132_v5  ;;  %v4137_v9 = vld [vmem:[%s4500_s5 + $0x34] sm:$0xf] (%p375_p10)  ;;  %v4142_v10 = vld [vmem:[%s4500_s5 + $0x38] sm:$0xf] (%p375_p10) }
 0x100   : >> { %1574 = vrot.lane.b32.xlu1 %v2841_v21, %s3183_s12  ;;  %1474 = vst.msk [vmem:[%s3782_s16 + $0x78] sm:$0xf] %vm1463_vm8, %v2840_v58  ;;  %v1379_v61 = vadd.f32 %v1363_v35, %v3765_v27  ;;  %v1362_v1 = vadd.f32 %v1346_v57, %v1240_v7  ;;  %4656 = vst [vmem:[#allocation18_spill] sm:$0xff] (%p375_p10), %v4137_v9  ;;  %v4147_v14 = vld [vmem:[%s4500_s5 + $0x3c] sm:$0xf] (%p375_p10)  ;;  %v4192_v52 = vld [vmem:[%s4501_s6] sm:$0xff] (%p375_p10) }
 0x101   : >> { %1477 = vst.msk [vmem:[%s3782_s16 + $0x94] sm:$0xf] %vm1463_vm8, %v2843_v26  ;;  %v2842_v4 = vpack.c.bf16 %v1392_v17, %v1392_v17  ;;  %4657 = vst [vmem:[#allocation19_spill] sm:$0xff] (%p375_p10), %v4142_v10  ;;  %v4152_v36 = vld [vmem:[%s4500_s5 + $0x40] sm:$0xf] (%p375_p10)  ;;  %v4197_v47 = vld [vmem:[%s4501_s6 + $0x8] sm:$0xff] (%p375_p10) }
 0x102   : >> { %v1395_v53 = vmax.f32 %v1379_v61, 0.0  ;;  %v1378_v56 = vadd.f32 %v1362_v1, %v3773_v28  ;;  %1572 = vrot.lane.b32.xlu0 %v2840_v58, %s3183_s12  ;;  %v4157_v22 = vld [vmem:[%s4500_s5 + $0x44] sm:$0xf] (%p375_p10)  ;;  %v4162_v19 = vld [vmem:[%s4500_s5 + $0x48] sm:$0xf] (%p375_p10)  ;;  %v4202_v34 = vld [vmem:[%s4501_s6 + $0x10] sm:$0xff] (%p375_p10) }
 0x103   : >> { %1476 = vst.msk [vmem:[%s3782_s16 + $0x90] sm:$0xf] %vm1463_vm8, %v2842_v4  ;;  %v4167_v23 = vld [vmem:[%s4500_s5 + $0x4c] sm:$0xf] (%p375_p10)  ;;  %v4172_v13 = vld [vmem:[%s4500_s5 + $0x50] sm:$0xf] (%p375_p10) }
 0x104   : >> { %1578 = vrot.lane.b32.xlu1 %v2843_v26, %s3183_s12  ;;  %v2845_v33 = vpack.c.bf16 %v1395_v53, %v1395_v53  ;;  %v1394_v43 = vmax.f32 %v1378_v56, 0.0  ;;  %v4177_v42 = vld [vmem:[%s4500_s5 + $0x54] sm:$0xf] (%p375_p10)  ;;  %v4182_v59 = vld [vmem:[%s4500_s5 + $0x58] sm:$0xf] (%p375_p10)  ;;  %v4212_v11 = vld [vmem:[%s4501_s6 + $0x20] sm:$0xff] (%p375_p10) }
 0x105   : > { %v4187_v3 = vld [vmem:[%s4500_s5 + $0x5c] sm:$0xf] (%p375_p10)  ;;  %4659 = vst [vmem:[#allocation21_spill] sm:$0xff] (%p375_p10), %v4212_v11  ;;  %v4217_v20 = vld [vmem:[%s4501_s6 + $0x28] sm:$0xff] (%p375_p10)  ;;  %v4222_v29 = vld [vmem:[%s4501_s6 + $0x30] sm:$0xff] (%p375_p10) }
 0x106   : >> { %1479 = vst.msk [vmem:[%s3782_s16 + $0xac] sm:$0xf] %vm1463_vm8, %v2845_v33  ;;  %v2844_v27 = vpack.c.bf16 %v1394_v43, %v1394_v43  ;;  %1576 = vrot.lane.b32.xlu0 %v2842_v4, %s3183_s12  ;;  %4658 = vst [vmem:[#allocation20_spill] sm:$0xff] (%p375_p10), %v4187_v3  ;;  %v4207_v21 = vld [vmem:[%s4501_s6 + $0x18] sm:$0xff] (%p375_p10) }
 0x107   : > { %v4227_v30 = vld [vmem:[%s4501_s6 + $0x38] sm:$0xff] (%p375_p10) }
 0x108   : >> { %1582 = vrot.lane.b32.xlu1 %v2845_v33, %s3183_s12  ;;  %1478 = vst.msk [vmem:[%s3782_s16 + $0xa8] sm:$0xf] %vm1463_vm8, %v2844_v27 }
 0x10a   : >> { %1580 = vrot.lane.b32.xlu0 %v2844_v27, %s3183_s12  ;;  %s4229_s12 = smov (%p375_p10), 0  }
 0x147   : >> { %v1555_v28 = vpop.permute.xlu1 %1554 }
 0x148   : >> { %1601 = vst.msk [vmem:[%s3782_s16 + $0x14] sm:$0xf] %vm1463_vm8, %v1555_v28 }
 0x160   : >> { %v1553_v25 = vpop.permute.xlu0 %1552 }
 0x161   : >> { %1600 = vst.msk [vmem:[%s3782_s16 + $0x10] sm:$0xf] %vm1463_vm8, %v1553_v25  ;;  %v1559_v44 = vpop.permute.xlu1 %1558 }
 0x162   : >> { %1603 = vst.msk [vmem:[%s3782_s16 + $0x2c] sm:$0xf] %vm1463_vm8, %v1559_v44 }
 0x164   : >> { %v1557_v51 = vpop.permute.xlu0 %1556 }
 0x165   : >> { %1602 = vst.msk [vmem:[%s3782_s16 + $0x28] sm:$0xf] %vm1463_vm8, %v1557_v51  ;;  %v1563_v60 = vpop.permute.xlu1 %1562 }
 0x166   : >> { %1605 = vst.msk [vmem:[%s3782_s16 + $0x44] sm:$0xf] %vm1463_vm8, %v1563_v60 }
 0x168   : >> { %v1561_v38 = vpop.permute.xlu0 %1560 }
 0x169   : >> { %1604 = vst.msk [vmem:[%s3782_s16 + $0x40] sm:$0xf] %vm1463_vm8, %v1561_v38  ;;  %v1567_v15 = vpop.permute.xlu1 %1566 }
 0x16a   : >> { %1607 = vst.msk [vmem:[%s3782_s16 + $0x5c] sm:$0xf] %vm1463_vm8, %v1567_v15 }
 0x16c   : >> { %v1565_v2 = vpop.permute.xlu0 %1564 }
 0x16d   : >> { %1606 = vst.msk [vmem:[%s3782_s16 + $0x58] sm:$0xf] %vm1463_vm8, %v1565_v2 }
 0x16e   : >> { %v1571_v54 = vpop.permute.xlu1 %1570 }
 0x16f   : >> { %1609 = vst.msk [vmem:[%s3782_s16 + $0x74] sm:$0xf] %vm1463_vm8, %v1571_v54 }
 0x170   : >> { %v1569_v0 = vpop.permute.xlu0 %1568 }
 0x171   : >> { %1608 = vst.msk [vmem:[%s3782_s16 + $0x70] sm:$0xf] %vm1463_vm8, %v1569_v0 }
 0x172   : >> { %v1575_v63 = vpop.permute.xlu1 %1574 }
 0x173   : >> { %1611 = vst.msk [vmem:[%s3782_s16 + $0x8c] sm:$0xf] %vm1463_vm8, %v1575_v63 }
 0x174   : >> { %v1573_v41 = vpop.permute.xlu0 %1572 }
 0x175   : >> { %1610 = vst.msk [vmem:[%s3782_s16 + $0x88] sm:$0xf] %vm1463_vm8, %v1573_v41 }
 0x176   : >> { %v1579_v31 = vpop.permute.xlu1 %1578 }
 0x177   : >> { %1613 = vst.msk [vmem:[%s3782_s16 + $0xa4] sm:$0xf] %vm1463_vm8, %v1579_v31 }
 0x178   : >> { %v1577_v32 = vpop.permute.xlu0 %1576 }
 0x179   : >> { %1612 = vst.msk [vmem:[%s3782_s16 + $0xa0] sm:$0xf] %vm1463_vm8, %v1577_v32  ;;  %377 = sbr.rel (!%p375_p10) target bundleno = 63 (0x3f), region = 127 }
 0x17a   : >> { %v1583_v46 = vpop.permute.xlu1 %1582 }
 0x17b   : >> { %1615 = vst.msk [vmem:[%s3782_s16 + $0xbc] sm:$0xf] %vm1463_vm8, %v1583_v46 }
 0x17c   : >> { %v1581_v48 = vpop.permute.xlu0 %1580 }
 0x17d   : >> { %1614 = vst.msk [vmem:[%s3782_s16 + $0xb8] sm:$0xf] %vm1463_vm8, %v1581_v48 }
 0x17e   : > { %1617 = vst.msk [vmem:[#allocation2] sm:$0xf] %vm1616_vm9, %v3184_v39  ;;  %1618 = vst.msk [vmem:[#allocation2 + $0x4] sm:$0xf] %vm1616_vm9, %v3184_v39 }
 0x17f   : > { %1619 = vst.msk [vmem:[#allocation2 + $0x18] sm:$0xf] %vm1616_vm9, %v3184_v39  ;;  %1620 = vst.msk [vmem:[#allocation2 + $0x1c] sm:$0xf] %vm1616_vm9, %v3184_v39 }
 0x180   : > { %1621 = vst.msk [vmem:[#allocation2 + $0x30] sm:$0xf] %vm1616_vm9, %v3184_v39  ;;  %1622 = vst.msk [vmem:[#allocation2 + $0x34] sm:$0xf] %vm1616_vm9, %v3184_v39 }
 0x181   : > { %1623 = vst.msk [vmem:[#allocation2 + $0x48] sm:$0xf] %vm1616_vm9, %v3184_v39  ;;  %1624 = vst.msk [vmem:[#allocation2 + $0x4c] sm:$0xf] %vm1616_vm9, %v3184_v39 }
 0x182   : > { %1625 = vst.msk [vmem:[#allocation2 + $0x60] sm:$0xf] %vm1616_vm9, %v3184_v39  ;;  %1626 = vst.msk [vmem:[#allocation2 + $0x64] sm:$0xf] %vm1616_vm9, %v3184_v39 }
 0x183   : > { %1627 = vst.msk [vmem:[#allocation2 + $0x78] sm:$0xf] %vm1616_vm9, %v3184_v39  ;;  %1628 = vst.msk [vmem:[#allocation2 + $0x7c] sm:$0xf] %vm1616_vm9, %v3184_v39 }
 0x184   : > { %1629 = vst.msk [vmem:[#allocation2 + $0x90] sm:$0xf] %vm1616_vm9, %v3184_v39  ;;  %1630 = vst.msk [vmem:[#allocation2 + $0x94] sm:$0xf] %vm1616_vm9, %v3184_v39 }
 0x185   : > { %1631 = vst.msk [vmem:[#allocation2 + $0xa8] sm:$0xf] %vm1616_vm9, %v3184_v39  ;;  %1632 = vst.msk [vmem:[#allocation2 + $0xac] sm:$0xf] %vm1616_vm9, %v3184_v39 }
 0x186   : > { %1633 = vst.msk [vmem:[#allocation2 + $0xc0] sm:$0xf] %vm1616_vm9, %v3184_v39  ;;  %1634 = vst.msk [vmem:[#allocation2 + $0xc4] sm:$0xf] %vm1616_vm9, %v3184_v39 }
 0x187   : > { %1635 = vst.msk [vmem:[#allocation2 + $0xd8] sm:$0xf] %vm1616_vm9, %v3184_v39  ;;  %1636 = vst.msk [vmem:[#allocation2 + $0xdc] sm:$0xf] %vm1616_vm9, %v3184_v39 }
 0x188   : > { %1637 = vst.msk [vmem:[#allocation2 + $0xf0] sm:$0xf] %vm1616_vm9, %v3184_v39  ;;  %1638 = vst.msk [vmem:[#allocation2 + $0xf4] sm:$0xf] %vm1616_vm9, %v3184_v39 }
 0x189   : > { %1639 = vst.msk [vmem:[#allocation2 + $0x108] sm:$0xf] %vm1616_vm9, %v3184_v39  ;;  %1640 = vst.msk [vmem:[#allocation2 + $0x10c] sm:$0xf] %vm1616_vm9, %v3184_v39 }
 0x18a   : > { %1641 = vst.msk [vmem:[#allocation2 + $0x120] sm:$0xf] %vm1616_vm9, %v3184_v39  ;;  %1642 = vst.msk [vmem:[#allocation2 + $0x124] sm:$0xf] %vm1616_vm9, %v3184_v39 }
 0x18b   : > { %1643 = vst.msk [vmem:[#allocation2 + $0x138] sm:$0xf] %vm1616_vm9, %v3184_v39  ;;  %1644 = vst.msk [vmem:[#allocation2 + $0x13c] sm:$0xf] %vm1616_vm9, %v3184_v39 }
 0x18c   : > { %1645 = vst.msk [vmem:[#allocation2 + $0x150] sm:$0xf] %vm1616_vm9, %v3184_v39  ;;  %1646 = vst.msk [vmem:[#allocation2 + $0x154] sm:$0xf] %vm1616_vm9, %v3184_v39 }
 0x18d   : > { %1647 = vst.msk [vmem:[#allocation2 + $0x168] sm:$0xf] %vm1616_vm9, %v3184_v39  ;;  %1648 = vst.msk [vmem:[#allocation2 + $0x16c] sm:$0xf] %vm1616_vm9, %v3184_v39 }
 0x18e   : > { %1649 = vst.msk [vmem:[#allocation2 + $0x180] sm:$0xf] %vm1616_vm9, %v3184_v39  ;;  %1650 = vst.msk [vmem:[#allocation2 + $0x184] sm:$0xf] %vm1616_vm9, %v3184_v39 }
 0x18f   : > { %1651 = vst.msk [vmem:[#allocation2 + $0x198] sm:$0xf] %vm1616_vm9, %v3184_v39  ;;  %1652 = vst.msk [vmem:[#allocation2 + $0x19c] sm:$0xf] %vm1616_vm9, %v3184_v39 }
 0x190   : > { %1653 = vst.msk [vmem:[#allocation2 + $0x1b0] sm:$0xf] %vm1616_vm9, %v3184_v39  ;;  %1654 = vst.msk [vmem:[#allocation2 + $0x1b4] sm:$0xf] %vm1616_vm9, %v3184_v39 }
 0x191   : > { %1655 = vst.msk [vmem:[#allocation2 + $0x1c8] sm:$0xf] %vm1616_vm9, %v3184_v39  ;;  %1656 = vst.msk [vmem:[#allocation2 + $0x1cc] sm:$0xf] %vm1616_vm9, %v3184_v39 }
 0x192   : > { %1657 = vst.msk [vmem:[#allocation2 + $0x1e0] sm:$0xf] %vm1616_vm9, %v3184_v39  ;;  %1658 = vst.msk [vmem:[#allocation2 + $0x1e4] sm:$0xf] %vm1616_vm9, %v3184_v39 }
 0x193   : > { %1659 = vst.msk [vmem:[#allocation2 + $0x1f8] sm:$0xf] %vm1616_vm9, %v3184_v39  ;;  %1660 = vst.msk [vmem:[#allocation2 + $0x1fc] sm:$0xf] %vm1616_vm9, %v3184_v39 }
 0x194   : > { %1661 = vst.msk [vmem:[#allocation2 + $0x210] sm:$0xf] %vm1616_vm9, %v3184_v39  ;;  %1662 = vst.msk [vmem:[#allocation2 + $0x214] sm:$0xf] %vm1616_vm9, %v3184_v39 }
 0x195   : > { %1663 = vst.msk [vmem:[#allocation2 + $0x228] sm:$0xf] %vm1616_vm9, %v3184_v39  ;;  %1664 = vst.msk [vmem:[#allocation2 + $0x22c] sm:$0xf] %vm1616_vm9, %v3184_v39 }
 0x196   : > { %1672 = vst.msk [vmem:[#allocation2 + $0x8] sm:$0xf] %vm1463_vm8, %v3184_v39  ;;  %1673 = vst.msk [vmem:[#allocation2 + $0xc] sm:$0xf] %vm1463_vm8, %v3184_v39 }
 0x197   : > { %1674 = vst.msk [vmem:[#allocation2 + $0x10] sm:$0xf] %vm1463_vm8, %v3184_v39  ;;  %1675 = vst.msk [vmem:[#allocation2 + $0x14] sm:$0xf] %vm1463_vm8, %v3184_v39 }
 0x198   : > { %1670 = vst.msk [vmem:[#allocation2] sm:$0xf] %vm1463_vm8, %v3184_v39  ;;  %1671 = vst.msk [vmem:[#allocation2 + $0x4] sm:$0xf] %vm1463_vm8, %v3184_v39 }
 0x199 LB: >> { %v4660_v8 = vld [vmem:[#allocation16_spill] sm:$0xff]  ;;  %vm1774_vm10 = vcmask 392192   ;;  %v2780_v57 = vcombine.low %v4018_v49, %v4023_v50  ;;  %s2863_s16 = smul.u32 48, %s3178_s12  ;;  %v3185_v58 = vmov 0   ;;  %v2770_v53 = vcombine.low %v4122_v55, %v4127_v12  ;;  %v4661_v11 = vld [vmem:[#allocation21_spill] sm:$0xff]  ;;  %v4662_v9 = vld [vmem:[#allocation18_spill] sm:$0xff]  ;;  %s3178_s12 = sphi %s4229_s12, %s1715_s12  }
 0x19a   : >> { %v2769_v45 = vcombine.low %v4112_v18, %v4660_v8  ;;  %3057 = vset.pattern.permute.xlu1 %v3185_v58  ;;  %3056 = vset.pattern.permute.xlu0 %v3185_v58  ;;  %v2781_v56 = vcombine.low %v4080_v37, %v4085_v40  ;;  %v4663_v5 = vld [vmem:[#allocation17_spill] sm:$0xff]  ;;  %v2782_v27 = vcombine.low %v4090_v16, %v4096_v62  ;;  %v4664_v10 = vld [vmem:[#allocation19_spill] sm:$0xff]  ;;  %v4666_v3 = vld [vmem:[#allocation20_spill] sm:$0xff]  ;;  %s2810_s19 = sshll.u32 %s3178_s12, 6  ;;  %vm2150_vm11 = vcmask 64512   ;;  %s1715_s12 = sadd.s32 1, %s3178_s12  }
 0x19b   : >> { %2913 = vmatprep.mubr.msk.bf16.mxu1 %vm1774_vm10, %v2780_v57  ;;  %2112 = vperm.xlu1 %3057, %v4202_v34   ;;  %s4243_s15 = scalar_lea.vmem [#allocation2], %s2863_s16  ;;  %v2771_v43 = vcombine.low %v4663_v5, %v4662_v9  ;;  %v2772_v25 = vcombine.low %v4664_v10, %v4147_v14  ;;  %v4665_v6 = vld [vmem:[#allocation15_spill] sm:$0xff]  ;;  %v2799_v51 = vcombine.low %v4152_v36, %v4157_v22  ;;  %s2149_s23 = scalar_lea.vmem [#allocation3], %s2810_s19 }
 0x19c   : >> { %2899 = vmatprep.mubr.msk.bf16.mxu0 %vm1774_vm10, %v2769_v45  ;;  %2102 = vperm.xlu0 %3056, %v4192_v52   ;;  %v2783_v44 = vcombine.low %v4665_v6, %v4106_v24  ;;  %v2801_v60 = vcombine.low %v4172_v13, %v4177_v42  ;;  %v2800_v38 = vcombine.low %v4162_v19, %v4167_v23  ;;  %p1712_p11 = scmp.ge.s32.totalorder %s1715_s12, 8  }
 0x19d   : >> { %v2802_v15 = vcombine.low %v4182_v59, %v4666_v3  ;;  %s3186_s21 = smov (%p1712_p11), 8   ;;  %s3187_s20 = smov (%p1712_p11), 16   ;;  %vm2217_vm12 = vcmask (%p1712_p11), 130112   ;;  %vm2267_vm13 = vcmask (%p1712_p11), 195712   ;;  %vm2317_vm14 = vcmask (%p1712_p11), 261312  }
 0x19e   : > { %s3188_s30 = smov (%p1712_p11), 24   ;;  %s3189_s10 = smov (%p1712_p11), 32   ;;  %vm2367_vm15 = vcmask (%p1712_p11), 326912   ;;  %vm2417_vm0 = vcmask (%p1712_p11), 392512   ;;  %vm2467_vm1 = vcmask (%p1712_p11), 458112   ;;  %vm2517_vm2 = vcmask (%p1712_p11), 523712  }
 0x19f   : >> { %v3058_v35 = vld [vmem:[%s4243_s15 + $0x28] sm:$0xff]   ;;  %v3059_v7 = vld [vmem:[%s4243_s15 + $0x10] sm:$0xff]   ;;  %v3060_v26 = vld [vmem:[%s4243_s15 + $0x20] sm:$0xff]   ;;  %2117 = vperm.xlu1 %3057, %v4207_v21   ;;  %s3190_s1 = smov (%p1712_p11), 40   ;;  %s3191_s3 = smov (%p1712_p11), 48  }
 0x1a0   : >> { %2893 = vmatprep.subr.bf16.mxu0 %v3058_v35  ;;  %2907 = vmatprep.subr.bf16.mxu1 %v3059_v7  ;;  %v3061_v17 = vld [vmem:[%s4243_s15 + $0x8] sm:$0xff]   ;;  %v3062_v61 = vld [vmem:[%s4243_s15 + $0x18] sm:$0xff]   ;;  %v3063_v1 = vld [vmem:[%s4243_s15] sm:$0xff]   ;;  %s3192_s17 = smov (%p1712_p11), 56   ;;  %s2864_s18 = sshll.u32 (%p1712_p11), %s3162_s27, 10 }
 0x1a1   : >> { %2894 = vmatpush3.bf16.msra.mxu0 %v3058_v35  ;;  %2908 = vmatpush3.bf16.msra.mxu1 %v3059_v7  ;;  %v3064_v4 = vld [vmem:[%s4243_s15 + $0x40] sm:$0xff]   ;;  %v3065_v33 = vld [vmem:[%s4243_s15 + $0x38] sm:$0xff]   ;;  %v3066_v28 = vld [vmem:[%s4243_s15 + $0x30] sm:$0xff]   ;;  %s2541_s9 = sshll.u32 (%p1712_p11), %s3373_s8, 4  ;;  %s4439_s0 = scalar_lea.hbm (%p1712_p11), %s4502_s7, %s2864_s18  ;;  %s4441_s9 = int_to_ptr.vmem [resolvable:$true] %s2541_s9 }
 0x1a2   : >> { %2895 = vmatprep.subr.bf16.mxu0 %v3060_v26  ;;  %2909 = vmatprep.subr.bf16.mxu1 %v3061_v17  ;;  %s4667_s27 = sand.u32 (%p1712_p11), 1, %s3154_s25   ;;  %s3082_s2 = scalar_lea.vmem (%p1712_p11), %s4441_s9, 1024 }
 0x1a3   : >> { %2107 = vperm.xlu0 %3056, %v4197_v47   ;;  %2127 = vperm.xlu1 %3057, %v4217_v20   ;;  %s4449_s26 = scalar_lea.sflag (%p1712_p11), [#allocation5], %s4667_s27  ;;  %p3083_p13 = scmp.ne.s32.totalorder (%p1712_p11), %s4441_s9, %s3082_s2 }
 0x1a4   : > { %s3193_s4 = smov (%p1712_p11), [#allocation7]  }
 0x1a5   : >> { %2896 = vmatpush3.bf16.msra.mxu0 %v3060_v26  ;;  %2910 = vmatpush3.bf16.msra.mxu1 %v3061_v17  ;;  %p3084_p0 = pnand (%p1712_p11), %p3083_p13, %p3275_p4  ;;  %s3086_s13 = sshll.u32 (%p1712_p11), %s3193_s4, 4  ;;  %s3087_s13 = int_to_ptr.vmem [resolvable:$false] %s3086_s13 }
 0x1a6   : >> { %2897 = vmatprep.subr.bf16.mxu0 %v3062_v61  ;;  %2911 = vmatprep.subr.bf16.mxu1 %v3063_v1  ;;  %s3088_s14 = scalar_lea.vmem (%p1712_p11), %s3087_s13, 2048  ;;  %p3089_p2 = scmp.lt.s32.totalorder (%p1712_p11), %s4441_s9, %s3087_s13 }
 0x1a7   : >> { %2122 = vperm.xlu0 %3056, %v4661_v11   ;;  %2137 = vperm.xlu1 %3057, %v4227_v30   ;;  %p3085_p1 = pneg (%p1712_p11), %p3084_p0  ;;  %p3090_p3 = scmp.lt.s32.totalorder (%p1712_p11), %s3088_s14, %s3082_s2 }
 0x1a9   : >> { %2898 = vmatpush3.bf16.msra.mxu0 %v3062_v61  ;;  %2912 = vmatpush3.bf16.msra.mxu1 %v3063_v1  ;;  %p3091_p5 = por (%p1712_p11), %p3090_p3, %p3089_p2 }
 0x1aa   : >> { %2921 = vmatprep.subr.bf16.mxu0 %v3064_v4  ;;  %2935 = vmatprep.subr.bf16.mxu1 %v3064_v4 }
 0x1ab   : >> { %2132 = vperm.xlu0 %3056, %v4222_v29   ;;  %p3092_p6 = pnand (%p1712_p11), %p3091_p5, %p3085_p1 }
 0x1ac   : >> { %2900 = vmatmul.mubr.msk.bf16.vlgmr.msra.gmra.mxu0 %vm1774_vm10, %v2770_v53  ;;  %2914 = vmatmul.mubr.msk.bf16.vlgmr.msra.gmra.mxu1 %vm1774_vm10, %v2781_v56 }
 0x1ad   : >> { %2922 = vmatpush3.bf16.msra.mxu0 %v3064_v4  ;;  %2938 = vmatpush3.bf16.msra.mxu1 %v3064_v4 }
 0x1ae   : >> { %2923 = vmatprep.subr.bf16.mxu0 %v3065_v33  ;;  %2936 = vmatprep.subr.bf16.mxu1 %v3065_v33 }
 0x1af   : >> { %2903 = vmatprep.mubr.msk.bf16.mxu0 %vm1774_vm10, %v2771_v43  ;;  %2917 = vmatprep.mubr.msk.bf16.mxu1 %vm1774_vm10, %v2782_v27 }
 0x1b1   : >> { %2924 = vmatpush3.bf16.msra.mxu0 %v3065_v33  ;;  %2939 = vmatpush3.bf16.msra.mxu1 %v3065_v33 }
 0x1b2   : >> { %2925 = vmatprep.subr.bf16.mxu0 %v3066_v28  ;;  %2937 = vmatprep.subr.bf16.mxu1 %v3066_v28 }
 0x1b4   : >> { %2904 = vmatmul.mubr.msk.bf16.gmra.mxu0 %vm1774_vm10, %v2772_v25  ;;  %2918 = vmatmul.mubr.msk.bf16.gmra.mxu1 %vm1774_vm10, %v2783_v44 }
 0x1b5   : >> { %2926 = vmatpush3.bf16.msra.mxu0 %v3066_v28  ;;  %2940 = vmatpush3.bf16.msra.mxu1 %v3066_v28 }
 0x1b6   : >> { %2927 = vmatprep.mubr.msk.bf16.mxu0 %vm1774_vm10, %v2799_v51  ;;  %2931 = vmatprep.mubr.msk.bf16.mxu1 %vm1774_vm10, %v2801_v60 }
 0x1bc   : >> { %2928 = vmatmul.mubr.msk.bf16.vlgmr.msra.gmra.mxu0 %vm1774_vm10, %v2800_v38  ;;  %2932 = vmatmul.mubr.msk.bf16.vlgmr.msra.gmra.mxu1 %vm1774_vm10, %v2802_v15 }
 0x216   : >> { %v2113_v32 = vpop.permute.xlu1 %2112 }
 0x217   : >> { %v2103_v0 = vpop.permute.xlu0 %2102 }
 0x21a   : >> { %v2118_v7 = vpop.permute.xlu1 %2117 }
 0x21e   : >> { %v2108_v39 = vpop.permute.xlu0 %2107  ;;  %v2128_v28 = vpop.permute.xlu1 %2127 }
 0x222   : >> { %v2123_v61 = vpop.permute.xlu0 %2122 }
 0x226   : >> { %v2133_v3 = vpop.permute.xlu0 %2132 }
 0x26c   : >> { %v2901_v2 = vpop.f32.mrf.mxu0  ;;  %v2915_v54 = vpop.f32.mrf.mxu1 }
 0x26d   : >> { %v1945_v53 = vadd.f32 %v2915_v54, %v2901_v2 }
 0x26e   : >> { %v1821_v63 = vpop.f32.mrf.mxu0  ;;  %v1936_v41 = vpop.f32.mrf.mxu1 }
 0x26f   : >> { %v1937_v27 = vadd.f32 %v1936_v41, %v1821_v63 }
 0x270   : >> { %v2902_v31 = vpop.f32.mrf.mxu0  ;;  %v2916_v46 = vpop.f32.mrf.mxu1 }
 0x271   : >> { %v1948_v15 = vadd.f32 %v2916_v46, %v2902_v31 }
 0x272   : >> { %v1824_v48 = vpop.f32.mrf.mxu0  ;;  %v1939_v45 = vpop.f32.mrf.mxu1 }
 0x273   : >> { %v1940_v11 = vadd.f32 %v1939_v45, %v1824_v48 }
 0x274   : >> { %v2905_v57 = vpop.f32.mrf.mxu0  ;;  %v2919_v58 = vpop.f32.mrf.mxu1 }
 0x275   : >> { %v1961_v33 = vadd.f32 %v2919_v58, %v2905_v57 }
 0x276   : >> { %v1837_v35 = vpop.f32.mrf.mxu0  ;;  %v1952_v26 = vpop.f32.mrf.mxu1 }
 0x277   : >> { %v1953_v51 = vadd.f32 %v1952_v26, %v1837_v35 }
 0x278   : >> { %v2906_v17 = vpop.f32.mrf.mxu0  ;;  %v2920_v1 = vpop.f32.mrf.mxu1 }
 0x279   : >> { %v1964_v9 = vadd.f32 %v2920_v1, %v2906_v17 }
 0x27a   : >> { %v1840_v4 = vpop.f32.mrf.mxu0  ;;  %v1955_v56 = vpop.f32.mrf.mxu1 }
 0x27b   : >> { %v1956_v58 = vadd.f32 %v1955_v56, %v1840_v4 }
 0x27c   : >> { %v2929_v43 = vpop.f32.mrf.mxu0  ;;  %v2933_v44 = vpop.f32.mrf.mxu1 }
 0x27d   : >> { %v2094_v25 = vadd.f32 %v2929_v43, %v1945_v53  ;;  %v2098_v60 = vadd.f32 %v2933_v44, %v1961_v33 }
 0x27e   : >> { %v2061_v38 = vpop.f32.mrf.mxu0  ;;  %v2077_v8 = vpop.f32.mrf.mxu1 }
 0x27f   : >> { %v2142_v5 = vadd.f32 %v2113_v32, %v2094_v25  ;;  %v2092_v6 = vadd.f32 %v2061_v38, %v1937_v27  ;;  %v2146_v10 = vadd.f32 %v2133_v3, %v2098_v60  ;;  %v2096_v2 = vadd.f32 %v2077_v8, %v1953_v51  ;;  %v2138_v32 = vpop.permute.xlu1 %2137 }
 0x280   : >> { %v2930_v54 = vpop.f32.mrf.mxu0  ;;  %v2934_v57 = vpop.f32.mrf.mxu1 }
 0x281   : >> { %2153 = vst.msk [vmem:[%s2149_s23 + $0x10] sm:$0xff] %vm2150_vm11, %v2142_v5  ;;  %v2140_v63 = vadd.f32 %v2103_v0, %v2092_v6  ;;  %v2095_v41 = vadd.f32 %v2930_v54, %v1948_v15  ;;  %2157 = vst.msk [vmem:[%s2149_s23 + $0x30] sm:$0xff] %vm2150_vm11, %v2146_v10  ;;  %v2144_v35 = vadd.f32 %v2123_v61, %v2096_v2 }
 0x282   : >> { %v2099_v31 = vadd.f32 %v2934_v57, %v1964_v9  ;;  %v2064_v46 = vpop.f32.mrf.mxu0  ;;  %v2080_v8 = vpop.f32.mrf.mxu1 }
 0x283   : >> { %2151 = vst.msk [vmem:[%s2149_s23] sm:$0xff] %vm2150_vm11, %v2140_v63  ;;  %v2143_v26 = vadd.f32 %v2118_v7, %v2095_v41  ;;  %v2093_v3 = vadd.f32 %v2064_v46, %v1940_v11  ;;  %2155 = vst.msk [vmem:[%s2149_s23 + $0x20] sm:$0xff] %vm2150_vm11, %v2144_v35  ;;  %v2097_v45 = vadd.f32 %v2080_v8, %v1956_v58  ;;  %1714 = sbr.rel (!%p1712_p11) target bundleno = 409 (0x199), region = 138 }
 0x284   : >> { %v2147_v48 = vadd.f32 %v2138_v32, %v2099_v31 }
 0x285   : >> { %2154 = vst.msk [vmem:[%s2149_s23 + $0x18] sm:$0xff] %vm2150_vm11, %v2143_v26  ;;  %v2141_v6 = vadd.f32 %v2108_v39, %v2093_v3  ;;  %v2145_v5 = vadd.f32 %v2128_v28, %v2097_v45 }
 0x286   : >> { %2158 = vst.msk [vmem:[%s2149_s23 + $0x38] sm:$0xff] %vm2150_vm11, %v2147_v48 }
 0x287   : >> { %2152 = vst.msk [vmem:[%s2149_s23 + $0x8] sm:$0xff] %vm2150_vm11, %v2141_v6  ;;  %2156 = vst.msk [vmem:[%s2149_s23 + $0x28] sm:$0xff] %vm2150_vm11, %v2145_v5 }
 0x28e   : > { %v2179_v9 = vld [vmem:[#allocation3 + $0x50] sm:$0xff]  ;;  %v2177_v10 = vld [vmem:[#allocation3 + $0x40] sm:$0xff]  ;;  %v2180_v11 = vld [vmem:[#allocation3 + $0x58] sm:$0xff] }
 0x28f   : > { %2197 = vrot.lane.b32.xlu1 %v2179_v9, %s3186_s21  ;;  %2193 = vrot.lane.b32.xlu0 %v2177_v10, %s3186_s21  ;;  %v2178_v0 = vld [vmem:[#allocation3 + $0x48] sm:$0xff]  ;;  %v2181_v7 = vld [vmem:[#allocation3 + $0x60] sm:$0xff]  ;;  %v2184_v49 = vld [vmem:[#allocation3 + $0x78] sm:$0xff] }
 0x290   : > { %v2182_v39 = vld [vmem:[#allocation3 + $0x68] sm:$0xff]  ;;  %v2183_v50 = vld [vmem:[#allocation3 + $0x70] sm:$0xff]  ;;  %v2227_v40 = vld [vmem:[#allocation3 + $0x80] sm:$0xff] }
 0x291   : > { %v2228_v37 = vld [vmem:[#allocation3 + $0x88] sm:$0xff]  ;;  %v2230_v16 = vld [vmem:[#allocation3 + $0x98] sm:$0xff]  ;;  %v2229_v62 = vld [vmem:[#allocation3 + $0x90] sm:$0xff] }
 0x292   : > { %v2161_v24 = vld [vmem:[#allocation3 + $0x10] sm:$0xff]  ;;  %v2159_v18 = vld [vmem:[#allocation3] sm:$0xff]  ;;  %v2162_v55 = vld [vmem:[#allocation3 + $0x18] sm:$0xff] }
 0x293   : > { %2199 = vrot.lane.b32.xlu1 %v2180_v11, %s3186_s21  ;;  %2195 = vrot.lane.b32.xlu0 %v2178_v0, %s3186_s21  ;;  %2170 = vst.msk [vmem:[%s3373_s8 + $0x10] sm:$0xff] %vm2150_vm11, %v2161_v24  ;;  %v2160_v12 = vld [vmem:[#allocation3 + $0x8] sm:$0xff]  ;;  %2168 = vst.msk [vmem:[%s3373_s8] sm:$0xff] %vm2150_vm11, %v2159_v18  ;;  %v2163_v36 = vld [vmem:[#allocation3 + $0x20] sm:$0xff] }
 0x294   : > { %2171 = vst.msk [vmem:[%s3373_s8 + $0x18] sm:$0xff] %vm2150_vm11, %v2162_v55  ;;  %2169 = vst.msk [vmem:[%s3373_s8 + $0x8] sm:$0xff] %vm2150_vm11, %v2160_v12  ;;  %v2164_v14 = vld [vmem:[#allocation3 + $0x28] sm:$0xff]  ;;  %v2166_v22 = vld [vmem:[#allocation3 + $0x38] sm:$0xff] }
 0x295   : > { %2173 = vst.msk [vmem:[%s3373_s8 + $0x28] sm:$0xff] %vm2150_vm11, %v2164_v14  ;;  %2172 = vst.msk [vmem:[%s3373_s8 + $0x20] sm:$0xff] %vm2150_vm11, %v2163_v36  ;;  %v2165_v19 = vld [vmem:[#allocation3 + $0x30] sm:$0xff]  ;;  %v2232_v23 = vld [vmem:[#allocation3 + $0xa8] sm:$0xff] }
 0x296   : > { %2175 = vst.msk [vmem:[%s3373_s8 + $0x38] sm:$0xff] %vm2150_vm11, %v2166_v22  ;;  %v2231_v13 = vld [vmem:[#allocation3 + $0xa0] sm:$0xff]  ;;  %2174 = vst.msk [vmem:[%s3373_s8 + $0x30] sm:$0xff] %vm2150_vm11, %v2165_v19  ;;  %v2234_v42 = vld [vmem:[#allocation3 + $0xb8] sm:$0xff] }
 0x297   : > { %2203 = vrot.lane.b32.xlu1 %v2182_v39, %s3186_s21  ;;  %2201 = vrot.lane.b32.xlu0 %v2181_v7, %s3186_s21  ;;  %v2233_v59 = vld [vmem:[#allocation3 + $0xb0] sm:$0xff]  ;;  %v2278_v52 = vld [vmem:[#allocation3 + $0xc8] sm:$0xff]  ;;  %v2277_v47 = vld [vmem:[#allocation3 + $0xc0] sm:$0xff] }
 0x298   : > { %v2280_v34 = vld [vmem:[#allocation3 + $0xd8] sm:$0xff]  ;;  %v2279_v21 = vld [vmem:[#allocation3 + $0xd0] sm:$0xff]  ;;  %v2282_v20 = vld [vmem:[#allocation3 + $0xe8] sm:$0xff] }
 0x299   : > { %v2281_v29 = vld [vmem:[#allocation3 + $0xe0] sm:$0xff]  ;;  %v2284_v30 = vld [vmem:[#allocation3 + $0xf8] sm:$0xff]  ;;  %v2283_v17 = vld [vmem:[#allocation3 + $0xf0] sm:$0xff] }
 0x29a   : > { %v2328_v61 = vld [vmem:[#allocation3 + $0x108] sm:$0xff]  ;;  %v2327_v1 = vld [vmem:[#allocation3 + $0x100] sm:$0xff]  ;;  %v2330_v4 = vld [vmem:[#allocation3 + $0x118] sm:$0xff] }
 0x29b   : > { %2207 = vrot.lane.b32.xlu1 %v2184_v49, %s3186_s21  ;;  %2205 = vrot.lane.b32.xlu0 %v2183_v50, %s3186_s21  ;;  %v2329_v53 = vld [vmem:[#allocation3 + $0x110] sm:$0xff]  ;;  %v2332_v56 = vld [vmem:[#allocation3 + $0x128] sm:$0xff]  ;;  %v2331_v33 = vld [vmem:[#allocation3 + $0x120] sm:$0xff] }
 0x29c   : > { %v2334_v43 = vld [vmem:[#allocation3 + $0x138] sm:$0xff]  ;;  %v2333_v27 = vld [vmem:[#allocation3 + $0x130] sm:$0xff]  ;;  %v2378_v28 = vld [vmem:[#allocation3 + $0x148] sm:$0xff] }
 0x29d   : > { %v2377_v25 = vld [vmem:[#allocation3 + $0x140] sm:$0xff]  ;;  %v2380_v44 = vld [vmem:[#allocation3 + $0x158] sm:$0xff]  ;;  %v2379_v51 = vld [vmem:[#allocation3 + $0x150] sm:$0xff] }
 0x29e   : > { %v2382_v60 = vld [vmem:[#allocation3 + $0x168] sm:$0xff]  ;;  %v2381_v38 = vld [vmem:[#allocation3 + $0x160] sm:$0xff]  ;;  %v2384_v15 = vld [vmem:[#allocation3 + $0x178] sm:$0xff] }
 0x29f   : > { %2245 = vrot.lane.b32.xlu1 %v2228_v37, %s3187_s20  ;;  %2243 = vrot.lane.b32.xlu0 %v2227_v40, %s3187_s20  ;;  %v2383_v2 = vld [vmem:[#allocation3 + $0x170] sm:$0xff]  ;;  %v2428_v54 = vld [vmem:[#allocation3 + $0x188] sm:$0xff]  ;;  %v2427_v63 = vld [vmem:[#allocation3 + $0x180] sm:$0xff] }
 0x2a0   : > { %v2430_v41 = vld [vmem:[#allocation3 + $0x198] sm:$0xff]  ;;  %v2429_v57 = vld [vmem:[#allocation3 + $0x190] sm:$0xff]  ;;  %v2432_v58 = vld [vmem:[#allocation3 + $0x1a8] sm:$0xff] }
 0x2a1   : > { %v2431_v35 = vld [vmem:[#allocation3 + $0x1a0] sm:$0xff]  ;;  %v2434_v31 = vld [vmem:[#allocation3 + $0x1b8] sm:$0xff]  ;;  %v2433_v46 = vld [vmem:[#allocation3 + $0x1b0] sm:$0xff] }
 0x2a2   : > { %v2478_v32 = vld [vmem:[#allocation3 + $0x1c8] sm:$0xff]  ;;  %v2477_v26 = vld [vmem:[#allocation3 + $0x1c0] sm:$0xff]  ;;  %v2480_v3 = vld [vmem:[#allocation3 + $0x1d8] sm:$0xff] }
 0x2a3   : > { %2249 = vrot.lane.b32.xlu1 %v2230_v16, %s3187_s20  ;;  %2247 = vrot.lane.b32.xlu0 %v2229_v62, %s3187_s20  ;;  %v2479_v8 = vld [vmem:[#allocation3 + $0x1d0] sm:$0xff]  ;;  %v2482_v48 = vld [vmem:[#allocation3 + $0x1e8] sm:$0xff]  ;;  %v2481_v45 = vld [vmem:[#allocation3 + $0x1e0] sm:$0xff] }
 0x2a4   : > { %v2484_v6 = vld [vmem:[#allocation3 + $0x1f8] sm:$0xff]  ;;  %v2483_v5 = vld [vmem:[#allocation3 + $0x1f0] sm:$0xff] }
 0x2a7   : > { %2253 = vrot.lane.b32.xlu1 %v2232_v23, %s3187_s20  ;;  %2251 = vrot.lane.b32.xlu0 %v2231_v13, %s3187_s20 }
 0x2ab   : > { %2257 = vrot.lane.b32.xlu1 %v2234_v42, %s3187_s20  ;;  %2255 = vrot.lane.b32.xlu0 %v2233_v59, %s3187_s20 }
 0x2af   : > { %2295 = vrot.lane.b32.xlu1 %v2278_v52, %s3188_s30  ;;  %2293 = vrot.lane.b32.xlu0 %v2277_v47, %s3188_s30 }
 0x2b3   : > { %2299 = vrot.lane.b32.xlu1 %v2280_v34, %s3188_s30  ;;  %2297 = vrot.lane.b32.xlu0 %v2279_v21, %s3188_s30 }
 0x2b7   : > { %2303 = vrot.lane.b32.xlu1 %v2282_v20, %s3188_s30  ;;  %2301 = vrot.lane.b32.xlu0 %v2281_v29, %s3188_s30 }
 0x2bb   : > { %2307 = vrot.lane.b32.xlu1 %v2284_v30, %s3188_s30  ;;  %2305 = vrot.lane.b32.xlu0 %v2283_v17, %s3188_s30 }
 0x2bf   : > { %2345 = vrot.lane.b32.xlu1 %v2328_v61, %s3189_s10  ;;  %2343 = vrot.lane.b32.xlu0 %v2327_v1, %s3189_s10 }
 0x2c3   : > { %2349 = vrot.lane.b32.xlu1 %v2330_v4, %s3189_s10  ;;  %2347 = vrot.lane.b32.xlu0 %v2329_v53, %s3189_s10 }
 0x2c7   : > { %2353 = vrot.lane.b32.xlu1 %v2332_v56, %s3189_s10  ;;  %2351 = vrot.lane.b32.xlu0 %v2331_v33, %s3189_s10 }
 0x2cb   : > { %2357 = vrot.lane.b32.xlu1 %v2334_v43, %s3189_s10  ;;  %2355 = vrot.lane.b32.xlu0 %v2333_v27, %s3189_s10 }
 0x2cf   : > { %2395 = vrot.lane.b32.xlu1 %v2378_v28, %s3190_s1  ;;  %2393 = vrot.lane.b32.xlu0 %v2377_v25, %s3190_s1 }
 0x2d3   : > { %2399 = vrot.lane.b32.xlu1 %v2380_v44, %s3190_s1  ;;  %2397 = vrot.lane.b32.xlu0 %v2379_v51, %s3190_s1 }
 0x2d7   : > { %2403 = vrot.lane.b32.xlu1 %v2382_v60, %s3190_s1  ;;  %2401 = vrot.lane.b32.xlu0 %v2381_v38, %s3190_s1 }
 0x2db   : > { %2407 = vrot.lane.b32.xlu1 %v2384_v15, %s3190_s1  ;;  %2405 = vrot.lane.b32.xlu0 %v2383_v2, %s3190_s1 }
 0x2df   : > { %2445 = vrot.lane.b32.xlu1 %v2428_v54, %s3191_s3  ;;  %2443 = vrot.lane.b32.xlu0 %v2427_v63, %s3191_s3 }
 0x2e3   : > { %2449 = vrot.lane.b32.xlu1 %v2430_v41, %s3191_s3  ;;  %2447 = vrot.lane.b32.xlu0 %v2429_v57, %s3191_s3 }
 0x2e7   : > { %2453 = vrot.lane.b32.xlu1 %v2432_v58, %s3191_s3  ;;  %2451 = vrot.lane.b32.xlu0 %v2431_v35, %s3191_s3 }
 0x2eb   : > { %2457 = vrot.lane.b32.xlu1 %v2434_v31, %s3191_s3  ;;  %2455 = vrot.lane.b32.xlu0 %v2433_v46, %s3191_s3 }
 0x2ef   : > { %2495 = vrot.lane.b32.xlu1 %v2478_v32, %s3192_s17  ;;  %2493 = vrot.lane.b32.xlu0 %v2477_v26, %s3192_s17 }
 0x2f3   : > { %2499 = vrot.lane.b32.xlu1 %v2480_v3, %s3192_s17  ;;  %2497 = vrot.lane.b32.xlu0 %v2479_v8, %s3192_s17 }
 0x2f7   : > { %2503 = vrot.lane.b32.xlu1 %v2482_v48, %s3192_s17  ;;  %2501 = vrot.lane.b32.xlu0 %v2481_v45, %s3192_s17 }
 0x2fb   : > { %2507 = vrot.lane.b32.xlu1 %v2484_v6, %s3192_s17  ;;  %2505 = vrot.lane.b32.xlu0 %v2483_v5, %s3192_s17 }
 0x301   : > { %v2198_v9 = vpop.permute.xlu1 %2197  ;;  %v2194_v10 = vpop.permute.xlu0 %2193 }
 0x302   : > { %2220 = vst.msk [vmem:[%s3373_s8 + $0x10] sm:$0xff] %vm2217_vm12, %v2198_v9  ;;  %2218 = vst.msk [vmem:[%s3373_s8] sm:$0xff] %vm2217_vm12, %v2194_v10 }
 0x305   : > { %v2200_v11 = vpop.permute.xlu1 %2199  ;;  %v2196_v0 = vpop.permute.xlu0 %2195 }
 0x306   : > { %2221 = vst.msk [vmem:[%s3373_s8 + $0x18] sm:$0xff] %vm2217_vm12, %v2200_v11  ;;  %2219 = vst.msk [vmem:[%s3373_s8 + $0x8] sm:$0xff] %vm2217_vm12, %v2196_v0 }
 0x309   : > { %v2204_v39 = vpop.permute.xlu1 %2203  ;;  %v2202_v7 = vpop.permute.xlu0 %2201 }
 0x30a   : > { %2223 = vst.msk [vmem:[%s3373_s8 + $0x28] sm:$0xff] %vm2217_vm12, %v2204_v39  ;;  %2222 = vst.msk [vmem:[%s3373_s8 + $0x20] sm:$0xff] %vm2217_vm12, %v2202_v7 }
 0x30d   : > { %v2208_v49 = vpop.permute.xlu1 %2207  ;;  %v2206_v50 = vpop.permute.xlu0 %2205 }
 0x30e   : > { %2225 = vst.msk [vmem:[%s3373_s8 + $0x38] sm:$0xff] %vm2217_vm12, %v2208_v49  ;;  %2224 = vst.msk [vmem:[%s3373_s8 + $0x30] sm:$0xff] %vm2217_vm12, %v2206_v50 }
 0x311   : > { %v2246_v37 = vpop.permute.xlu1 %2245  ;;  %v2244_v40 = vpop.permute.xlu0 %2243 }
 0x312   : > { %2269 = vst.msk [vmem:[%s3373_s8 + $0x8] sm:$0xff] %vm2267_vm13, %v2246_v37  ;;  %2268 = vst.msk [vmem:[%s3373_s8] sm:$0xff] %vm2267_vm13, %v2244_v40 }
 0x315   : > { %v2250_v16 = vpop.permute.xlu1 %2249  ;;  %v2248_v62 = vpop.permute.xlu0 %2247 }
 0x316   : > { %2271 = vst.msk [vmem:[%s3373_s8 + $0x18] sm:$0xff] %vm2267_vm13, %v2250_v16  ;;  %2270 = vst.msk [vmem:[%s3373_s8 + $0x10] sm:$0xff] %vm2267_vm13, %v2248_v62 }
 0x319   : > { %v2254_v24 = vpop.permute.xlu1 %2253  ;;  %v2252_v18 = vpop.permute.xlu0 %2251 }
 0x31a   : > { %2273 = vst.msk [vmem:[%s3373_s8 + $0x28] sm:$0xff] %vm2267_vm13, %v2254_v24  ;;  %2272 = vst.msk [vmem:[%s3373_s8 + $0x20] sm:$0xff] %vm2267_vm13, %v2252_v18 }
 0x31d   : > { %v2258_v55 = vpop.permute.xlu1 %2257  ;;  %v2256_v12 = vpop.permute.xlu0 %2255 }
 0x31e   : > { %2275 = vst.msk [vmem:[%s3373_s8 + $0x38] sm:$0xff] %vm2267_vm13, %v2258_v55  ;;  %2274 = vst.msk [vmem:[%s3373_s8 + $0x30] sm:$0xff] %vm2267_vm13, %v2256_v12 }
 0x321   : > { %v2296_v14 = vpop.permute.xlu1 %2295  ;;  %v2294_v36 = vpop.permute.xlu0 %2293 }
 0x322   : > { %2319 = vst.msk [vmem:[%s3373_s8 + $0x8] sm:$0xff] %vm2317_vm14, %v2296_v14  ;;  %2318 = vst.msk [vmem:[%s3373_s8] sm:$0xff] %vm2317_vm14, %v2294_v36 }
 0x325   : > { %v2300_v22 = vpop.permute.xlu1 %2299  ;;  %v2298_v19 = vpop.permute.xlu0 %2297 }
 0x326   : > { %2321 = vst.msk [vmem:[%s3373_s8 + $0x18] sm:$0xff] %vm2317_vm14, %v2300_v22  ;;  %2320 = vst.msk [vmem:[%s3373_s8 + $0x10] sm:$0xff] %vm2317_vm14, %v2298_v19 }
 0x329   : > { %v2304_v23 = vpop.permute.xlu1 %2303  ;;  %v2302_v13 = vpop.permute.xlu0 %2301 }
 0x32a   : > { %2323 = vst.msk [vmem:[%s3373_s8 + $0x28] sm:$0xff] %vm2317_vm14, %v2304_v23  ;;  %2322 = vst.msk [vmem:[%s3373_s8 + $0x20] sm:$0xff] %vm2317_vm14, %v2302_v13 }
 0x32d   : > { %v2308_v42 = vpop.permute.xlu1 %2307  ;;  %v2306_v59 = vpop.permute.xlu0 %2305 }
 0x32e   : > { %2325 = vst.msk [vmem:[%s3373_s8 + $0x38] sm:$0xff] %vm2317_vm14, %v2308_v42  ;;  %2324 = vst.msk [vmem:[%s3373_s8 + $0x30] sm:$0xff] %vm2317_vm14, %v2306_v59 }
 0x331   : > { %v2346_v52 = vpop.permute.xlu1 %2345  ;;  %v2344_v47 = vpop.permute.xlu0 %2343 }
 0x332   : > { %2369 = vst.msk [vmem:[%s3373_s8 + $0x8] sm:$0xff] %vm2367_vm15, %v2346_v52  ;;  %2368 = vst.msk [vmem:[%s3373_s8] sm:$0xff] %vm2367_vm15, %v2344_v47 }
 0x335   : > { %v2350_v34 = vpop.permute.xlu1 %2349  ;;  %v2348_v21 = vpop.permute.xlu0 %2347 }
 0x336   : > { %2371 = vst.msk [vmem:[%s3373_s8 + $0x18] sm:$0xff] %vm2367_vm15, %v2350_v34  ;;  %2370 = vst.msk [vmem:[%s3373_s8 + $0x10] sm:$0xff] %vm2367_vm15, %v2348_v21 }
 0x339   : > { %v2354_v20 = vpop.permute.xlu1 %2353  ;;  %v2352_v29 = vpop.permute.xlu0 %2351 }
 0x33a   : > { %2373 = vst.msk [vmem:[%s3373_s8 + $0x28] sm:$0xff] %vm2367_vm15, %v2354_v20  ;;  %2372 = vst.msk [vmem:[%s3373_s8 + $0x20] sm:$0xff] %vm2367_vm15, %v2352_v29 }
 0x33d   : > { %v2358_v30 = vpop.permute.xlu1 %2357  ;;  %v2356_v17 = vpop.permute.xlu0 %2355 }
 0x33e   : > { %2375 = vst.msk [vmem:[%s3373_s8 + $0x38] sm:$0xff] %vm2367_vm15, %v2358_v30  ;;  %2374 = vst.msk [vmem:[%s3373_s8 + $0x30] sm:$0xff] %vm2367_vm15, %v2356_v17 }
 0x341   : > { %v2396_v61 = vpop.permute.xlu1 %2395  ;;  %v2394_v1 = vpop.permute.xlu0 %2393 }
 0x342   : > { %2419 = vst.msk [vmem:[%s3373_s8 + $0x8] sm:$0xff] %vm2417_vm0, %v2396_v61  ;;  %2418 = vst.msk [vmem:[%s3373_s8] sm:$0xff] %vm2417_vm0, %v2394_v1 }
 0x345   : > { %v2400_v4 = vpop.permute.xlu1 %2399  ;;  %v2398_v53 = vpop.permute.xlu0 %2397 }
 0x346   : > { %2421 = vst.msk [vmem:[%s3373_s8 + $0x18] sm:$0xff] %vm2417_vm0, %v2400_v4  ;;  %2420 = vst.msk [vmem:[%s3373_s8 + $0x10] sm:$0xff] %vm2417_vm0, %v2398_v53 }
 0x349   : > { %v2404_v56 = vpop.permute.xlu1 %2403  ;;  %v2402_v33 = vpop.permute.xlu0 %2401 }
 0x34a   : > { %2423 = vst.msk [vmem:[%s3373_s8 + $0x28] sm:$0xff] %vm2417_vm0, %v2404_v56  ;;  %2422 = vst.msk [vmem:[%s3373_s8 + $0x20] sm:$0xff] %vm2417_vm0, %v2402_v33 }
 0x34d   : > { %v2408_v43 = vpop.permute.xlu1 %2407  ;;  %v2406_v27 = vpop.permute.xlu0 %2405 }
 0x34e   : > { %2425 = vst.msk [vmem:[%s3373_s8 + $0x38] sm:$0xff] %vm2417_vm0, %v2408_v43  ;;  %2424 = vst.msk [vmem:[%s3373_s8 + $0x30] sm:$0xff] %vm2417_vm0, %v2406_v27 }
 0x351   : > { %v2446_v28 = vpop.permute.xlu1 %2445  ;;  %v2444_v25 = vpop.permute.xlu0 %2443 }
 0x352   : > { %2469 = vst.msk [vmem:[%s3373_s8 + $0x8] sm:$0xff] %vm2467_vm1, %v2446_v28  ;;  %2468 = vst.msk [vmem:[%s3373_s8] sm:$0xff] %vm2467_vm1, %v2444_v25 }
 0x355   : > { %v2450_v44 = vpop.permute.xlu1 %2449  ;;  %v2448_v51 = vpop.permute.xlu0 %2447 }
 0x356   : > { %2471 = vst.msk [vmem:[%s3373_s8 + $0x18] sm:$0xff] %vm2467_vm1, %v2450_v44  ;;  %2470 = vst.msk [vmem:[%s3373_s8 + $0x10] sm:$0xff] %vm2467_vm1, %v2448_v51 }
 0x359   : > { %v2454_v60 = vpop.permute.xlu1 %2453  ;;  %v2452_v38 = vpop.permute.xlu0 %2451 }
 0x35a   : > { %2473 = vst.msk [vmem:[%s3373_s8 + $0x28] sm:$0xff] %vm2467_vm1, %v2454_v60  ;;  %2472 = vst.msk [vmem:[%s3373_s8 + $0x20] sm:$0xff] %vm2467_vm1, %v2452_v38 }
 0x35d   : > { %v2458_v15 = vpop.permute.xlu1 %2457  ;;  %v2456_v2 = vpop.permute.xlu0 %2455 }
 0x35e   : > { %2475 = vst.msk [vmem:[%s3373_s8 + $0x38] sm:$0xff] %vm2467_vm1, %v2458_v15  ;;  %2474 = vst.msk [vmem:[%s3373_s8 + $0x30] sm:$0xff] %vm2467_vm1, %v2456_v2 }
 0x361   : > { %v2496_v54 = vpop.permute.xlu1 %2495  ;;  %v2494_v63 = vpop.permute.xlu0 %2493 }
 0x362   : > { %2519 = vst.msk [vmem:[%s3373_s8 + $0x8] sm:$0xff] %vm2517_vm2, %v2496_v54  ;;  %2518 = vst.msk [vmem:[%s3373_s8] sm:$0xff] %vm2517_vm2, %v2494_v63 }
 0x365   : > { %v2500_v41 = vpop.permute.xlu1 %2499  ;;  %v2498_v57 = vpop.permute.xlu0 %2497 }
 0x366   : > { %2521 = vst.msk [vmem:[%s3373_s8 + $0x18] sm:$0xff] %vm2517_vm2, %v2500_v41  ;;  %2520 = vst.msk [vmem:[%s3373_s8 + $0x10] sm:$0xff] %vm2517_vm2, %v2498_v57 }
 0x369   : > { %v2504_v58 = vpop.permute.xlu1 %2503  ;;  %v2502_v35 = vpop.permute.xlu0 %2501 }
 0x36a   : > { %2523 = vst.msk [vmem:[%s3373_s8 + $0x28] sm:$0xff] %vm2517_vm2, %v2504_v58  ;;  %2522 = vst.msk [vmem:[%s3373_s8 + $0x20] sm:$0xff] %vm2517_vm2, %v2502_v35 }
 0x36d   : > { %v2508_v31 = vpop.permute.xlu1 %2507  ;;  %v2506_v46 = vpop.permute.xlu0 %2505 }
 0x36e   : > { %2525 = vst.msk [vmem:[%s3373_s8 + $0x38] sm:$0xff] %vm2517_vm2, %v2508_v31  ;;  %2524 = vst.msk [vmem:[%s3373_s8 + $0x30] sm:$0xff] %vm2517_vm2, %v2506_v46 }
 0x36f   : > { %3095 = shalt.err (!%p3092_p6)
}
 0x370   : > { %s3096_s8 = scalar_lea.hbm %s4439_s0, 1024  ;;  %s3100_s15 = scalar_lea.hbm %s4502_s7, 2048 }
 0x371   : > { %p3097_p7 = scmp.ne.s32.totalorder %s4439_s0, %s3096_s8  ;;  %p3101_p10 = scmp.lt.s32.totalorder %s4439_s0, %s4502_s7 }
 0x372   : > { %p3102_p11 = scmp.lt.s32.totalorder %s3100_s15, %s3096_s8 }
 0x373   : > { %p3098_p9 = pnand %p3097_p7, %p3275_p4 }
 0x374   : > { %p3103_p13 = por %p3102_p11, %p3101_p10 }
 0x375   : > { %p3099_p12 = pneg %p3098_p9 }
 0x377   : > { %p3104_p0 = pnand %p3103_p13, %p3099_p12 }
 0x379   : > { %3107 = shalt.err (!%p3104_p0)
}
 0x37a   : > { %s3194_s20 = smov 128  }
 0x37b   : > { %2946 = dma.vmem_to_hbm [thread:$0]  (%p3275_p4), %s4441_s9, 1024, %s4439_s0, %s4449_s26, %s3194_s20, %s3194_s20, %s3186_s21  }
 0x37c PF: > { %p2958_p1 = scmp.ge.s32.totalorder %s3170_s29, 2  ;;  %s2556_s10 = sand.u32 1, %s3150_s24  }
 0x37d   : > { %s2557_s1 = scalar_lea.sflag [#allocation5], %s2556_s10 }
 0x37e   : > { %p2953_p2 = pnand %p2958_p1, %p3282_p8 }
 0x380   : > { %p2954_p3 = pneg %p2953_p2 }
 0x382   : > { %3145 = dma.done.wait (%p2954_p3), %s2557_s1, 1024  }
 0x383   : > { %3147 = vsyncadd (%p2954_p3), %s2557_s1, 4294966272  ;;  %s21_s29 = sadd.s32 1, %s3170_s29   ;;  %s4669_s11 = sld [smem:[#allocation10_spill]] }
 0x384   : > { %p18_p5 = scmp.ge.s32.totalorder %s21_s29, 4   ;;  %s4670_s26 = sld [smem:[#allocation14_spill]] }
 0x385   : > { %s4671_s27 = sld [smem:[#allocation11_spill]]  ;;  %s4673_s24 = smov %s3154_s25 }
 0x386   : > { %s4672_s28 = sld [smem:[#allocation12_spill]]  ;;  %20 = sbr.rel (!%p18_p5) target bundleno = 11 (0xb), region = 149 }
 0x389   : > { %s4674_s25 = smov %s4669_s11 }
 0x38b   :  { %2562 = vsyncpa [#allocation5], 1 }
 0x38c   :  { %2564 = vsyncpa [#allocation5 + $0x1], 1 }
 0x38d   :  { %2565 = vsyncpa [#allocation6], 1 }
 0x38e   :  { %2567 = vsyncpa [#allocation6 + $0x1], 1 }

</bundles_post_ra>
